<compile_context>
chip_gen: v7x
topology: tpu7x:2x2x1
jax: 0.10.0
libtpu: 0.0.40
codegen_flags: <defaults>
</compile_context>

<pallas_src>
import functools

import jax
import jax.numpy as jnp
from jax.experimental import pallas as pl
from jax.experimental.pallas import tpu as pltpu


# ----------------------------------------------------------------------------
# Fused ASPP kernel: 1x1 branch + all dilated 3x3 branches + image-pool branch,
# folded BN + ReLU, single concatenated lane-dense store per row tile.
# ----------------------------------------------------------------------------
def _aspp_fused_kernel(x_ref, wc_ref, woff_ref, bias_ref, wp_ref, bp_ref,
                       o_ref, xpad_ref, pool_ref, *,
                       rates, R, tile_h, H, W, Cout):
    # x_ref:    (1, H, W, Cin)          unpadded image of this batch element
    #                                   (constant block index along the row
    #                                    axis -> one HBM read per n)
    # wc_ref:   (Cin, n_conv*Cout)      1x1 weights + centre tap of every
    #                                   dilated branch, BN scale folded
    # woff_ref: (8*len(rates), Cin, Cout) off-centre taps, BN scale folded
    # bias_ref: (1, n_conv*Cout)        folded BN biases of the conv branches
    # wp_ref:   (Cin, Cout), bp_ref: (1, Cout)  image-pool 1x1 conv (folded)
    # o_ref:    (tile_h*W, Ctot)        lane-dense concatenated output tile
    # xpad_ref: (H+2R, W+2R, Cin)       per-batch zero-padded image (scratch)
    # pool_ref: (1, Cout)               image-pool branch activation (scratch)
    i = pl.program_id(1)
    Cin = x_ref.shape[-1]
    M = tile_h * W

    @pl.when(i == 0)
    def _():
        # Build the max-rate zero-padded image once per batch element directly
        # in VMEM (replaces the host-side jnp.pad and its HBM round trip).
        xpad_ref[...] = jnp.zeros_like(xpad_ref)
        xpad_ref[R:R + H, R:R + W, :] = x_ref[0]
        # Image-pool branch: global mean -> 1x1 conv (+folded BN) -> ReLU.
        # Bilinear upsample from a 1x1 map is a plain broadcast (done per tile).
        xsum = jnp.sum(x_ref[0].astype(jnp.float32).reshape(H * W, Cin),
                       axis=0, keepdims=True)                      # (1, Cin)
        pooled = jnp.dot(xsum * (1.0 / (H * W)), wp_ref[...],
                         preferred_element_type=jnp.float32) + bp_ref[...]
        pool_ref[...] = jnp.maximum(pooled, 0.0)

    row0 = pl.multiple_of(i * tile_h, tile_h)   # first output row of this tile

    def band(dr):
        # one padded row band, always in bounds thanks to the padded scratch
        return xpad_ref[pl.ds(row0 + dr, tile_h), :, :]    # (tile_h, W+2R, Cin)

    def win(b, co):
        # kx column window sliced from an already-loaded band value
        return b[:, co:co + W, :].reshape(M, Cin)           # (M, Cin)

    mid = band(R)

    # 1x1 branch + centre tap of every dilated branch: one wide matmul, bias
    # folded into the init so the epilogue is just ReLU.
    acc_all = jnp.dot(win(mid, R), wc_ref[...],
                      preferred_element_type=jnp.float32) + bias_ref[...]

    # Off-centre taps (8 per dilated branch); one band load per (rate, ky).
    off_list = []
    t = 0
    for r in rates:
        top, bot = band(R - r), band(R + r)
        taps = [(top, R - r), (top, R), (top, R + r),
                (mid, R - r),           (mid, R + r),
                (bot, R - r), (bot, R), (bot, R + r)]
        acc = jnp.zeros((M, Cout), jnp.float32)
        for (b, co) in taps:
            acc = acc + jnp.dot(win(b, co), woff_ref[t],
                                preferred_element_type=jnp.float32)
            t += 1
        off_list.append(acc)

    conv_all = jnp.maximum(
        acc_all + jnp.concatenate([jnp.zeros((M, Cout), jnp.float32)] + off_list,
                                  axis=-1), 0.0)               # (M, n_conv*Cout)
    pool_b = jnp.broadcast_to(pool_ref[...], (M, Cout))
    # Single full-channel-width, lane-dense store of the concatenated tile.
    o_ref[...] = jnp.concatenate([conv_all, pool_b], axis=-1).astype(o_ref.dtype)


def aspp_fused(x, w_center, w_off, bias_flat, wp, bp, *, rates, R, Cout, tile_h):
    N, H, W, Cin = x.shape
    n_conv = 1 + len(rates)
    Ctot = (n_conv + 1) * Cout
    n_row = H // tile_h
    Hp, Wp = H + 2 * R, W + 2 * R
    n_off = w_off.shape[0]

    kernel = functools.partial(_aspp_fused_kernel, rates=tuple(rates), R=R,
                               tile_h=tile_h, H=H, W=W, Cout=Cout)
    out_flat = pl.pallas_call(
        kernel,
        # (N, H*W, Ctot) slab so the per-tile store is a plain 2-D lane-dense
        # block; the wrapper reshapes back to NHWC for free (contiguous).
        out_shape=jax.ShapeDtypeStruct((N, H * W, Ctot), x.dtype),
        grid_spec=pltpu.PrefetchScalarGridSpec(
            num_scalar_prefetch=0,
            grid=(N, n_row),
            in_specs=[
                # full image per batch element; constant block index along the
                # row axis -> fetched once per n, reused by every row tile.
                pl.BlockSpec((1, H, W, Cin), lambda n, i: (n, 0, 0, 0)),
                pl.BlockSpec((Cin, n_conv * Cout), lambda n, i: (0, 0)),
                pl.BlockSpec((n_off, Cin, Cout), lambda n, i: (0, 0, 0)),
                pl.BlockSpec((1, n_conv * Cout), lambda n, i: (0, 0)),
                pl.BlockSpec((Cin, Cout), lambda n, i: (0, 0)),
                pl.BlockSpec((1, Cout), lambda n, i: (0, 0)),
            ],
            out_specs=pl.BlockSpec((None, tile_h * W, Ctot),
                                   lambda n, i: (n, i, 0)),
            scratch_shapes=[
                pltpu.VMEM((Hp, Wp, Cin), x.dtype),     # per-batch padded image
                pltpu.VMEM((1, Cout), jnp.float32),     # image-pool activation
            ],
        ),
        compiler_params=pltpu.CompilerParams(
            # rows must stay sequential ("arbitrary"): the padded-image scratch
            # and the pooled activation are built at i == 0 and reused by the
            # later row tiles; cores split on the batch axis instead (avoids
            # duplicate whole-image DMA per core).
            dimension_semantics=("parallel", "arbitrary"),
            vmem_limit_bytes=48 * 1024 * 1024),
    )(x, w_center, w_off, bias_flat, wp, bp)
    return out_flat.reshape(N, H, W, Ctot)


# ----------------------------------------------------------------------------
# Parameter construction (deterministic, synthetic) and full ASPP forward
# ----------------------------------------------------------------------------
def make_convbnrelu_params(key, in_ch, out_ch, ksize):
    k1, k2, k3, k4, k5 = jax.random.split(key, 5)
    if ksize == 1:
        w = 0.1 * jax.random.normal(k1, (in_ch, out_ch), jnp.float32)
    else:
        w = 0.1 * jax.random.normal(k1, (ksize, ksize, in_ch, out_ch), jnp.float32)
    gamma = 1.0 + 0.1 * jax.random.normal(k2, (out_ch,), jnp.float32)
    beta = 0.1 * jax.random.normal(k3, (out_ch,), jnp.float32)
    running_mean = 0.1 * jax.random.normal(k4, (out_ch,), jnp.float32)
    running_var = jnp.abs(jax.random.normal(k5, (out_ch,), jnp.float32)) + 0.5
    eps = 1e-5
    scale = gamma / jnp.sqrt(running_var + eps)     # folded BN (inference)
    bias = beta - running_mean * scale
    return {'w': w, 'scale': scale, 'bias': bias}


def make_aspp_params(key, in_ch, out_ch, rates):
    keys = jax.random.split(key, 2 + len(rates))
    params = {'c0': make_convbnrelu_params(keys[0], in_ch, out_ch, 1)}
    for i, _ in enumerate(rates):
        params[f'c{i + 1}'] = make_convbnrelu_params(keys[1 + i], in_ch, out_ch, 3)
    params['imagepool'] = make_convbnrelu_params(keys[-1], in_ch, out_ch, 1)
    return params


def aspp_forward(x_nchw, params, rates):
    x = jnp.transpose(x_nchw, (0, 2, 3, 1))          # NCHW -> NHWC (boundary)
    N, H, W, Cin = x.shape
    Cout = params['c0']['w'].shape[-1]
    R = max(rates)
    n_conv = 1 + len(rates)
    tile_h = 8 if H % 8 == 0 else H                  # row tile (production: sweep larger)

    # Fold BN scale into conv weights.  Centre taps (1x1 + ky=kx=1 of every
    # dilated branch) are concatenated along Cout for the fused wide matmul;
    # the 8 off-centre taps per rate are stacked for per-tap matmuls.
    # TODO(synk): cast weights/inputs to bf16 at production channel counts.
    wc_list = [params['c0']['w'] * params['c0']['scale']]
    woff_list = []
    b_list = [params['c0']['bias']]
    off_taps = [(ky, kx) for ky in range(3) for kx in range(3)
                if not (ky == 1 and kx == 1)]
    for i, _ in enumerate(rates):
        p = params[f'c{i + 1}']
        wf = p['w'] * p['scale']                     # (3, 3, Cin, Cout)
        wc_list.append(wf[1, 1])
        for (ky, kx) in off_taps:
            woff_list.append(wf[ky, kx])
        b_list.append(p['bias'])
    w_center = jnp.concatenate(wc_list, axis=-1)             # (Cin, n_conv*Cout)
    w_off = jnp.stack(woff_list, axis=0)                     # (8*len(rates), Cin, Cout)
    bias_flat = jnp.concatenate(b_list, axis=0).reshape(1, n_conv * Cout)

    pp = params['imagepool']
    wp = pp['w'] * pp['scale']                               # (Cin, Cout)
    bp = pp['bias'].reshape(1, Cout)

    out_nhwc = aspp_fused(x, w_center, w_off, bias_flat, wp, bp,
                          rates=rates, R=R, Cout=Cout, tile_h=tile_h)
    return jnp.transpose(out_nhwc, (0, 3, 1, 2))     # NHWC -> NCHW (module contract)


# ----------------------------------------------------------------------------
# Pure-JAX reference (lax conv) for a correctness check
# ----------------------------------------------------------------------------
def aspp_reference(x_nchw, params, rates):
    x = jnp.transpose(x_nchw, (0, 2, 3, 1))
    N, H, W, Cin = x.shape
    dn = ('NHWC', 'HWIO', 'NHWC')
    outs = []
    p = params['c0']
    y = jax.lax.conv_general_dilated(x, p['w'].reshape(1, 1, Cin, -1),
                                     (1, 1), 'VALID', dimension_numbers=dn)
    outs.append(jnp.maximum(y * p['scale'] + p['bias'], 0.0))
    for i, rate in enumerate(rates):
        p = params[f'c{i + 1}']
        y = jax.lax.conv_general_dilated(x, p['w'], (1, 1),
                                         [(rate, rate), (rate, rate)],
                                         rhs_dilation=(rate, rate),
                                         dimension_numbers=dn)
        outs.append(jnp.maximum(y * p['scale'] + p['bias'], 0.0))
    p = params['imagepool']
    pooled = jnp.mean(x, axis=(1, 2)) @ p['w']
    pooled = jnp.maximum(pooled * p['scale'] + p['bias'], 0.0)
    outs.append(jnp.broadcast_to(pooled[:, None, None, :],
                                 (N, H, W, pooled.shape[-1])))
    return jnp.transpose(jnp.concatenate(outs, axis=-1), (0, 3, 1, 2))


if __name__ == "__main__":
    in_ch, out_ch = 4, 8
    rates = (2, 4, 6)
    N, H, W = 2, 16, 16

    key = jax.random.PRNGKey(0)
    kx_, kp = jax.random.split(key)
    x = jax.random.normal(kx_, (N, in_ch, H, W), jnp.float32)     # NCHW input
    params = make_aspp_params(kp, in_ch, out_ch, rates)

    out = jax.block_until_ready(aspp_forward(x, params, rates))
    assert out.shape == (N, out_ch * (2 + len(rates)), H, W), out.shape

    ref = jax.block_until_ready(aspp_reference(x, params, rates))
    assert jnp.allclose(out, ref, rtol=1e-3, atol=1e-3), \
        float(jnp.max(jnp.abs(out - ref)))

    print("KERNEL_OK")
</pallas_src>

<mosaic_0001>
module attributes {stable_mosaic.version = 11 : i64} {
  func.func @_aspp_fused_kernel(%arg0: i32, %arg1: i32, %arg2: memref<1x16x16x4xf32, #tpu.memory_space<vmem>>, %arg3: memref<4x32xf32, #tpu.memory_space<vmem>>, %arg4: memref<24x4x8xf32, #tpu.memory_space<vmem>>, %arg5: memref<1x32xf32, #tpu.memory_space<vmem>>, %arg6: memref<4x8xf32, #tpu.memory_space<vmem>>, %arg7: memref<1x8xf32, #tpu.memory_space<vmem>>, %arg8: memref<1x128x40xf32, #tpu.memory_space<vmem>>, %arg9: memref<28x28x4xf32, #tpu.memory_space<vmem>>, %arg10: memref<1x8xf32, #tpu.memory_space<vmem>>) attributes {dimension_semantics = [#tpu.dimension_semantics<parallel>, #tpu.dimension_semantics<arbitrary>], iteration_bounds = array<i64: 2, 2>, scalar_prefetch = 0 : i64, scratch_operands = 2 : i64, tpu.core_type = #tpu.core_type<tc>, window_params = [{transform_indices = @transform_0, window_bounds = array<i64: 1, 16, 16, 4>}, {pipeline_mode = #tpu.pipeline_mode<synchronous>, transform_indices = @transform_1, window_bounds = array<i64: 4, 32>}, {pipeline_mode = #tpu.pipeline_mode<synchronous>, transform_indices = @transform_2, window_bounds = array<i64: 24, 4, 8>}, {pipeline_mode = #tpu.pipeline_mode<synchronous>, transform_indices = @transform_3, window_bounds = array<i64: 1, 32>}, {pipeline_mode = #tpu.pipeline_mode<synchronous>, transform_indices = @transform_4, window_bounds = array<i64: 4, 8>}, {pipeline_mode = #tpu.pipeline_mode<synchronous>, transform_indices = @transform_5, window_bounds = array<i64: 1, 8>}, {transform_indices = @transform_6, window_bounds = array<i64: 1, 128, 40>}]} {
    %c0_i32 = arith.constant 0 : i32
    %0 = arith.cmpi eq, %arg1, %c0_i32 : i32
    %1 = arith.extui %0 : i1 to i32
    %c0_i32_0 = arith.constant 0 : i32
    %2 = arith.cmpi ne, %1, %c0_i32_0 : i32
    scf.if %2 {
      %cst_103 = arith.constant 0.000000e+00 : f32
      %192 = vector.broadcast %cst_103 : f32 to vector<28x28x4xf32>
      %c0_104 = arith.constant 0 : index
      %c0_105 = arith.constant 0 : index
      %c0_106 = arith.constant 0 : index
      %193 = vector.load %arg9[%c0_104, %c0_105, %c0_106] : memref<28x28x4xf32, #tpu.memory_space<vmem>>, vector<28x28x4xf32>
      tpu.vector_store %arg9[%c0_104, %c0_105, %c0_106], %192 {strides = array<i32>} : memref<28x28x4xf32, #tpu.memory_space<vmem>>, vector<28x28x4xf32>,
      %c0_107 = arith.constant 0 : index
      %c0_108 = arith.constant 0 : index
      %c0_109 = arith.constant 0 : index
      %c0_110 = arith.constant 0 : index
      %194 = vector.load %arg2[%c0_107, %c0_108, %c0_109, %c0_110] : memref<1x16x16x4xf32, #tpu.memory_space<vmem>>, vector<1x16x16x4xf32>
      %195 = vector.shape_cast %194 : vector<1x16x16x4xf32> to vector<16x16x4xf32>
      %c6_111 = arith.constant 6 : index
      %c6_112 = arith.constant 6 : index
      %c0_113 = arith.constant 0 : index
      %196 = vector.load %arg9[%c6_111, %c6_112, %c0_113] : memref<28x28x4xf32, #tpu.memory_space<vmem>>, vector<16x16x4xf32>
      tpu.vector_store %arg9[%c6_111, %c6_112, %c0_113], %195 {strides = array<i32>} : memref<28x28x4xf32, #tpu.memory_space<vmem>>, vector<16x16x4xf32>,
      %c0_114 = arith.constant 0 : index
      %c0_115 = arith.constant 0 : index
      %c0_116 = arith.constant 0 : index
      %c0_117 = arith.constant 0 : index
      %197 = vector.load %arg2[%c0_114, %c0_115, %c0_116, %c0_117] : memref<1x16x16x4xf32, #tpu.memory_space<vmem>>, vector<1x16x16x4xf32>
      %198 = vector.shape_cast %197 : vector<1x16x16x4xf32> to vector<16x16x4xf32>
      %199 = vector.shape_cast %198 : vector<16x16x4xf32> to vector<256x4xf32>
      %cst_118 = arith.constant dense<0.000000e+00> : vector<4xf32>
      %200 = vector.multi_reduction <add>, %199, %cst_118 [0] : vector<256x4xf32> to vector<4xf32>
      %201 = vector.shape_cast %200 : vector<4xf32> to vector<1x4xf32>
      %cst_119 = arith.constant 3.906250e-03 : f32
      %202 = vector.broadcast %cst_119 : f32 to vector<1x4xf32>
      %203 = arith.mulf %201, %202 : vector<1x4xf32>
      %c0_120 = arith.constant 0 : index
      %c0_121 = arith.constant 0 : index
      %204 = vector.load %arg6[%c0_120, %c0_121] : memref<4x8xf32, #tpu.memory_space<vmem>>, vector<4x8xf32>
      %cst_122 = arith.constant dense<0.000000e+00> : vector<1x8xf32>
      %205 = tpu.matmul %203, %204, %cst_122 {dimension_numbers = #tpu.dot_dimension_numbers<[1], [0], [0], [1], [0, 0, 1, 1], [], []>} : vector<1x4xf32>, vector<4x8xf32>, vector<1x8xf32> -> vector<1x8xf32>
      %c0_123 = arith.constant 0 : index
      %c0_124 = arith.constant 0 : index
      %206 = vector.load %arg7[%c0_123, %c0_124] : memref<1x8xf32, #tpu.memory_space<vmem>>, vector<1x8xf32>
      %207 = arith.addf %205, %206 : vector<1x8xf32>
      %cst_125 = arith.constant 0.000000e+00 : f32
      %208 = vector.broadcast %cst_125 : f32 to vector<1x8xf32>
      %209 = arith.maximumf %207, %208 : vector<1x8xf32>
      %c0_126 = arith.constant 0 : index
      %c0_127 = arith.constant 0 : index
      %210 = vector.load %arg10[%c0_126, %c0_127] : memref<1x8xf32, #tpu.memory_space<vmem>>, vector<1x8xf32>
      tpu.vector_store %arg10[%c0_126, %c0_127], %209 {strides = array<i32>} : memref<1x8xf32, #tpu.memory_space<vmem>>, vector<1x8xf32>,
    } else {
    }
    %c8_i32 = arith.constant 8 : i32
    %3 = arith.muli %arg1, %c8_i32 : i32
    %4 = tpu.assume_multiple %3, 8 : i32
    %c6_i32 = arith.constant 6 : i32
    %5 = arith.addi %4, %c6_i32 : i32
    %6 = arith.index_cast %5 : i32 to index
    %c0 = arith.constant 0 : index
    %c0_1 = arith.constant 0 : index
    %7 = vector.load %arg9[%6, %c0, %c0_1] : memref<28x28x4xf32, #tpu.memory_space<vmem>>, vector<8x28x4xf32>
    %8 = vector.extract_strided_slice %7 {offsets = [0, 6, 0], sizes = [8, 16, 4], strides = [1, 1, 1]} : vector<8x28x4xf32> to vector<8x16x4xf32>
    %9 = vector.shape_cast %8 : vector<8x16x4xf32> to vector<128x4xf32>
    %c0_2 = arith.constant 0 : index
    %c0_3 = arith.constant 0 : index
    %10 = vector.load %arg3[%c0_2, %c0_3] : memref<4x32xf32, #tpu.memory_space<vmem>>, vector<4x32xf32>
    %cst = arith.constant dense<0.000000e+00> : vector<128x32xf32>
    %11 = tpu.matmul %9, %10, %cst {dimension_numbers = #tpu.dot_dimension_numbers<[1], [0], [0], [1], [0, 0, 1, 1], [], []>} : vector<128x4xf32>, vector<4x32xf32>, vector<128x32xf32> -> vector<128x32xf32>
    %c0_4 = arith.constant 0 : index
    %c0_5 = arith.constant 0 : index
    %12 = vector.load %arg5[%c0_4, %c0_5] : memref<1x32xf32, #tpu.memory_space<vmem>>, vector<1x32xf32>
    %13 = vector.broadcast %12 : vector<1x32xf32> to vector<128x32xf32>
    %14 = arith.addf %11, %13 : vector<128x32xf32>
    %c4_i32 = arith.constant 4 : i32
    %15 = arith.addi %4, %c4_i32 : i32
    %16 = arith.index_cast %15 : i32 to index
    %c0_6 = arith.constant 0 : index
    %c0_7 = arith.constant 0 : index
    %17 = vector.load %arg9[%16, %c0_6, %c0_7] : memref<28x28x4xf32, #tpu.memory_space<vmem>>, vector<8x28x4xf32>
    %c8_i32_8 = arith.constant 8 : i32
    %18 = arith.addi %4, %c8_i32_8 : i32
    %19 = arith.index_cast %18 : i32 to index
    %c0_9 = arith.constant 0 : index
    %c0_10 = arith.constant 0 : index
    %20 = vector.load %arg9[%19, %c0_9, %c0_10] : memref<28x28x4xf32, #tpu.memory_space<vmem>>, vector<8x28x4xf32>
    %cst_11 = arith.constant 0.000000e+00 : f32
    %21 = vector.broadcast %cst_11 : f32 to vector<128x8xf32>
    %22 = vector.extract_strided_slice %17 {offsets = [0, 4, 0], sizes = [8, 16, 4], strides = [1, 1, 1]} : vector<8x28x4xf32> to vector<8x16x4xf32>
    %23 = vector.shape_cast %22 : vector<8x16x4xf32> to vector<128x4xf32>
    %c0_12 = arith.constant 0 : index
    %c0_13 = arith.constant 0 : index
    %c0_14 = arith.constant 0 : index
    %24 = vector.load %arg4[%c0_12, %c0_13, %c0_14] : memref<24x4x8xf32, #tpu.memory_space<vmem>>, vector<1x4x8xf32>
    %25 = vector.shape_cast %24 : vector<1x4x8xf32> to vector<4x8xf32>
    %cst_15 = arith.constant dense<0.000000e+00> : vector<128x8xf32>
    %26 = tpu.matmul %23, %25, %cst_15 {dimension_numbers = #tpu.dot_dimension_numbers<[1], [0], [0], [1], [0, 0, 1, 1], [], []>} : vector<128x4xf32>, vector<4x8xf32>, vector<128x8xf32> -> vector<128x8xf32>
    %27 = arith.addf %21, %26 : vector<128x8xf32>
    %28 = vector.extract_strided_slice %17 {offsets = [0, 6, 0], sizes = [8, 16, 4], strides = [1, 1, 1]} : vector<8x28x4xf32> to vector<8x16x4xf32>
    %29 = vector.shape_cast %28 : vector<8x16x4xf32> to vector<128x4xf32>
    %c1 = arith.constant 1 : index
    %c0_16 = arith.constant 0 : index
    %c0_17 = arith.constant 0 : index
    %30 = vector.load %arg4[%c1, %c0_16, %c0_17] : memref<24x4x8xf32, #tpu.memory_space<vmem>>, vector<1x4x8xf32>
    %31 = vector.shape_cast %30 : vector<1x4x8xf32> to vector<4x8xf32>
    %cst_18 = arith.constant dense<0.000000e+00> : vector<128x8xf32>
    %32 = tpu.matmul %29, %31, %cst_18 {dimension_numbers = #tpu.dot_dimension_numbers<[1], [0], [0], [1], [0, 0, 1, 1], [], []>} : vector<128x4xf32>, vector<4x8xf32>, vector<128x8xf32> -> vector<128x8xf32>
    %33 = arith.addf %27, %32 : vector<128x8xf32>
    %34 = vector.extract_strided_slice %17 {offsets = [0, 8, 0], sizes = [8, 16, 4], strides = [1, 1, 1]} : vector<8x28x4xf32> to vector<8x16x4xf32>
    %35 = vector.shape_cast %34 : vector<8x16x4xf32> to vector<128x4xf32>
    %c2 = arith.constant 2 : index
    %c0_19 = arith.constant 0 : index
    %c0_20 = arith.constant 0 : index
    %36 = vector.load %arg4[%c2, %c0_19, %c0_20] : memref<24x4x8xf32, #tpu.memory_space<vmem>>, vector<1x4x8xf32>
    %37 = vector.shape_cast %36 : vector<1x4x8xf32> to vector<4x8xf32>
    %cst_21 = arith.constant dense<0.000000e+00> : vector<128x8xf32>
    %38 = tpu.matmul %35, %37, %cst_21 {dimension_numbers = #tpu.dot_dimension_numbers<[1], [0], [0], [1], [0, 0, 1, 1], [], []>} : vector<128x4xf32>, vector<4x8xf32>, vector<128x8xf32> -> vector<128x8xf32>
    %39 = arith.addf %33, %38 : vector<128x8xf32>
    %40 = vector.extract_strided_slice %7 {offsets = [0, 4, 0], sizes = [8, 16, 4], strides = [1, 1, 1]} : vector<8x28x4xf32> to vector<8x16x4xf32>
    %41 = vector.shape_cast %40 : vector<8x16x4xf32> to vector<128x4xf32>
    %c3 = arith.constant 3 : index
    %c0_22 = arith.constant 0 : index
    %c0_23 = arith.constant 0 : index
    %42 = vector.load %arg4[%c3, %c0_22, %c0_23] : memref<24x4x8xf32, #tpu.memory_space<vmem>>, vector<1x4x8xf32>
    %43 = vector.shape_cast %42 : vector<1x4x8xf32> to vector<4x8xf32>
    %cst_24 = arith.constant dense<0.000000e+00> : vector<128x8xf32>
    %44 = tpu.matmul %41, %43, %cst_24 {dimension_numbers = #tpu.dot_dimension_numbers<[1], [0], [0], [1], [0, 0, 1, 1], [], []>} : vector<128x4xf32>, vector<4x8xf32>, vector<128x8xf32> -> vector<128x8xf32>
    %45 = arith.addf %39, %44 : vector<128x8xf32>
    %46 = vector.extract_strided_slice %7 {offsets = [0, 8, 0], sizes = [8, 16, 4], strides = [1, 1, 1]} : vector<8x28x4xf32> to vector<8x16x4xf32>
    %47 = vector.shape_cast %46 : vector<8x16x4xf32> to vector<128x4xf32>
    %c4 = arith.constant 4 : index
    %c0_25 = arith.constant 0 : index
    %c0_26 = arith.constant 0 : index
    %48 = vector.load %arg4[%c4, %c0_25, %c0_26] : memref<24x4x8xf32, #tpu.memory_space<vmem>>, vector<1x4x8xf32>
    %49 = vector.shape_cast %48 : vector<1x4x8xf32> to vector<4x8xf32>
    %cst_27 = arith.constant dense<0.000000e+00> : vector<128x8xf32>
    %50 = tpu.matmul %47, %49, %cst_27 {dimension_numbers = #tpu.dot_dimension_numbers<[1], [0], [0], [1], [0, 0, 1, 1], [], []>} : vector<128x4xf32>, vector<4x8xf32>, vector<128x8xf32> -> vector<128x8xf32>
    %51 = arith.addf %45, %50 : vector<128x8xf32>
    %52 = vector.extract_strided_slice %20 {offsets = [0, 4, 0], sizes = [8, 16, 4], strides = [1, 1, 1]} : vector<8x28x4xf32> to vector<8x16x4xf32>
    %53 = vector.shape_cast %52 : vector<8x16x4xf32> to vector<128x4xf32>
    %c5 = arith.constant 5 : index
    %c0_28 = arith.constant 0 : index
    %c0_29 = arith.constant 0 : index
    %54 = vector.load %arg4[%c5, %c0_28, %c0_29] : memref<24x4x8xf32, #tpu.memory_space<vmem>>, vector<1x4x8xf32>
    %55 = vector.shape_cast %54 : vector<1x4x8xf32> to vector<4x8xf32>
    %cst_30 = arith.constant dense<0.000000e+00> : vector<128x8xf32>
    %56 = tpu.matmul %53, %55, %cst_30 {dimension_numbers = #tpu.dot_dimension_numbers<[1], [0], [0], [1], [0, 0, 1, 1], [], []>} : vector<128x4xf32>, vector<4x8xf32>, vector<128x8xf32> -> vector<128x8xf32>
    %57 = arith.addf %51, %56 : vector<128x8xf32>
    %58 = vector.extract_strided_slice %20 {offsets = [0, 6, 0], sizes = [8, 16, 4], strides = [1, 1, 1]} : vector<8x28x4xf32> to vector<8x16x4xf32>
    %59 = vector.shape_cast %58 : vector<8x16x4xf32> to vector<128x4xf32>
    %c6 = arith.constant 6 : index
    %c0_31 = arith.constant 0 : index
    %c0_32 = arith.constant 0 : index
    %60 = vector.load %arg4[%c6, %c0_31, %c0_32] : memref<24x4x8xf32, #tpu.memory_space<vmem>>, vector<1x4x8xf32>
    %61 = vector.shape_cast %60 : vector<1x4x8xf32> to vector<4x8xf32>
    %cst_33 = arith.constant dense<0.000000e+00> : vector<128x8xf32>
    %62 = tpu.matmul %59, %61, %cst_33 {dimension_numbers = #tpu.dot_dimension_numbers<[1], [0], [0], [1], [0, 0, 1, 1], [], []>} : vector<128x4xf32>, vector<4x8xf32>, vector<128x8xf32> -> vector<128x8xf32>
    %63 = arith.addf %57, %62 : vector<128x8xf32>
    %64 = vector.extract_strided_slice %20 {offsets = [0, 8, 0], sizes = [8, 16, 4], strides = [1, 1, 1]} : vector<8x28x4xf32> to vector<8x16x4xf32>
    %65 = vector.shape_cast %64 : vector<8x16x4xf32> to vector<128x4xf32>
    %c7 = arith.constant 7 : index
    %c0_34 = arith.constant 0 : index
    %c0_35 = arith.constant 0 : index
    %66 = vector.load %arg4[%c7, %c0_34, %c0_35] : memref<24x4x8xf32, #tpu.memory_space<vmem>>, vector<1x4x8xf32>
    %67 = vector.shape_cast %66 : vector<1x4x8xf32> to vector<4x8xf32>
    %cst_36 = arith.constant dense<0.000000e+00> : vector<128x8xf32>
    %68 = tpu.matmul %65, %67, %cst_36 {dimension_numbers = #tpu.dot_dimension_numbers<[1], [0], [0], [1], [0, 0, 1, 1], [], []>} : vector<128x4xf32>, vector<4x8xf32>, vector<128x8xf32> -> vector<128x8xf32>
    %69 = arith.addf %63, %68 : vector<128x8xf32>
    %c2_i32 = arith.constant 2 : i32
    %70 = arith.addi %4, %c2_i32 : i32
    %71 = arith.index_cast %70 : i32 to index
    %c0_37 = arith.constant 0 : index
    %c0_38 = arith.constant 0 : index
    %72 = vector.load %arg9[%71, %c0_37, %c0_38] : memref<28x28x4xf32, #tpu.memory_space<vmem>>, vector<8x28x4xf32>
    %c10_i32 = arith.constant 10 : i32
    %73 = arith.addi %4, %c10_i32 : i32
    %74 = arith.index_cast %73 : i32 to index
    %c0_39 = arith.constant 0 : index
    %c0_40 = arith.constant 0 : index
    %75 = vector.load %arg9[%74, %c0_39, %c0_40] : memref<28x28x4xf32, #tpu.memory_space<vmem>>, vector<8x28x4xf32>
    %cst_41 = arith.constant 0.000000e+00 : f32
    %76 = vector.broadcast %cst_41 : f32 to vector<128x8xf32>
    %77 = vector.extract_strided_slice %72 {offsets = [0, 2, 0], sizes = [8, 16, 4], strides = [1, 1, 1]} : vector<8x28x4xf32> to vector<8x16x4xf32>
    %78 = vector.shape_cast %77 : vector<8x16x4xf32> to vector<128x4xf32>
    %c8 = arith.constant 8 : index
    %c0_42 = arith.constant 0 : index
    %c0_43 = arith.constant 0 : index
    %79 = vector.load %arg4[%c8, %c0_42, %c0_43] : memref<24x4x8xf32, #tpu.memory_space<vmem>>, vector<1x4x8xf32>
    %80 = vector.shape_cast %79 : vector<1x4x8xf32> to vector<4x8xf32>
    %cst_44 = arith.constant dense<0.000000e+00> : vector<128x8xf32>
    %81 = tpu.matmul %78, %80, %cst_44 {dimension_numbers = #tpu.dot_dimension_numbers<[1], [0], [0], [1], [0, 0, 1, 1], [], []>} : vector<128x4xf32>, vector<4x8xf32>, vector<128x8xf32> -> vector<128x8xf32>
    %82 = arith.addf %76, %81 : vector<128x8xf32>
    %83 = vector.extract_strided_slice %72 {offsets = [0, 6, 0], sizes = [8, 16, 4], strides = [1, 1, 1]} : vector<8x28x4xf32> to vector<8x16x4xf32>
    %84 = vector.shape_cast %83 : vector<8x16x4xf32> to vector<128x4xf32>
    %c9 = arith.constant 9 : index
    %c0_45 = arith.constant 0 : index
    %c0_46 = arith.constant 0 : index
    %85 = vector.load %arg4[%c9, %c0_45, %c0_46] : memref<24x4x8xf32, #tpu.memory_space<vmem>>, vector<1x4x8xf32>
    %86 = vector.shape_cast %85 : vector<1x4x8xf32> to vector<4x8xf32>
    %cst_47 = arith.constant dense<0.000000e+00> : vector<128x8xf32>
    %87 = tpu.matmul %84, %86, %cst_47 {dimension_numbers = #tpu.dot_dimension_numbers<[1], [0], [0], [1], [0, 0, 1, 1], [], []>} : vector<128x4xf32>, vector<4x8xf32>, vector<128x8xf32> -> vector<128x8xf32>
    %88 = arith.addf %82, %87 : vector<128x8xf32>
    %89 = vector.extract_strided_slice %72 {offsets = [0, 10, 0], sizes = [8, 16, 4], strides = [1, 1, 1]} : vector<8x28x4xf32> to vector<8x16x4xf32>
    %90 = vector.shape_cast %89 : vector<8x16x4xf32> to vector<128x4xf32>
    %c10 = arith.constant 10 : index
    %c0_48 = arith.constant 0 : index
    %c0_49 = arith.constant 0 : index
    %91 = vector.load %arg4[%c10, %c0_48, %c0_49] : memref<24x4x8xf32, #tpu.memory_space<vmem>>, vector<1x4x8xf32>
    %92 = vector.shape_cast %91 : vector<1x4x8xf32> to vector<4x8xf32>
    %cst_50 = arith.constant dense<0.000000e+00> : vector<128x8xf32>
    %93 = tpu.matmul %90, %92, %cst_50 {dimension_numbers = #tpu.dot_dimension_numbers<[1], [0], [0], [1], [0, 0, 1, 1], [], []>} : vector<128x4xf32>, vector<4x8xf32>, vector<128x8xf32> -> vector<128x8xf32>
    %94 = arith.addf %88, %93 : vector<128x8xf32>
    %95 = vector.extract_strided_slice %7 {offsets = [0, 2, 0], sizes = [8, 16, 4], strides = [1, 1, 1]} : vector<8x28x4xf32> to vector<8x16x4xf32>
    %96 = vector.shape_cast %95 : vector<8x16x4xf32> to vector<128x4xf32>
    %c11 = arith.constant 11 : index
    %c0_51 = arith.constant 0 : index
    %c0_52 = arith.constant 0 : index
    %97 = vector.load %arg4[%c11, %c0_51, %c0_52] : memref<24x4x8xf32, #tpu.memory_space<vmem>>, vector<1x4x8xf32>
    %98 = vector.shape_cast %97 : vector<1x4x8xf32> to vector<4x8xf32>
    %cst_53 = arith.constant dense<0.000000e+00> : vector<128x8xf32>
    %99 = tpu.matmul %96, %98, %cst_53 {dimension_numbers = #tpu.dot_dimension_numbers<[1], [0], [0], [1], [0, 0, 1, 1], [], []>} : vector<128x4xf32>, vector<4x8xf32>, vector<128x8xf32> -> vector<128x8xf32>
    %100 = arith.addf %94, %99 : vector<128x8xf32>
    %101 = vector.extract_strided_slice %7 {offsets = [0, 10, 0], sizes = [8, 16, 4], strides = [1, 1, 1]} : vector<8x28x4xf32> to vector<8x16x4xf32>
    %102 = vector.shape_cast %101 : vector<8x16x4xf32> to vector<128x4xf32>
    %c12 = arith.constant 12 : index
    %c0_54 = arith.constant 0 : index
    %c0_55 = arith.constant 0 : index
    %103 = vector.load %arg4[%c12, %c0_54, %c0_55] : memref<24x4x8xf32, #tpu.memory_space<vmem>>, vector<1x4x8xf32>
    %104 = vector.shape_cast %103 : vector<1x4x8xf32> to vector<4x8xf32>
    %cst_56 = arith.constant dense<0.000000e+00> : vector<128x8xf32>
    %105 = tpu.matmul %102, %104, %cst_56 {dimension_numbers = #tpu.dot_dimension_numbers<[1], [0], [0], [1], [0, 0, 1, 1], [], []>} : vector<128x4xf32>, vector<4x8xf32>, vector<128x8xf32> -> vector<128x8xf32>
    %106 = arith.addf %100, %105 : vector<128x8xf32>
    %107 = vector.extract_strided_slice %75 {offsets = [0, 2, 0], sizes = [8, 16, 4], strides = [1, 1, 1]} : vector<8x28x4xf32> to vector<8x16x4xf32>
    %108 = vector.shape_cast %107 : vector<8x16x4xf32> to vector<128x4xf32>
    %c13 = arith.constant 13 : index
    %c0_57 = arith.constant 0 : index
    %c0_58 = arith.constant 0 : index
    %109 = vector.load %arg4[%c13, %c0_57, %c0_58] : memref<24x4x8xf32, #tpu.memory_space<vmem>>, vector<1x4x8xf32>
    %110 = vector.shape_cast %109 : vector<1x4x8xf32> to vector<4x8xf32>
    %cst_59 = arith.constant dense<0.000000e+00> : vector<128x8xf32>
    %111 = tpu.matmul %108, %110, %cst_59 {dimension_numbers = #tpu.dot_dimension_numbers<[1], [0], [0], [1], [0, 0, 1, 1], [], []>} : vector<128x4xf32>, vector<4x8xf32>, vector<128x8xf32> -> vector<128x8xf32>
    %112 = arith.addf %106, %111 : vector<128x8xf32>
    %113 = vector.extract_strided_slice %75 {offsets = [0, 6, 0], sizes = [8, 16, 4], strides = [1, 1, 1]} : vector<8x28x4xf32> to vector<8x16x4xf32>
    %114 = vector.shape_cast %113 : vector<8x16x4xf32> to vector<128x4xf32>
    %c14 = arith.constant 14 : index
    %c0_60 = arith.constant 0 : index
    %c0_61 = arith.constant 0 : index
    %115 = vector.load %arg4[%c14, %c0_60, %c0_61] : memref<24x4x8xf32, #tpu.memory_space<vmem>>, vector<1x4x8xf32>
    %116 = vector.shape_cast %115 : vector<1x4x8xf32> to vector<4x8xf32>
    %cst_62 = arith.constant dense<0.000000e+00> : vector<128x8xf32>
    %117 = tpu.matmul %114, %116, %cst_62 {dimension_numbers = #tpu.dot_dimension_numbers<[1], [0], [0], [1], [0, 0, 1, 1], [], []>} : vector<128x4xf32>, vector<4x8xf32>, vector<128x8xf32> -> vector<128x8xf32>
    %118 = arith.addf %112, %117 : vector<128x8xf32>
    %119 = vector.extract_strided_slice %75 {offsets = [0, 10, 0], sizes = [8, 16, 4], strides = [1, 1, 1]} : vector<8x28x4xf32> to vector<8x16x4xf32>
    %120 = vector.shape_cast %119 : vector<8x16x4xf32> to vector<128x4xf32>
    %c15 = arith.constant 15 : index
    %c0_63 = arith.constant 0 : index
    %c0_64 = arith.constant 0 : index
    %121 = vector.load %arg4[%c15, %c0_63, %c0_64] : memref<24x4x8xf32, #tpu.memory_space<vmem>>, vector<1x4x8xf32>
    %122 = vector.shape_cast %121 : vector<1x4x8xf32> to vector<4x8xf32>
    %cst_65 = arith.constant dense<0.000000e+00> : vector<128x8xf32>
    %123 = tpu.matmul %120, %122, %cst_65 {dimension_numbers = #tpu.dot_dimension_numbers<[1], [0], [0], [1], [0, 0, 1, 1], [], []>} : vector<128x4xf32>, vector<4x8xf32>, vector<128x8xf32> -> vector<128x8xf32>
    %124 = arith.addf %118, %123 : vector<128x8xf32>
    %c0_i32_66 = arith.constant 0 : i32
    %125 = arith.addi %4, %c0_i32_66 : i32
    %126 = arith.index_cast %125 : i32 to index
    %c0_67 = arith.constant 0 : index
    %c0_68 = arith.constant 0 : index
    %127 = vector.load %arg9[%126, %c0_67, %c0_68] : memref<28x28x4xf32, #tpu.memory_space<vmem>>, vector<8x28x4xf32>
    %c12_i32 = arith.constant 12 : i32
    %128 = arith.addi %4, %c12_i32 : i32
    %129 = arith.index_cast %128 : i32 to index
    %c0_69 = arith.constant 0 : index
    %c0_70 = arith.constant 0 : index
    %130 = vector.load %arg9[%129, %c0_69, %c0_70] : memref<28x28x4xf32, #tpu.memory_space<vmem>>, vector<8x28x4xf32>
    %cst_71 = arith.constant 0.000000e+00 : f32
    %131 = vector.broadcast %cst_71 : f32 to vector<128x8xf32>
    %132 = vector.extract_strided_slice %127 {offsets = [0, 0, 0], sizes = [8, 16, 4], strides = [1, 1, 1]} : vector<8x28x4xf32> to vector<8x16x4xf32>
    %133 = vector.shape_cast %132 : vector<8x16x4xf32> to vector<128x4xf32>
    %c16 = arith.constant 16 : index
    %c0_72 = arith.constant 0 : index
    %c0_73 = arith.constant 0 : index
    %134 = vector.load %arg4[%c16, %c0_72, %c0_73] : memref<24x4x8xf32, #tpu.memory_space<vmem>>, vector<1x4x8xf32>
    %135 = vector.shape_cast %134 : vector<1x4x8xf32> to vector<4x8xf32>
    %cst_74 = arith.constant dense<0.000000e+00> : vector<128x8xf32>
    %136 = tpu.matmul %133, %135, %cst_74 {dimension_numbers = #tpu.dot_dimension_numbers<[1], [0], [0], [1], [0, 0, 1, 1], [], []>} : vector<128x4xf32>, vector<4x8xf32>, vector<128x8xf32> -> vector<128x8xf32>
    %137 = arith.addf %131, %136 : vector<128x8xf32>
    %138 = vector.extract_strided_slice %127 {offsets = [0, 6, 0], sizes = [8, 16, 4], strides = [1, 1, 1]} : vector<8x28x4xf32> to vector<8x16x4xf32>
    %139 = vector.shape_cast %138 : vector<8x16x4xf32> to vector<128x4xf32>
    %c17 = arith.constant 17 : index
    %c0_75 = arith.constant 0 : index
    %c0_76 = arith.constant 0 : index
    %140 = vector.load %arg4[%c17, %c0_75, %c0_76] : memref<24x4x8xf32, #tpu.memory_space<vmem>>, vector<1x4x8xf32>
    %141 = vector.shape_cast %140 : vector<1x4x8xf32> to vector<4x8xf32>
    %cst_77 = arith.constant dense<0.000000e+00> : vector<128x8xf32>
    %142 = tpu.matmul %139, %141, %cst_77 {dimension_numbers = #tpu.dot_dimension_numbers<[1], [0], [0], [1], [0, 0, 1, 1], [], []>} : vector<128x4xf32>, vector<4x8xf32>, vector<128x8xf32> -> vector<128x8xf32>
    %143 = arith.addf %137, %142 : vector<128x8xf32>
    %144 = vector.extract_strided_slice %127 {offsets = [0, 12, 0], sizes = [8, 16, 4], strides = [1, 1, 1]} : vector<8x28x4xf32> to vector<8x16x4xf32>
    %145 = vector.shape_cast %144 : vector<8x16x4xf32> to vector<128x4xf32>
    %c18 = arith.constant 18 : index
    %c0_78 = arith.constant 0 : index
    %c0_79 = arith.constant 0 : index
    %146 = vector.load %arg4[%c18, %c0_78, %c0_79] : memref<24x4x8xf32, #tpu.memory_space<vmem>>, vector<1x4x8xf32>
    %147 = vector.shape_cast %146 : vector<1x4x8xf32> to vector<4x8xf32>
    %cst_80 = arith.constant dense<0.000000e+00> : vector<128x8xf32>
    %148 = tpu.matmul %145, %147, %cst_80 {dimension_numbers = #tpu.dot_dimension_numbers<[1], [0], [0], [1], [0, 0, 1, 1], [], []>} : vector<128x4xf32>, vector<4x8xf32>, vector<128x8xf32> -> vector<128x8xf32>
    %149 = arith.addf %143, %148 : vector<128x8xf32>
    %150 = vector.extract_strided_slice %7 {offsets = [0, 0, 0], sizes = [8, 16, 4], strides = [1, 1, 1]} : vector<8x28x4xf32> to vector<8x16x4xf32>
    %151 = vector.shape_cast %150 : vector<8x16x4xf32> to vector<128x4xf32>
    %c19 = arith.constant 19 : index
    %c0_81 = arith.constant 0 : index
    %c0_82 = arith.constant 0 : index
    %152 = vector.load %arg4[%c19, %c0_81, %c0_82] : memref<24x4x8xf32, #tpu.memory_space<vmem>>, vector<1x4x8xf32>
    %153 = vector.shape_cast %152 : vector<1x4x8xf32> to vector<4x8xf32>
    %cst_83 = arith.constant dense<0.000000e+00> : vector<128x8xf32>
    %154 = tpu.matmul %151, %153, %cst_83 {dimension_numbers = #tpu.dot_dimension_numbers<[1], [0], [0], [1], [0, 0, 1, 1], [], []>} : vector<128x4xf32>, vector<4x8xf32>, vector<128x8xf32> -> vector<128x8xf32>
    %155 = arith.addf %149, %154 : vector<128x8xf32>
    %156 = vector.extract_strided_slice %7 {offsets = [0, 12, 0], sizes = [8, 16, 4], strides = [1, 1, 1]} : vector<8x28x4xf32> to vector<8x16x4xf32>
    %157 = vector.shape_cast %156 : vector<8x16x4xf32> to vector<128x4xf32>
    %c20 = arith.constant 20 : index
    %c0_84 = arith.constant 0 : index
    %c0_85 = arith.constant 0 : index
    %158 = vector.load %arg4[%c20, %c0_84, %c0_85] : memref<24x4x8xf32, #tpu.memory_space<vmem>>, vector<1x4x8xf32>
    %159 = vector.shape_cast %158 : vector<1x4x8xf32> to vector<4x8xf32>
    %cst_86 = arith.constant dense<0.000000e+00> : vector<128x8xf32>
    %160 = tpu.matmul %157, %159, %cst_86 {dimension_numbers = #tpu.dot_dimension_numbers<[1], [0], [0], [1], [0, 0, 1, 1], [], []>} : vector<128x4xf32>, vector<4x8xf32>, vector<128x8xf32> -> vector<128x8xf32>
    %161 = arith.addf %155, %160 : vector<128x8xf32>
    %162 = vector.extract_strided_slice %130 {offsets = [0, 0, 0], sizes = [8, 16, 4], strides = [1, 1, 1]} : vector<8x28x4xf32> to vector<8x16x4xf32>
    %163 = vector.shape_cast %162 : vector<8x16x4xf32> to vector<128x4xf32>
    %c21 = arith.constant 21 : index
    %c0_87 = arith.constant 0 : index
    %c0_88 = arith.constant 0 : index
    %164 = vector.load %arg4[%c21, %c0_87, %c0_88] : memref<24x4x8xf32, #tpu.memory_space<vmem>>, vector<1x4x8xf32>
    %165 = vector.shape_cast %164 : vector<1x4x8xf32> to vector<4x8xf32>
    %cst_89 = arith.constant dense<0.000000e+00> : vector<128x8xf32>
    %166 = tpu.matmul %163, %165, %cst_89 {dimension_numbers = #tpu.dot_dimension_numbers<[1], [0], [0], [1], [0, 0, 1, 1], [], []>} : vector<128x4xf32>, vector<4x8xf32>, vector<128x8xf32> -> vector<128x8xf32>
    %167 = arith.addf %161, %166 : vector<128x8xf32>
    %168 = vector.extract_strided_slice %130 {offsets = [0, 6, 0], sizes = [8, 16, 4], strides = [1, 1, 1]} : vector<8x28x4xf32> to vector<8x16x4xf32>
    %169 = vector.shape_cast %168 : vector<8x16x4xf32> to vector<128x4xf32>
    %c22 = arith.constant 22 : index
    %c0_90 = arith.constant 0 : index
    %c0_91 = arith.constant 0 : index
    %170 = vector.load %arg4[%c22, %c0_90, %c0_91] : memref<24x4x8xf32, #tpu.memory_space<vmem>>, vector<1x4x8xf32>
    %171 = vector.shape_cast %170 : vector<1x4x8xf32> to vector<4x8xf32>
    %cst_92 = arith.constant dense<0.000000e+00> : vector<128x8xf32>
    %172 = tpu.matmul %169, %171, %cst_92 {dimension_numbers = #tpu.dot_dimension_numbers<[1], [0], [0], [1], [0, 0, 1, 1], [], []>} : vector<128x4xf32>, vector<4x8xf32>, vector<128x8xf32> -> vector<128x8xf32>
    %173 = arith.addf %167, %172 : vector<128x8xf32>
    %174 = vector.extract_strided_slice %130 {offsets = [0, 12, 0], sizes = [8, 16, 4], strides = [1, 1, 1]} : vector<8x28x4xf32> to vector<8x16x4xf32>
    %175 = vector.shape_cast %174 : vector<8x16x4xf32> to vector<128x4xf32>
    %c23 = arith.constant 23 : index
    %c0_93 = arith.constant 0 : index
    %c0_94 = arith.constant 0 : index
    %176 = vector.load %arg4[%c23, %c0_93, %c0_94] : memref<24x4x8xf32, #tpu.memory_space<vmem>>, vector<1x4x8xf32>
    %177 = vector.shape_cast %176 : vector<1x4x8xf32> to vector<4x8xf32>
    %cst_95 = arith.constant dense<0.000000e+00> : vector<128x8xf32>
    %178 = tpu.matmul %175, %177, %cst_95 {dimension_numbers = #tpu.dot_dimension_numbers<[1], [0], [0], [1], [0, 0, 1, 1], [], []>} : vector<128x4xf32>, vector<4x8xf32>, vector<128x8xf32> -> vector<128x8xf32>
    %179 = arith.addf %173, %178 : vector<128x8xf32>
    %cst_96 = arith.constant 0.000000e+00 : f32
    %180 = vector.broadcast %cst_96 : f32 to vector<128x8xf32>
    %181 = tpu.concatenate %180, %69, %124, %179 in 1 : vector<128x8xf32>, vector<128x8xf32>, vector<128x8xf32>, vector<128x8xf32> -> vector<128x32xf32>
    %182 = arith.addf %14, %181 : vector<128x32xf32>
    %cst_97 = arith.constant 0.000000e+00 : f32
    %183 = vector.broadcast %cst_97 : f32 to vector<128x32xf32>
    %184 = arith.maximumf %182, %183 : vector<128x32xf32>
    %c0_98 = arith.constant 0 : index
    %c0_99 = arith.constant 0 : index
    %185 = vector.load %arg10[%c0_98, %c0_99] : memref<1x8xf32, #tpu.memory_space<vmem>>, vector<1x8xf32>
    %186 = vector.shape_cast %185 : vector<1x8xf32> to vector<1x8xf32>
    %187 = vector.broadcast %186 : vector<1x8xf32> to vector<128x8xf32>
    %188 = tpu.concatenate %184, %187 in 1 : vector<128x32xf32>, vector<128x8xf32> -> vector<128x40xf32>
    %c0_100 = arith.constant 0 : index
    %c0_101 = arith.constant 0 : index
    %c0_102 = arith.constant 0 : index
    %189 = vector.load %arg8[%c0_100, %c0_101, %c0_102] : memref<1x128x40xf32, #tpu.memory_space<vmem>>, vector<1x128x40xf32>
    %190 = vector.shape_cast %189 : vector<1x128x40xf32> to vector<128x40xf32>
    %191 = vector.shape_cast %188 : vector<128x40xf32> to vector<1x128x40xf32>
    tpu.vector_store %arg8[%c0_100, %c0_101, %c0_102], %191 {strides = array<i32>} : memref<1x128x40xf32, #tpu.memory_space<vmem>>, vector<1x128x40xf32>,
    return
  }
  func.func @transform_0(%arg0: i32, %arg1: i32) -> (i32, i32, i32, i32) {
    %c0_i32 = arith.constant 0 : i32
    %c0_i32_0 = arith.constant 0 : i32
    %c0_i32_1 = arith.constant 0 : i32
    %c0_i32_2 = arith.constant 0 : i32
    return %arg0, %c0_i32, %c0_i32_0, %c0_i32_1 : i32, i32, i32, i32
  }
  func.func @transform_1(%arg0: i32, %arg1: i32) -> (i32, i32) {
    %c0_i32 = arith.constant 0 : i32
    %c0_i32_0 = arith.constant 0 : i32
    %c0_i32_1 = arith.constant 0 : i32
    return %c0_i32, %c0_i32_0 : i32, i32
  }
  func.func @transform_2(%arg0: i32, %arg1: i32) -> (i32, i32, i32) {
    %c0_i32 = arith.constant 0 : i32
    %c0_i32_0 = arith.constant 0 : i32
    %c0_i32_1 = arith.constant 0 : i32
    %c0_i32_2 = arith.constant 0 : i32
    return %c0_i32, %c0_i32_0, %c0_i32_1 : i32, i32, i32
  }
  func.func @transform_3(%arg0: i32, %arg1: i32) -> (i32, i32) {
    %c0_i32 = arith.constant 0 : i32
    %c0_i32_0 = arith.constant 0 : i32
    %c0_i32_1 = arith.constant 0 : i32
    return %c0_i32, %c0_i32_0 : i32, i32
  }
  func.func @transform_4(%arg0: i32, %arg1: i32) -> (i32, i32) {
    %c0_i32 = arith.constant 0 : i32
    %c0_i32_0 = arith.constant 0 : i32
    %c0_i32_1 = arith.constant 0 : i32
    return %c0_i32, %c0_i32_0 : i32, i32
  }
  func.func @transform_5(%arg0: i32, %arg1: i32) -> (i32, i32) {
    %c0_i32 = arith.constant 0 : i32
    %c0_i32_0 = arith.constant 0 : i32
    %c0_i32_1 = arith.constant 0 : i32
    return %c0_i32, %c0_i32_0 : i32, i32
  }
  func.func @transform_6(%arg0: i32, %arg1: i32) -> (i32, i32, i32) {
    %c0_i32 = arith.constant 0 : i32
    %c0_i32_0 = arith.constant 0 : i32
    return %arg0, %arg1, %c0_i32 : i32, i32, i32
  }
}

</mosaic_0001>

<bundles_post_ra>
// kernel: tpu_custom_call.1
= control target key start
LH: loop header
LB: loop body
LE: loop exit
PB: predicated region body
PF: predicated region fallthrough
CT: control target
= control target key end

     0   :  { %s9172_s21 = smov 0   ;;  %s9174_s22 = smov 0   ;;  %s11807_s0 = inlined_call_operand.vmem [shape: f32[2,16,16,4], index: 0, kind: input, shape index: {}]   ;;  %s11808_s1 = inlined_call_operand.vmem [shape: f32[4,32], index: 1, kind: input, shape index: {}]   ;;  %s11809_s2 = inlined_call_operand.vmem [shape: f32[24,4,8], index: 2, kind: input, shape index: {}]   ;;  %s11810_s3 = inlined_call_operand.vmem [shape: f32[1,32], index: 3, kind: input, shape index: {}]   ;;  %s11811_s4 = inlined_call_operand.vmem [shape: f32[4,8], index: 4, kind: input, shape index: {}]   ;;  %s11812_s5 = inlined_call_operand.vmem [shape: f32[1,8], index: 5, kind: input, shape index: {}]   ;;  %s11813_s6 = inlined_call_operand.vmem [shape: f32[2,256,40], index: 6, kind: output, shape index: {}]  }
   0x1   :  { %s9176_s23 = smov 0   ;;  %s9178_s24 = smov 0  }
   0x2   :  { %s9180_s25 = smov 0  }
   0x3 LB: > { %s25_s26 = sadd.s32 1, %s9121_s23  ;;  %s28_s27 = sadd.s32 1, %s9125_s24  ;;  %s9129_s25 = sphi %s9180_s25, %s16_s25   ;;  %s9125_s24 = sphi %s9178_s24, %s11925_s24   ;;  %s9121_s23 = sphi %s9176_s23, %s11924_s23   ;;  %s9117_s22 = sphi %s9174_s22, %s11923_s22   ;;  %s9113_s21 = sphi %s9172_s21, %s11922_s21  }
   0x4   : > { %p26_p0 = scmp.ge.s32.totalorder %s25_s26, 2  ;;  %p6942_p1 = scmp.ge.s32.totalorder %s9129_s25, 1 }
   0x5   : > { %p226_p2 = scmp.lt.s32.totalorder %s9129_s25, 5 }
   0x6   : > { %s11927_s26 = smov (%p26_p0, %s25_s26), 0  ;;  %s11929_s27 = smov (!%p26_p0, %s28_s27), %s9125_s24 }
   0x7   : > { %p227_p3 = pnand %p6942_p1, %p226_p2  ;;  %p30_p4 = scmp.ge.s32.totalorder %s11929_s27, 2 }
   0x9   : > { %s11931_s27 = smov (%p30_p4, %s11929_s27), 0  ;;  %230 = sbr.rel (%p227_p3) target bundleno = 1123 (0x463), region = 44 }
  0x10   : > { %p260_p5 = scmp.lt.s32.totalorder %s9117_s22, 1  ;;  %s6945_s28 = sshll.u32 %s9113_s21, 4 }
  0x11   : > { %p268_p6 = scmp.lt.s32.totalorder %s6945_s28, 31  ;;  %p6948_p7 = scmp.ne.s32.totalorder %s9113_s21, 0 }
  0x12   : > { %s11933_s22 = smov (!%p260_p5, %s9117_s22), 1  ;;  %vm279_vm0 = vcmask (!%p6948_p7), 31744   ;;  %vm283_vm1 = vcmask (!%p6948_p7), 27648   ;;  %v9131_v3 = vmov (!%p6948_p7), 0.0   ;;  %vm9132_vm2 = vmmov (!%p6948_p7), 0  }
  0x13   : > { %s11935_s28 = smov (!%p268_p6, %s6945_s28), 31  ;;  %s7593_s29 = sshll.u32 %s11933_s22, 8  ;;  %280 = vst.msk [vmem:[#allocation2] sm:$0xff] (!%p6948_p7), %vm279_vm0, %v9131_v3  ;;  %281 = vst.msk [vmem:[#allocation2 + $0x8] sm:$0xff] (!%p6948_p7), %vm279_vm0, %v9131_v3  ;;  %8028 = vmatprep.subr.mxu0 (!%p6948_p7), %v9131_v3  ;;  %8030 = vmatprep.mubr.msk.f32.mxu0 (!%p6948_p7), %vm9132_vm2, %v9131_v3  ;;  %vm565_vm3 = vcmask (!%p6948_p7), 1043456   ;;  %vm640_vm4 = vcmask (!%p6948_p7), 57344  }
  0x14   : > { %s6946_s30 = sshll.u32 %s11933_s22, 5  ;;  %s9208_s9 = scalar_lea.vmem %s11807_s0, %s7593_s29  ;;  %282 = vst.msk [vmem:[#allocation2 + $0x10] sm:$0xff] (!%p6948_p7), %vm279_vm0, %v9131_v3  ;;  %285 = vst.msk [vmem:[#allocation2 + $0x20] sm:$0xff] (!%p6948_p7), %vm279_vm0, %v9131_v3  ;;  %v560_v43 = vld [vmem:[%s11811_s4] sm:$0xf] (!%p6948_p7) }
  0x15   : > { %s271_s10 = sadd.s32 %s6946_s30, %s11935_s28  ;;  %278 = sbr.rel (%p6948_p7) target bundleno = 341 (0x155), region = 48  ;;  %v9217_v0 = vld [vmem:[%s9208_s9] sm:$0xff] (!%p6948_p7)  ;;  %v9220_v1 = vld [vmem:[%s9208_s9 + $0x8] sm:$0xff] (!%p6948_p7)  ;;  %v9223_v2 = vld [vmem:[%s9208_s9 + $0x10] sm:$0xff] (!%p6948_p7)  ;;  %284 = vst.msk [vmem:[#allocation2 + $0x18] sm:$0xf] (!%p6948_p7), %vm283_vm1, %v9131_v3  ;;  %8029 = vmatpush3.msk.msra.mxu0 (!%p6948_p7), %vm565_vm3, %v560_v43 }
  0x16   : > { %s6947_s11 = sshll.u32 %s271_s10, 3  ;;  %286 = vst.msk [vmem:[#allocation2 + $0x28] sm:$0xff] (!%p6948_p7), %vm279_vm0, %v9131_v3  ;;  %287 = vst.msk [vmem:[#allocation2 + $0x30] sm:$0xff] (!%p6948_p7), %vm279_vm0, %v9131_v3  ;;  %v396_v4 = vld [vmem:[%s9208_s9 + $0x18] sm:$0xff] (!%p6948_p7)  ;;  %v397_v5 = vld [vmem:[%s9208_s9 + $0x20] sm:$0xff] (!%p6948_p7)  ;;  %v490_v7 = vsel (!%p6948_p7), %vm279_vm0, %v9217_v0, 0.0 }
  0x17   : > { %s9213_s14 = scalar_lea.vmem %s11813_s6, %s6947_s11  ;;  %288 = vst.msk [vmem:[#allocation2 + $0x38] sm:$0xf] (!%p6948_p7), %vm283_vm1, %v9131_v3  ;;  %292 = vst.msk [vmem:[#allocation2 + $0x58] sm:$0xf] (!%p6948_p7), %vm283_vm1, %v9131_v3  ;;  %v398_v6 = vld [vmem:[%s9208_s9 + $0x28] sm:$0xff] (!%p6948_p7)  ;;  %v9456_v8 = vld [vmem:[%s9208_s9 + $0x30] sm:$0xff] (!%p6948_p7) }
  0x18   : > { %289 = vst.msk [vmem:[#allocation2 + $0x40] sm:$0xff] (!%p6948_p7), %vm279_vm0, %v9131_v3  ;;  %290 = vst.msk [vmem:[#allocation2 + $0x48] sm:$0xff] (!%p6948_p7), %vm279_vm0, %v9131_v3  ;;  %v9459_v9 = vld [vmem:[%s9208_s9 + $0x38] sm:$0xff] (!%p6948_p7)  ;;  %v9462_v10 = vld [vmem:[%s9208_s9 + $0x40] sm:$0xff] (!%p6948_p7)  ;;  %v491_v11 = vsel (!%p6948_p7), %vm279_vm0, %v9220_v1, 0.0  ;;  %v493_v12 = vsel (!%p6948_p7), %vm279_vm0, %v9223_v2, 0.0 }
  0x19   : > { %291 = vst.msk [vmem:[#allocation2 + $0x50] sm:$0xff] (!%p6948_p7), %vm279_vm0, %v9131_v3  ;;  %293 = vst.msk [vmem:[#allocation2 + $0x60] sm:$0xff] (!%p6948_p7), %vm279_vm0, %v9131_v3  ;;  %v9479_v13 = vld [vmem:[%s9208_s9 + $0x48] sm:$0xff] (!%p6948_p7)  ;;  %v9482_v14 = vld [vmem:[%s9208_s9 + $0x50] sm:$0xff] (!%p6948_p7)  ;;  %v492_v16 = vadd.f32 (!%p6948_p7), %v491_v11, %v490_v7  ;;  %v495_v20 = vsel (!%p6948_p7), %vm279_vm0, %v396_v4, 0.0  ;;  %v497_v28 = vsel (!%p6948_p7), %vm279_vm0, %v397_v5, 0.0 }
  0x1a   : > { %294 = vst.msk [vmem:[#allocation2 + $0x68] sm:$0xff] (!%p6948_p7), %vm279_vm0, %v9131_v3  ;;  %295 = vst.msk [vmem:[#allocation2 + $0x70] sm:$0xff] (!%p6948_p7), %vm279_vm0, %v9131_v3  ;;  %v9485_v15 = vld [vmem:[%s9208_s9 + $0x58] sm:$0xff] (!%p6948_p7)  ;;  %v9494_v17 = vld [vmem:[%s9208_s9 + $0x60] sm:$0xff] (!%p6948_p7)  ;;  %v499_v36 = vsel (!%p6948_p7), %vm279_vm0, %v398_v6, 0.0  ;;  %v501_v44 = vsel (!%p6948_p7), %vm279_vm0, %v9456_v8, 0.0 }
  0x1b   : > { %296 = vst.msk [vmem:[#allocation2 + $0x78] sm:$0xf] (!%p6948_p7), %vm283_vm1, %v9131_v3  ;;  %300 = vst.msk [vmem:[#allocation2 + $0x98] sm:$0xf] (!%p6948_p7), %vm283_vm1, %v9131_v3  ;;  %v9497_v18 = vld [vmem:[%s9208_s9 + $0x68] sm:$0xff] (!%p6948_p7)  ;;  %v9500_v19 = vld [vmem:[%s9208_s9 + $0x70] sm:$0xff] (!%p6948_p7)  ;;  %v494_v24 = vadd.f32 (!%p6948_p7), %v493_v12, %v492_v16 }
  0x1c   : > { %297 = vst.msk [vmem:[#allocation2 + $0x80] sm:$0xff] %vm279_vm0, %v9131_v3  ;;  %298 = vst.msk [vmem:[#allocation2 + $0x88] sm:$0xff] %vm279_vm0, %v9131_v3  ;;  %v9510_v21 = vld [vmem:[%s9208_s9 + $0x78] sm:$0xff]  ;;  %v9513_v22 = vld [vmem:[%s9208_s9 + $0x80] sm:$0xff]  ;;  %v503_v46 = vsel %vm279_vm0, %v9459_v9, 0.0  ;;  %v505_v48 = vsel %vm279_vm0, %v9462_v10, 0.0 }
  0x1d   : > { %299 = vst.msk [vmem:[#allocation2 + $0x90] sm:$0xff] %vm279_vm0, %v9131_v3  ;;  %301 = vst.msk [vmem:[#allocation2 + $0xa0] sm:$0xff] %vm279_vm0, %v9131_v3  ;;  %v9516_v23 = vld [vmem:[%s9208_s9 + $0x88] sm:$0xff]  ;;  %v411_v25 = vld [vmem:[%s9208_s9 + $0x90] sm:$0xff]  ;;  %v496_v32 = vadd.f32 %v495_v20, %v494_v24  ;;  %v507_v50 = vsel %vm279_vm0, %v9479_v13, 0.0  ;;  %v509_v52 = vsel %vm279_vm0, %v9482_v14, 0.0 }
  0x1e   : > { %302 = vst.msk [vmem:[#allocation2 + $0xa8] sm:$0xff] %vm279_vm0, %v9131_v3  ;;  %303 = vst.msk [vmem:[#allocation2 + $0xb0] sm:$0xff] %vm279_vm0, %v9131_v3  ;;  %v9526_v26 = vld [vmem:[%s9208_s9 + $0x98] sm:$0xff]  ;;  %v9529_v27 = vld [vmem:[%s9208_s9 + $0xa0] sm:$0xff]  ;;  %v511_v54 = vsel %vm279_vm0, %v9485_v15, 0.0  ;;  %v513_v56 = vsel %vm279_vm0, %v9494_v17, 0.0 }
  0x1f   : > { %304 = vst.msk [vmem:[#allocation2 + $0xb8] sm:$0xf] %vm283_vm1, %v9131_v3  ;;  %308 = vst.msk [vmem:[#allocation2 + $0xd8] sm:$0xf] %vm283_vm1, %v9131_v3  ;;  %v414_v29 = vld [vmem:[%s9208_s9 + $0xa8] sm:$0xff]  ;;  %v415_v30 = vld [vmem:[%s9208_s9 + $0xb0] sm:$0xff]  ;;  %v498_v40 = vadd.f32 %v497_v28, %v496_v32 }
  0x20   : > { %305 = vst.msk [vmem:[#allocation2 + $0xc0] sm:$0xff] %vm279_vm0, %v9131_v3  ;;  %306 = vst.msk [vmem:[#allocation2 + $0xc8] sm:$0xff] %vm279_vm0, %v9131_v3  ;;  %v9541_v31 = vld [vmem:[%s9208_s9 + $0xb8] sm:$0xff]  ;;  %v417_v33 = vld [vmem:[%s9208_s9 + $0xc0] sm:$0xff]  ;;  %v515_v58 = vsel %vm279_vm0, %v9497_v18, 0.0  ;;  %v517_v60 = vsel %vm279_vm0, %v9500_v19, 0.0 }
  0x21   : > { %307 = vst.msk [vmem:[#allocation2 + $0xd0] sm:$0xff] %vm279_vm0, %v9131_v3  ;;  %309 = vst.msk [vmem:[#allocation2 + $0xe0] sm:$0xff] %vm279_vm0, %v9131_v3  ;;  %v418_v34 = vld [vmem:[%s9208_s9 + $0xc8] sm:$0xff]  ;;  %v419_v35 = vld [vmem:[%s9208_s9 + $0xd0] sm:$0xff]  ;;  %v500_v45 = vadd.f32 %v499_v36, %v498_v40  ;;  %v519_v62 = vsel %vm279_vm0, %v9510_v21, 0.0  ;;  %v533_v12 = vsel %vm279_vm0, %v415_v30, 0.0 }
  0x22   : > { %310 = vst.msk [vmem:[#allocation2 + $0xe8] sm:$0xff] %vm279_vm0, %v9131_v3  ;;  %311 = vst.msk [vmem:[#allocation2 + $0xf0] sm:$0xff] %vm279_vm0, %v9131_v3  ;;  %v420_v37 = vld [vmem:[%s9208_s9 + $0xd8] sm:$0xff]  ;;  %v421_v38 = vld [vmem:[%s9208_s9 + $0xe0] sm:$0xff]  ;;  %v537_v16 = vsel %vm279_vm0, %v417_v33, 0.0  ;;  %v541_v20 = vsel %vm279_vm0, %v419_v35, 0.0 }
  0x23   : > { %312 = vst.msk [vmem:[#allocation2 + $0xf8] sm:$0xf] %vm283_vm1, %v9131_v3  ;;  %316 = vst.msk [vmem:[#allocation2 + $0x118] sm:$0xf] %vm283_vm1, %v9131_v3  ;;  %v422_v39 = vld [vmem:[%s9208_s9 + $0xe8] sm:$0xff]  ;;  %v423_v41 = vld [vmem:[%s9208_s9 + $0xf0] sm:$0xff]  ;;  %v502_v47 = vadd.f32 %v501_v44, %v500_v45 }
  0x24   : > { %313 = vst.msk [vmem:[#allocation2 + $0x100] sm:$0xff] %vm279_vm0, %v9131_v3  ;;  %314 = vst.msk [vmem:[#allocation2 + $0x108] sm:$0xff] %vm279_vm0, %v9131_v3  ;;  %v424_v42 = vld [vmem:[%s9208_s9 + $0xf8] sm:$0xff]  ;;  %v545_v24 = vsel %vm279_vm0, %v421_v38, 0.0  ;;  %v549_v28 = vsel %vm279_vm0, %v423_v41, 0.0 }
  0x25   : > { %315 = vst.msk [vmem:[#allocation2 + $0x110] sm:$0xff] %vm279_vm0, %v9131_v3  ;;  %317 = vst.msk [vmem:[#allocation2 + $0x120] sm:$0xff] %vm279_vm0, %v9131_v3  ;;  %v504_v49 = vadd.f32 %v503_v46, %v502_v47 }
  0x26   : > { %318 = vst.msk [vmem:[#allocation2 + $0x128] sm:$0xff] %vm279_vm0, %v9131_v3  ;;  %319 = vst.msk [vmem:[#allocation2 + $0x130] sm:$0xff] %vm279_vm0, %v9131_v3 }
  0x27   : > { %320 = vst.msk [vmem:[#allocation2 + $0x138] sm:$0xf] %vm283_vm1, %v9131_v3  ;;  %324 = vst.msk [vmem:[#allocation2 + $0x158] sm:$0xf] %vm283_vm1, %v9131_v3  ;;  %v506_v51 = vadd.f32 %v505_v48, %v504_v49 }
  0x28   : > { %321 = vst.msk [vmem:[#allocation2 + $0x140] sm:$0xff] %vm279_vm0, %v9131_v3  ;;  %322 = vst.msk [vmem:[#allocation2 + $0x148] sm:$0xff] %vm279_vm0, %v9131_v3 }
  0x29   : > { %323 = vst.msk [vmem:[#allocation2 + $0x150] sm:$0xff] %vm279_vm0, %v9131_v3  ;;  %325 = vst.msk [vmem:[#allocation2 + $0x160] sm:$0xff] %vm279_vm0, %v9131_v3  ;;  %v508_v53 = vadd.f32 %v507_v50, %v506_v51 }
  0x2a   : > { %326 = vst.msk [vmem:[#allocation2 + $0x168] sm:$0xff] %vm279_vm0, %v9131_v3  ;;  %327 = vst.msk [vmem:[#allocation2 + $0x170] sm:$0xff] %vm279_vm0, %v9131_v3 }
  0x2b   : > { %328 = vst.msk [vmem:[#allocation2 + $0x178] sm:$0xf] %vm283_vm1, %v9131_v3  ;;  %332 = vst.msk [vmem:[#allocation2 + $0x198] sm:$0xf] %vm283_vm1, %v9131_v3  ;;  %v510_v55 = vadd.f32 %v509_v52, %v508_v53 }
  0x2c   : > { %329 = vst.msk [vmem:[#allocation2 + $0x180] sm:$0xff] %vm279_vm0, %v9131_v3  ;;  %330 = vst.msk [vmem:[#allocation2 + $0x188] sm:$0xff] %vm279_vm0, %v9131_v3 }
  0x2d   : > { %331 = vst.msk [vmem:[#allocation2 + $0x190] sm:$0xff] %vm279_vm0, %v9131_v3  ;;  %333 = vst.msk [vmem:[#allocation2 + $0x1a0] sm:$0xff] %vm279_vm0, %v9131_v3  ;;  %v512_v57 = vadd.f32 %v511_v54, %v510_v55 }
  0x2e   : > { %334 = vst.msk [vmem:[#allocation2 + $0x1a8] sm:$0xff] %vm279_vm0, %v9131_v3  ;;  %335 = vst.msk [vmem:[#allocation2 + $0x1b0] sm:$0xff] %vm279_vm0, %v9131_v3 }
  0x2f   : > { %336 = vst.msk [vmem:[#allocation2 + $0x1b8] sm:$0xf] %vm283_vm1, %v9131_v3  ;;  %340 = vst.msk [vmem:[#allocation2 + $0x1d8] sm:$0xf] %vm283_vm1, %v9131_v3  ;;  %v514_v59 = vadd.f32 %v513_v56, %v512_v57 }
  0x30   : > { %337 = vst.msk [vmem:[#allocation2 + $0x1c0] sm:$0xff] %vm279_vm0, %v9131_v3  ;;  %338 = vst.msk [vmem:[#allocation2 + $0x1c8] sm:$0xff] %vm279_vm0, %v9131_v3 }
  0x31   : > { %339 = vst.msk [vmem:[#allocation2 + $0x1d0] sm:$0xff] %vm279_vm0, %v9131_v3  ;;  %341 = vst.msk [vmem:[#allocation2 + $0x1e0] sm:$0xff] %vm279_vm0, %v9131_v3  ;;  %v516_v61 = vadd.f32 %v515_v58, %v514_v59 }
  0x32   : > { %342 = vst.msk [vmem:[#allocation2 + $0x1e8] sm:$0xff] %vm279_vm0, %v9131_v3  ;;  %343 = vst.msk [vmem:[#allocation2 + $0x1f0] sm:$0xff] %vm279_vm0, %v9131_v3 }
  0x33   : > { %344 = vst.msk [vmem:[#allocation2 + $0x1f8] sm:$0xf] %vm283_vm1, %v9131_v3  ;;  %348 = vst.msk [vmem:[#allocation2 + $0x218] sm:$0xf] %vm283_vm1, %v9131_v3  ;;  %v518_v63 = vadd.f32 %v517_v60, %v516_v61 }
  0x34   : > { %345 = vst.msk [vmem:[#allocation2 + $0x200] sm:$0xff] %vm279_vm0, %v9131_v3  ;;  %346 = vst.msk [vmem:[#allocation2 + $0x208] sm:$0xff] %vm279_vm0, %v9131_v3 }
  0x35   : > { %347 = vst.msk [vmem:[#allocation2 + $0x210] sm:$0xff] %vm279_vm0, %v9131_v3  ;;  %349 = vst.msk [vmem:[#allocation2 + $0x220] sm:$0xff] %vm279_vm0, %v9131_v3 }
  0x36   : > { %350 = vst.msk [vmem:[#allocation2 + $0x228] sm:$0xff] %vm279_vm0, %v9131_v3  ;;  %351 = vst.msk [vmem:[#allocation2 + $0x230] sm:$0xff] %vm279_vm0, %v9131_v3 }
  0x37   : > { %352 = vst.msk [vmem:[#allocation2 + $0x238] sm:$0xf] %vm283_vm1, %v9131_v3  ;;  %356 = vst.msk [vmem:[#allocation2 + $0x258] sm:$0xf] %vm283_vm1, %v9131_v3 }
  0x38   : > { %353 = vst.msk [vmem:[#allocation2 + $0x240] sm:$0xff] %vm279_vm0, %v9131_v3  ;;  %354 = vst.msk [vmem:[#allocation2 + $0x248] sm:$0xff] %vm279_vm0, %v9131_v3 }
  0x39   : > { %355 = vst.msk [vmem:[#allocation2 + $0x250] sm:$0xff] %vm279_vm0, %v9131_v3  ;;  %357 = vst.msk [vmem:[#allocation2 + $0x260] sm:$0xff] %vm279_vm0, %v9131_v3 }
  0x3a   : > { %358 = vst.msk [vmem:[#allocation2 + $0x268] sm:$0xff] %vm279_vm0, %v9131_v3  ;;  %359 = vst.msk [vmem:[#allocation2 + $0x270] sm:$0xff] %vm279_vm0, %v9131_v3 }
  0x3b   : > { %360 = vst.msk [vmem:[#allocation2 + $0x278] sm:$0xf] %vm283_vm1, %v9131_v3  ;;  %364 = vst.msk [vmem:[#allocation2 + $0x298] sm:$0xf] %vm283_vm1, %v9131_v3 }
  0x3c   : > { %361 = vst.msk [vmem:[#allocation2 + $0x280] sm:$0xff] %vm279_vm0, %v9131_v3  ;;  %362 = vst.msk [vmem:[#allocation2 + $0x288] sm:$0xff] %vm279_vm0, %v9131_v3 }
  0x3d   : > { %363 = vst.msk [vmem:[#allocation2 + $0x290] sm:$0xff] %vm279_vm0, %v9131_v3  ;;  %365 = vst.msk [vmem:[#allocation2 + $0x2a0] sm:$0xff] %vm279_vm0, %v9131_v3 }
  0x3e   : > { %366 = vst.msk [vmem:[#allocation2 + $0x2a8] sm:$0xff] %vm279_vm0, %v9131_v3  ;;  %367 = vst.msk [vmem:[#allocation2 + $0x2b0] sm:$0xff] %vm279_vm0, %v9131_v3 }
  0x3f   : > { %368 = vst.msk [vmem:[#allocation2 + $0x2b8] sm:$0xf] %vm283_vm1, %v9131_v3  ;;  %372 = vst.msk [vmem:[#allocation2 + $0x2d8] sm:$0xf] %vm283_vm1, %v9131_v3 }
  0x40   : > { %369 = vst.msk [vmem:[#allocation2 + $0x2c0] sm:$0xff] %vm279_vm0, %v9131_v3  ;;  %370 = vst.msk [vmem:[#allocation2 + $0x2c8] sm:$0xff] %vm279_vm0, %v9131_v3 }
  0x41   : > { %371 = vst.msk [vmem:[#allocation2 + $0x2d0] sm:$0xff] %vm279_vm0, %v9131_v3  ;;  %373 = vst.msk [vmem:[#allocation2 + $0x2e0] sm:$0xff] %vm279_vm0, %v9131_v3 }
  0x42   : > { %374 = vst.msk [vmem:[#allocation2 + $0x2e8] sm:$0xff] %vm279_vm0, %v9131_v3  ;;  %375 = vst.msk [vmem:[#allocation2 + $0x2f0] sm:$0xff] %vm279_vm0, %v9131_v3 }
  0x43   : > { %376 = vst.msk [vmem:[#allocation2 + $0x2f8] sm:$0xf] %vm283_vm1, %v9131_v3  ;;  %380 = vst.msk [vmem:[#allocation2 + $0x318] sm:$0xf] %vm283_vm1, %v9131_v3 }
  0x44   : > { %377 = vst.msk [vmem:[#allocation2 + $0x300] sm:$0xff] %vm279_vm0, %v9131_v3  ;;  %378 = vst.msk [vmem:[#allocation2 + $0x308] sm:$0xff] %vm279_vm0, %v9131_v3 }
  0x45   : > { %379 = vst.msk [vmem:[#allocation2 + $0x310] sm:$0xff] %vm279_vm0, %v9131_v3  ;;  %381 = vst.msk [vmem:[#allocation2 + $0x320] sm:$0xff] %vm279_vm0, %v9131_v3 }
  0x46   : > { %382 = vst.msk [vmem:[#allocation2 + $0x328] sm:$0xff] %vm279_vm0, %v9131_v3  ;;  %383 = vst.msk [vmem:[#allocation2 + $0x330] sm:$0xff] %vm279_vm0, %v9131_v3 }
  0x47   : > { %384 = vst.msk [vmem:[#allocation2 + $0x338] sm:$0xf] %vm283_vm1, %v9131_v3  ;;  %388 = vst.msk [vmem:[#allocation2 + $0x358] sm:$0xf] %vm283_vm1, %v9131_v3 }
  0x48   : > { %385 = vst.msk [vmem:[#allocation2 + $0x340] sm:$0xff] %vm279_vm0, %v9131_v3  ;;  %386 = vst.msk [vmem:[#allocation2 + $0x348] sm:$0xff] %vm279_vm0, %v9131_v3 }
  0x49   : > { %387 = vst.msk [vmem:[#allocation2 + $0x350] sm:$0xff] %vm279_vm0, %v9131_v3  ;;  %389 = vst.msk [vmem:[#allocation2 + $0x360] sm:$0xff] %vm279_vm0, %v9131_v3 }
  0x4a   : > { %390 = vst.msk [vmem:[#allocation2 + $0x368] sm:$0xff] %vm279_vm0, %v9131_v3  ;;  %391 = vst.msk [vmem:[#allocation2 + $0x370] sm:$0xff] %vm279_vm0, %v9131_v3 }
  0x4b   : > { %392 = vst.msk [vmem:[#allocation2 + $0x378] sm:$0xf] %vm283_vm1, %v9131_v3 }
  0x4c   : > { %426 = vst.msk [vmem:[#allocation2 + $0xc6] sm:$0xff] %vm279_vm0, %v9217_v0  ;;  %427 = vst.msk [vmem:[#allocation2 + $0xce] sm:$0xff] %vm279_vm0, %v9220_v1  ;;  %v521_v0 = vsel %vm279_vm0, %v9513_v22, 0.0  ;;  %v520_v1 = vadd.f32 %v519_v62, %v518_v63 }
  0x4d   : > { %428 = vst.msk [vmem:[#allocation2 + $0xe6] sm:$0xff] %vm279_vm0, %v9223_v2  ;;  %429 = vst.msk [vmem:[#allocation2 + $0xee] sm:$0xff] %vm279_vm0, %v396_v4  ;;  %v523_v2 = vsel %vm279_vm0, %v9516_v23, 0.0  ;;  %v525_v4 = vsel %vm279_vm0, %v411_v25, 0.0 }
  0x4e   : > { %430 = vst.msk [vmem:[#allocation2 + $0x106] sm:$0xff] %vm279_vm0, %v397_v5  ;;  %431 = vst.msk [vmem:[#allocation2 + $0x10e] sm:$0xff] %vm279_vm0, %v398_v6  ;;  %v522_v3 = vadd.f32 %v521_v0, %v520_v1  ;;  %v527_v6 = vsel %vm279_vm0, %v9526_v26, 0.0 }
  0x4f   : > { %432 = vst.msk [vmem:[#allocation2 + $0x126] sm:$0xff] %vm279_vm0, %v9456_v8  ;;  %433 = vst.msk [vmem:[#allocation2 + $0x12e] sm:$0xff] %vm279_vm0, %v9459_v9  ;;  %v529_v8 = vsel %vm279_vm0, %v9529_v27, 0.0 }
  0x50   : > { %434 = vst.msk [vmem:[#allocation2 + $0x146] sm:$0xff] %vm279_vm0, %v9462_v10  ;;  %435 = vst.msk [vmem:[#allocation2 + $0x14e] sm:$0xff] %vm279_vm0, %v9479_v13  ;;  %v524_v5 = vadd.f32 %v523_v2, %v522_v3  ;;  %v531_v10 = vsel %vm279_vm0, %v414_v29, 0.0 }
  0x51   : > { %436 = vst.msk [vmem:[#allocation2 + $0x166] sm:$0xff] %vm279_vm0, %v9482_v14  ;;  %437 = vst.msk [vmem:[#allocation2 + $0x16e] sm:$0xff] %vm279_vm0, %v9485_v15  ;;  %v535_v14 = vsel %vm279_vm0, %v9541_v31, 0.0 }
  0x52   : > { %438 = vst.msk [vmem:[#allocation2 + $0x186] sm:$0xff] %vm279_vm0, %v9494_v17  ;;  %439 = vst.msk [vmem:[#allocation2 + $0x18e] sm:$0xff] %vm279_vm0, %v9497_v18  ;;  %v526_v7 = vadd.f32 %v525_v4, %v524_v5  ;;  %v539_v18 = vsel %vm279_vm0, %v418_v34, 0.0 }
  0x53   : > { %440 = vst.msk [vmem:[#allocation2 + $0x1a6] sm:$0xff] %vm279_vm0, %v9500_v19  ;;  %441 = vst.msk [vmem:[#allocation2 + $0x1ae] sm:$0xff] %vm279_vm0, %v9510_v21 }
  0x54   : > { %442 = vst.msk [vmem:[#allocation2 + $0x1c6] sm:$0xff] %vm279_vm0, %v9513_v22  ;;  %443 = vst.msk [vmem:[#allocation2 + $0x1ce] sm:$0xff] %vm279_vm0, %v9516_v23  ;;  %v528_v9 = vadd.f32 %v527_v6, %v526_v7  ;;  %v543_v22 = vsel %vm279_vm0, %v420_v37, 0.0 }
  0x55   : > { %444 = vst.msk [vmem:[#allocation2 + $0x1e6] sm:$0xff] %vm279_vm0, %v411_v25  ;;  %445 = vst.msk [vmem:[#allocation2 + $0x1ee] sm:$0xff] %vm279_vm0, %v9526_v26  ;;  %v547_v26 = vsel %vm279_vm0, %v422_v39, 0.0 }
  0x56   : > { %446 = vst.msk [vmem:[#allocation2 + $0x206] sm:$0xff] %vm279_vm0, %v9529_v27  ;;  %447 = vst.msk [vmem:[#allocation2 + $0x20e] sm:$0xff] %vm279_vm0, %v414_v29  ;;  %v530_v11 = vadd.f32 %v529_v8, %v528_v9 }
  0x57   : > { %448 = vst.msk [vmem:[#allocation2 + $0x226] sm:$0xff] %vm279_vm0, %v415_v30  ;;  %449 = vst.msk [vmem:[#allocation2 + $0x22e] sm:$0xff] %vm279_vm0, %v9541_v31  ;;  %v551_v30 = vsel %vm279_vm0, %v424_v42, 0.0 }
  0x58   : > { %450 = vst.msk [vmem:[#allocation2 + $0x246] sm:$0xff] %vm279_vm0, %v417_v33  ;;  %451 = vst.msk [vmem:[#allocation2 + $0x24e] sm:$0xff] %vm279_vm0, %v418_v34  ;;  %v532_v13 = vadd.f32 %v531_v10, %v530_v11 }
  0x59   : > { %452 = vst.msk [vmem:[#allocation2 + $0x266] sm:$0xff] %vm279_vm0, %v419_v35  ;;  %453 = vst.msk [vmem:[#allocation2 + $0x26e] sm:$0xff] %vm279_vm0, %v420_v37 }
  0x5a   : > { %454 = vst.msk [vmem:[#allocation2 + $0x286] sm:$0xff] %vm279_vm0, %v421_v38  ;;  %455 = vst.msk [vmem:[#allocation2 + $0x28e] sm:$0xff] %vm279_vm0, %v422_v39  ;;  %v534_v15 = vadd.f32 %v533_v12, %v532_v13  ;;  %v561_v38 = vld [vmem:[%s11812_s5] sm:$0x1] }
  0x5b   : > { %456 = vst.msk [vmem:[#allocation2 + $0x2a6] sm:$0xff] %vm279_vm0, %v423_v41  ;;  %457 = vst.msk [vmem:[#allocation2 + $0x2ae] sm:$0xff] %vm279_vm0, %v424_v42 }
  0x5c   : > { %v536_v17 = vadd.f32 %v535_v14, %v534_v15 }
  0x5e   : > { %v538_v19 = vadd.f32 %v537_v16, %v536_v17 }
  0x60   : > { %v540_v21 = vadd.f32 %v539_v18, %v538_v19 }
  0x62   : > { %v542_v23 = vadd.f32 %v541_v20, %v540_v21 }
  0x64   : > { %v544_v25 = vadd.f32 %v543_v22, %v542_v23 }
  0x66   : > { %v546_v27 = vadd.f32 %v545_v24, %v544_v25 }
  0x68   : > { %v548_v29 = vadd.f32 %v547_v26, %v546_v27 }
  0x6a   : > { %v550_v31 = vadd.f32 %v549_v28, %v548_v29 }
  0x6c   : > { %v552_v32 = vadd.f32 %v551_v30, %v550_v31 }
  0x6e   : > { %v553_v33 = vrot.slane %v552_v32, 4 }
  0x70   : > { %v554_v34 = vadd.f32 %v553_v33, %v552_v32 }
  0x72   : > { %v555_v35 = vrot.slane %v554_v34, 2 }
  0x74   : > { %v556_v36 = vadd.f32 %v555_v35, %v554_v34 }
  0x76   : > { %v557_v40 = vrot.slane %v556_v36, 1 }
  0x78   : > { %v558_v37 = vadd.f32 %v557_v40, %v556_v36 }
  0x7a   : > { %v559_v43 = vmul.f32 0.00390625, %v558_v37 }
  0x7c   : > { %8031 = vmatmul.mubr.msk.f32.vlgmr.msra.gmra.mrb[0].mxu0 %vm279_vm0, %v559_v43 }
 0x14f   : > { %v635_v39 = vpop.f32.mrb[0].mxu0 }
 0x150   : > { %v636_v41 = vadd.f32 %v635_v39, %v561_v38  ;;  %v8032_v44 = vpop.f32.mrb[1].mxu0 }
 0x152   : > { %v639_v42 = vmax.f32 %v636_v41, 0.0 }
 0x154   : > { %641 = vst.msk [vmem:[#allocation3] sm:$0x1] %vm640_vm4, %v639_v42 }
 0x155 PF: > { %v743_v45 = vld [vmem:[%s11808_s1] sm:$0xf]  ;;  %vm784_vm5 = vcmask 1043456   ;;  %v9624_v46 = vld [vmem:[%s11809_s2 + $0xc] sm:$0xf]  ;;  %s7594_s29 = sshll.u32 %s9113_s21, 8 }
 0x156   : > { %8033 = vmatprep.subr.msk.mxu0 %vm784_vm5, %v743_v45  ;;  %8683 = vmatprep.subr.msk.mxu1 %vm784_vm5, %v9624_v46  ;;  %v7056_v47 = vld [vmem:[%s11809_s2 + $0x4] sm:$0xf]  ;;  %s9634_s8 = scalar_lea.vmem [#allocation2], %s7594_s29  ;;  %vm702_vm6 = vcmask 1041408   ;;  %vm751_vm7 = vcmask 31744   ;;  %vm2880_vm8 = vcmask 1045504  }
 0x157   : > { %8034 = vmatpush3.msk.msra.mxu0 %vm784_vm5, %v743_v45  ;;  %8684 = vmatpush3.msk.msra.mxu1 %vm784_vm5, %v9624_v46  ;;  %v7127_v4 = vld [vmem:[%s11809_s2 + $0x10] sm:$0xf]  ;;  %v7145_v43 = vld [vmem:[%s11809_s2 + $0x14] sm:$0xf]  ;;  %v9794_v41 = vld [vmem:[%s11809_s2] sm:$0xf] }
 0x158   : > { %8059 = vmatprep.subr.msk.mxu0 %vm784_vm5, %v7056_v47  ;;  %8163 = vmatprep.subr.msk.mxu1 %vm784_vm5, %v7127_v4  ;;  %s9133_s19 = smov 8   ;;  %s9135_s20 = smov 24   ;;  %vm6702_vm9 = vcmask 64512   ;;  %vm6719_vm10 = vcmask 130048   ;;  %vm6736_vm11 = vcmask 195584   ;;  %vm6794_vm12 = vcmask 261120  }
 0x159   : > { %s9136_s22 = smov 32   ;;  %vm6811_vm13 = vcmask 326656  }
 0x15c   : > { %v9637_v48 = vld [vmem:[%s9634_s8 + $0xc0] sm:$0xff]  ;;  %v9640_v49 = vld [vmem:[%s9634_s8 + $0xc8] sm:$0xff]  ;;  %v9655_v55 = vld [vmem:[%s9634_s8 + $0xd0] sm:$0xff] }
 0x15d   : > { %v9645_v50 = vld [vmem:[%s9634_s8 + $0x140] sm:$0xff]  ;;  %v703_v51 = vrot.slane %v9637_v48, 6  ;;  %v704_v52 = vrot.slane %v9640_v49, 6  ;;  %v9651_v53 = vld [vmem:[%s9634_s8 + $0x148] sm:$0xff]  ;;  %v9658_v56 = vld [vmem:[%s9634_s8 + $0x150] sm:$0xff]  ;;  %v706_v58 = vrot.slane %v9655_v55, 6 }
 0x15e   : > { %v1672_v54 = vrot.slane %v9645_v50, 4  ;;  %v1673_v57 = vrot.slane %v9651_v53, 4  ;;  %v11817_v59 = vrot.slane %v9658_v56, 4  ;;  %v9664_v60 = vld [vmem:[%s9634_s8 + $0xe0] sm:$0xff]  ;;  %v9667_v61 = vld [vmem:[%s9634_s8 + $0xe8] sm:$0xff]  ;;  %v9700_v9 = vld [vmem:[%s9634_s8 + $0xf0] sm:$0xff] }
 0x15f   : > { %v9670_v62 = vld [vmem:[%s9634_s8 + $0x160] sm:$0xff]  ;;  %v9673_v63 = vsel %vm702_vm6, %v703_v51, %v704_v52  ;;  %v708_v0 = vrot.slane %v9664_v60, 6  ;;  %v709_v1 = vrot.slane %v9667_v61, 6  ;;  %v9678_v2 = vld [vmem:[%s9634_s8 + $0x168] sm:$0xff]  ;;  %v9690_v6 = vsel %vm702_vm6, %v704_v52, %v706_v58  ;;  %v9703_v10 = vld [vmem:[%s9634_s8 + $0x170] sm:$0xff] }
 0x160   : > { %v1677_v3 = vrot.slane %v9670_v62, 4  ;;  %8035 = vmatprep.mubr.msk.f32.mxu0 %vm751_vm7, %v9673_v63  ;;  %v9687_v5 = vsel %vm784_vm5, %v1672_v54, %v1673_v57  ;;  %v9695_v7 = vsel %vm784_vm5, %v1673_v57, %v11817_v59  ;;  %v1678_v8 = vrot.slane %v9678_v2, 4  ;;  %v9706_v11 = vld [vmem:[%s9634_s8 + $0x100] sm:$0xff]  ;;  %v9718_v15 = vld [vmem:[%s9634_s8 + $0x108] sm:$0xff]  ;;  %v9737_v23 = vld [vmem:[%s9634_s8 + $0x110] sm:$0xff] }
 0x161   : > { %8151 = vmatprep.mubr.msk.f32.mxu1 %vm751_vm7, %v9687_v5  ;;  %8036 = vmatmul.mubr.msk.f32.vlgmr.msra.gmra.mrb[0].mxu0 %vm751_vm7, %v9690_v6  ;;  %v9713_v12 = vsel %vm702_vm6, %v708_v0, %v709_v1  ;;  %v711_v13 = vrot.slane %v9700_v9, 6  ;;  %v11816_v14 = vrot.slane %v9703_v10, 4  ;;  %v713_v16 = vrot.slane %v9706_v11, 6  ;;  %v9722_v17 = vld [vmem:[%s9634_s8 + $0x180] sm:$0xff]  ;;  %v9725_v18 = vld [vmem:[%s9634_s8 + $0x188] sm:$0xff]  ;;  %v9740_v24 = vld [vmem:[%s9634_s8 + $0x190] sm:$0xff] }
 0x162   : > { %8060 = vmatpush3.msk.msra.mxu0 %vm784_vm5, %v7056_v47  ;;  %8152 = vmatmul.mubr.msk.f32.vlgmr.msra.gmra.mrb[0].mxu1 %vm751_vm7, %v9695_v7  ;;  %v9731_v19 = vsel %vm784_vm5, %v1677_v3, %v1678_v8  ;;  %v714_v20 = vrot.slane %v9718_v15, 6  ;;  %v1682_v21 = vrot.slane %v9722_v17, 4  ;;  %v1683_v22 = vrot.slane %v9725_v18, 4  ;;  %v9743_v25 = vld [vmem:[%s9634_s8 + $0x120] sm:$0xff]  ;;  %v9760_v30 = vld [vmem:[%s9634_s8 + $0x128] sm:$0xff]  ;;  %v9778_v40 = vld [vmem:[%s9634_s8 + $0x130] sm:$0xff] }
 0x163   : > { %8038 = vmatprep.mubr.msk.f32.mxu0 %vm751_vm7, %v9713_v12  ;;  %8154 = vmatprep.mubr.msk.f32.mxu1 %vm751_vm7, %v9731_v19  ;;  %v9750_v26 = vsel %vm702_vm6, %v709_v1, %v711_v13  ;;  %v9755_v27 = vsel %vm784_vm5, %v1678_v8, %v11816_v14  ;;  %v716_v28 = vrot.slane %v9737_v23, 6  ;;  %v11815_v29 = vrot.slane %v9740_v24, 4  ;;  %v9763_v31 = vld [vmem:[%s9634_s8 + $0x1a0] sm:$0xff]  ;;  %v9766_v32 = vld [vmem:[%s9634_s8 + $0x1a8] sm:$0xff]  ;;  %v9781_v37 = vld [vmem:[%s9634_s8 + $0x1b0] sm:$0xff] }
 0x164   : > { %8164 = vmatpush3.msk.msra.mxu1 %vm784_vm5, %v7127_v4  ;;  %v9770_v33 = vsel %vm702_vm6, %v713_v16, %v714_v20  ;;  %v9773_v34 = vsel %vm784_vm5, %v1682_v21, %v1683_v22  ;;  %v718_v35 = vrot.slane %v9743_v25, 6  ;;  %v719_v36 = vrot.slane %v9760_v30, 6  ;;  %8085 = vmatprep.subr.msk.mxu0 %vm784_vm5, %v9794_v41  ;;  %v9866_v21 = vld [vmem:[%s11809_s2 + $0x18] sm:$0xf]  ;;  %v10061_v59 = vld [vmem:[%s9634_s8 + $0x1c0] sm:$0xff] }
 0x165   : > { %8039 = vmatmul.mubr.msk.f32.gmra.mrb[2].mxu0 %vm751_vm7, %v9750_v26  ;;  %v1687_v38 = vrot.slane %v9763_v31, 4  ;;  %v1688_v39 = vrot.slane %v9766_v32, 4  ;;  %8189 = vmatprep.subr.msk.mxu1 %vm784_vm5, %v7145_v43  ;;  %v9801_v44 = vsel %vm702_vm6, %v714_v20, %v716_v28  ;;  %v9806_v42 = vsel %vm784_vm5, %v1683_v22, %v11815_v29  ;;  %v9958_v29 = vld [vmem:[%s11809_s2 + $0x8] sm:$0xf] }
 0x166   : > { %8155 = vmatmul.mubr.msk.f32.gmra.mrb[2].mxu1 %vm751_vm7, %v9755_v27  ;;  %8041 = vmatprep.mubr.msk.f32.mxu0 %vm751_vm7, %v9770_v33  ;;  %11848 = vst [vmem:[#allocation4_spill] sm:$0xff] %v9806_v42  ;;  %v721_v45 = vrot.slane %v9778_v40, 6  ;;  %v9812_v47 = vsel %vm702_vm6, %v718_v35, %v719_v36  ;;  %v11814_v51 = vrot.slane %v9781_v37, 4  ;;  %v723_v52 = vrot.slane %v9645_v50, 6 }
 0x167   : > { %8157 = vmatprep.mubr.msk.f32.mxu1 %vm751_vm7, %v9773_v34  ;;  %v724_v54 = vrot.slane %v9651_v53, 6  ;;  %v9820_v57 = vsel %vm784_vm5, %v1687_v38, %v1688_v39  ;;  %v726_v50 = vrot.slane %v9658_v56, 6  ;;  %v728_v3 = vrot.slane %v9670_v62, 6  ;;  %v9885_v38 = vld [vmem:[%s9634_s8 + $0x80] sm:$0xff] }
 0x168   : > { %v9829_v58 = vsel %vm702_vm6, %v719_v36, %v721_v45  ;;  %v9837_v0 = vsel %vm784_vm5, %v1688_v39, %v11814_v51  ;;  %v729_v4 = vrot.slane %v9678_v2, 6  ;;  %v731_v13 = vrot.slane %v9703_v10, 6  ;;  %11850 = vst [vmem:[#allocation6_spill] sm:$0xff] %v9885_v38  ;;  %v9888_v39 = vld [vmem:[%s9634_s8 + $0x88] sm:$0xff] }
 0x169   : > { %8042 = vmatmul.mubr.msk.f32.gmra.mrb[4].mxu0 %vm751_vm7, %v9801_v44  ;;  %11849 = vst [vmem:[#allocation5_spill] sm:$0xff] %v9837_v0  ;;  %v9840_v1 = vsel %vm702_vm6, %v723_v52, %v724_v54  ;;  %v9851_v8 = vsel %vm702_vm6, %v724_v54, %v726_v50  ;;  %v733_v16 = vrot.slane %v9722_v17, 6  ;;  %v734_v20 = vrot.slane %v9725_v18, 6  ;;  %v9910_v50 = vld [vmem:[%s9634_s8 + $0x90] sm:$0xff] }
 0x16a   : > { %8158 = vmatmul.mubr.msk.f32.gmra.mrb[4].mxu1 %vm751_vm7, %v9806_v42  ;;  %8044 = vmatprep.mubr.msk.f32.mxu0 %vm751_vm7, %v9812_v47  ;;  %v9857_v62 = vsel %vm702_vm6, %v728_v3, %v729_v4  ;;  %v9873_v22 = vsel %vm702_vm6, %v729_v4, %v731_v13  ;;  %v736_v17 = vrot.slane %v9740_v24, 6  ;;  %v738_v35 = vrot.slane %v9763_v31, 6  ;;  %v9915_v3 = vld [vmem:[%s9634_s8 + $0xa0] sm:$0xff]  ;;  %v9918_v4 = vld [vmem:[%s9634_s8 + $0xa8] sm:$0xff] }
 0x16b   : > { %8160 = vmatprep.mubr.msk.f32.mxu1 %vm751_vm7, %v9820_v57  ;;  %v9880_v28 = vsel %vm702_vm6, %v733_v16, %v734_v20  ;;  %v739_v36 = vrot.slane %v9766_v32, 6  ;;  %v1052_v52 = vrot.slane %v9885_v38, 6  ;;  %v1053_v54 = vrot.slane %v9888_v39, 6  ;;  %11851 = vst [vmem:[#allocation7_spill] sm:$0xff] %v9915_v3 }
 0x16c   : > { %v9899_v31 = vsel %vm702_vm6, %v734_v20, %v736_v17  ;;  %v1055_v16 = vrot.slane %v9910_v50, 6  ;;  %v9934_v17 = vld [vmem:[%s9634_s8 + $0xb0] sm:$0xff]  ;;  %v1058_v51 = vrot.slane %v9918_v4, 6  ;;  %v1017_v14 = vrot.slane %v9918_v4, 4 }
 0x16d   : > { %8045 = vmatmul.mubr.msk.f32.gmra.mrb[6].mxu0 %vm751_vm7, %v9829_v58  ;;  %v9905_v45 = vsel %vm702_vm6, %v738_v35, %v739_v36  ;;  %v9931_v20 = vsel %vm702_vm6, %v1052_v52, %v1053_v54  ;;  %v1057_v35 = vrot.slane %v9915_v3, 6 }
 0x16e   : > { %8161 = vmatmul.mubr.msk.f32.gmra.mrb[6].mxu1 %vm751_vm7, %v9837_v0  ;;  %8047 = vmatprep.mubr.msk.f32.mxu0 %vm751_vm7, %v9840_v1  ;;  %11852 = vst [vmem:[#allocation8_spill] sm:$0xff] %v9931_v20 }
 0x16f   : > { %8165 = vmatprep.mubr.msk.f32.mxu1 %vm751_vm7, %v9640_v49  ;;  %v9951_v52 = vsel %vm702_vm6, %v1057_v35, %v1058_v51  ;;  %v2118_v35 = vrot.slane %v9760_v30, 4 }
 0x170   : > { %11854 = vst [vmem:[#allocation10_spill] sm:$0xff] %v9951_v52 }
 0x171   : > { %8048 = vmatmul.mubr.msk.f32.gmra.mrb[8].mxu0 %vm751_vm7, %v9851_v8 }
 0x172   : > { %8166 = vmatmul.mubr.msk.f32.vlgmr.msra.gmra.mrb[8].mxu1 %vm751_vm7, %v9655_v55  ;;  %8050 = vmatprep.mubr.msk.f32.mxu0 %vm751_vm7, %v9857_v62 }
 0x173   : > { %8168 = vmatprep.mubr.msk.f32.mxu1 %vm751_vm7, %v9667_v61  ;;  %8190 = vmatpush3.msk.msra.mxu1 %vm784_vm5, %v7145_v43  ;;  %v741_v43 = vrot.slane %v9781_v37, 6 }
 0x174   : > { %8215 = vmatprep.subr.msk.mxu1 %vm784_vm5, %v9866_v21 }
 0x175   : > { %8051 = vmatmul.mubr.msk.f32.gmra.mrb[10].mxu0 %vm751_vm7, %v9873_v22  ;;  %v9925_v13 = vsel %vm702_vm6, %v739_v36, %v741_v43  ;;  %v9945_v36 = vsel %vm702_vm6, %v1053_v54, %v1055_v16  ;;  %v1060_v43 = vrot.slane %v9934_v17, 6 }
 0x176   : > { %8169 = vmatmul.mubr.msk.f32.gmra.mrb[10].mxu1 %vm751_vm7, %v9700_v9  ;;  %8053 = vmatprep.mubr.msk.f32.mxu0 %vm751_vm7, %v9880_v28  ;;  %11853 = vst [vmem:[#allocation9_spill] sm:$0xff] %v9945_v36 }
 0x177   : > { %8171 = vmatprep.mubr.msk.f32.mxu1 %vm751_vm7, %v9718_v15  ;;  %v9965_v54 = vsel %vm702_vm6, %v1058_v51, %v1060_v43  ;;  %v2113_v51 = vrot.slane %v9718_v15, 4 }
 0x178   : > { %11855 = vst [vmem:[#allocation11_spill] sm:$0xff] %v9965_v54 }
 0x179   : > { %8054 = vmatmul.mubr.msk.f32.gmra.mrb[12].mxu0 %vm751_vm7, %v9899_v31 }
 0x17a   : > { %8172 = vmatmul.mubr.msk.f32.gmra.mrb[12].mxu1 %vm751_vm7, %v9737_v23  ;;  %8056 = vmatprep.mubr.msk.f32.mxu0 %vm751_vm7, %v9905_v45 }
 0x17b   : > { %8174 = vmatprep.mubr.msk.f32.mxu1 %vm751_vm7, %v9760_v30 }
 0x17d   : > { %8057 = vmatmul.mubr.msk.f32.gmra.mrb[14].mxu0 %vm751_vm7, %v9925_v13 }
 0x17e   : > { %8175 = vmatmul.mubr.msk.f32.gmra.mrb[14].mxu1 %vm751_vm7, %v9778_v40  ;;  %8061 = vmatprep.mubr.msk.f32.mxu0 %vm751_vm7, %v9931_v20 }
 0x17f   : > { %8177 = vmatprep.mubr.msk.f32.mxu1 %vm751_vm7, %v9651_v53 }
 0x181   : > { %8062 = vmatmul.mubr.msk.f32.vlgmr.msra.gmra.mrb[16].mxu0 %vm751_vm7, %v9945_v36  ;;  %v10083_v36 = vld [vmem:[%s9634_s8 + $0x1d0] sm:$0xff] }
 0x182   : > { %8086 = vmatpush3.msk.msra.mxu0 %vm784_vm5, %v9794_v41  ;;  %8178 = vmatmul.mubr.msk.f32.gmra.mrb[0].mxu1 %vm751_vm7, %v9658_v56  ;;  %v2112_v41 = vrot.slane %v9706_v11, 4  ;;  %v2117_v11 = vrot.slane %v9743_v25, 4 }
 0x183   : > { %8064 = vmatprep.mubr.msk.f32.mxu0 %vm751_vm7, %v9951_v52  ;;  %8180 = vmatprep.mubr.msk.f32.mxu1 %vm751_vm7, %v9678_v2  ;;  %v2142_v52 = vrot.slane %v10061_v59, 4 }
 0x184   : > { %8111 = vmatprep.subr.msk.mxu0 %vm784_vm5, %v9958_v29  ;;  %v9993_v16 = vsel %vm784_vm5, %v2112_v41, %v2113_v51  ;;  %v10012_v25 = vsel %vm784_vm5, %v2117_v11, %v2118_v35  ;;  %v1011_v41 = vrot.slane %v9885_v38, 4  ;;  %v1022_v38 = vrot.slane %v9640_v49, 4 }
 0x185   : > { %8065 = vmatmul.mubr.msk.f32.gmra.mrb[18].mxu0 %vm751_vm7, %v9965_v54 }
 0x186   : > { %8181 = vmatmul.mubr.msk.f32.gmra.mrb[2].mxu1 %vm751_vm7, %v9703_v10  ;;  %8067 = vmatprep.mubr.msk.f32.mxu0 %vm751_vm7, %v9673_v63  ;;  %v11819_v63 = vrot.slane %v9737_v23, 4 }
 0x187   : > { %8183 = vmatprep.mubr.msk.f32.mxu1 %vm751_vm7, %v9725_v18 }
 0x189   : > { %8068 = vmatmul.mubr.msk.f32.gmra.mrb[20].mxu0 %vm751_vm7, %v9690_v6  ;;  %v10008_v6 = vsel %vm784_vm5, %v2113_v51, %v11819_v63  ;;  %v11830_v51 = vrot.slane %v9910_v50, 4  ;;  %v11835_v63 = vrot.slane %v9934_v17, 4 }
 0x18a   : > { %8184 = vmatmul.mubr.msk.f32.gmra.mrb[4].mxu1 %vm751_vm7, %v9740_v24  ;;  %8070 = vmatprep.mubr.msk.f32.mxu0 %vm751_vm7, %v9713_v12  ;;  %v11818_v12 = vrot.slane %v9778_v40, 4 }
 0x18b   : > { %8186 = vmatprep.mubr.msk.f32.mxu1 %vm751_vm7, %v9766_v32 }
 0x18c   : > { %v10030_v43 = vsel %vm784_vm5, %v2118_v35, %v11818_v12  ;;  %v1016_v35 = vrot.slane %v9915_v3, 4  ;;  %v10064_v12 = vld [vmem:[%s9634_s8 + $0x1c8] sm:$0xff]  ;;  %v1021_v3 = vrot.slane %v9637_v48, 4  ;;  %v10100_v48 = vsel %vm784_vm5, %v1017_v14, %v11835_v63 }
 0x18d   : > { %8071 = vmatmul.mubr.msk.f32.gmra.mrb[22].mxu0 %vm751_vm7, %v9750_v26  ;;  %v10019_v26 = vld [vmem:[%s11809_s2 + $0x1c] sm:$0xf]  ;;  %11857 = vst [vmem:[#allocation13_spill] sm:$0xff] %v10100_v48 }
 0x18e   : > { %8187 = vmatmul.mubr.msk.f32.gmra.mrb[6].mxu1 %vm751_vm7, %v9781_v37  ;;  %8073 = vmatprep.mubr.msk.f32.mxu0 %vm751_vm7, %v9770_v33  ;;  %v1018_v54 = vsel %vm784_vm5, %v1016_v35, %v1017_v14  ;;  %v10107_v35 = vsel %vm784_vm5, %v1021_v3, %v1022_v38  ;;  %v1029_v3 = vrot.slane %v9700_v9, 4 }
 0x18f   : > { %8191 = vmatprep.mubr.msk.f32.mxu1 %vm751_vm7, %v9993_v16 }
 0x191   : > { %8074 = vmatmul.mubr.msk.f32.gmra.mrb[24].mxu0 %vm751_vm7, %v9801_v44 }
 0x192   : > { %8192 = vmatmul.mubr.msk.f32.vlgmr.msra.gmra.mrb[8].mxu1 %vm751_vm7, %v10008_v6  ;;  %8076 = vmatprep.mubr.msk.f32.mxu0 %vm751_vm7, %v9812_v47 }
 0x193   : > { %8194 = vmatprep.mubr.msk.f32.mxu1 %vm751_vm7, %v10012_v25  ;;  %8216 = vmatpush3.msk.msra.mxu1 %vm784_vm5, %v9866_v21  ;;  %v1012_v21 = vrot.slane %v9888_v39, 4 }
 0x194   : > { %8241 = vmatprep.subr.msk.mxu1 %vm784_vm5, %v10019_v26 }
 0x195   : > { %8077 = vmatmul.mubr.msk.f32.gmra.mrb[26].mxu0 %vm751_vm7, %v9829_v58  ;;  %v1013_v11 = vsel %vm784_vm5, %v1011_v41, %v1012_v21  ;;  %v10072_v41 = vsel %vm784_vm5, %v1012_v21, %v11830_v51  ;;  %v10088_v21 = vld [vmem:[%s9634_s8 + $0x1e0] sm:$0xff]  ;;  %v10091_v51 = vld [vmem:[%s9634_s8 + $0x1e8] sm:$0xff] }
 0x196   : > { %8195 = vmatmul.mubr.msk.f32.gmra.mrb[10].mxu1 %vm751_vm7, %v10030_v43  ;;  %8079 = vmatprep.mubr.msk.f32.mxu0 %vm751_vm7, %v9840_v1  ;;  %11856 = vst [vmem:[#allocation12_spill] sm:$0xff] %v10072_v41  ;;  %v2147_v14 = vrot.slane %v10088_v21, 4  ;;  %v2148_v63 = vrot.slane %v10091_v51, 4 }
 0x197   : > { %8197 = vmatprep.mubr.msk.f32.mxu1 %vm751_vm7, %v9687_v5 }
 0x199   : > { %8080 = vmatmul.mubr.msk.f32.gmra.mrb[28].mxu0 %vm751_vm7, %v9851_v8 }
 0x19a   : > { %8198 = vmatmul.mubr.msk.f32.gmra.mrb[12].mxu1 %vm751_vm7, %v9695_v7  ;;  %8082 = vmatprep.mubr.msk.f32.mxu0 %vm751_vm7, %v9857_v62 }
 0x19b   : > { %8200 = vmatprep.mubr.msk.f32.mxu1 %vm751_vm7, %v9731_v19 }
 0x19d   : > { %8083 = vmatmul.mubr.msk.f32.gmra.mrb[30].mxu0 %vm751_vm7, %v9873_v22 }
 0x19e   : > { %8201 = vmatmul.mubr.msk.f32.gmra.mrb[14].mxu1 %vm751_vm7, %v9755_v27  ;;  %8087 = vmatprep.mubr.msk.f32.mxu0 %vm751_vm7, %v1013_v11  ;;  %v2143_v11 = vrot.slane %v10064_v12, 4 }
 0x19f   : > { %8203 = vmatprep.mubr.msk.f32.mxu1 %vm751_vm7, %v9773_v34  ;;  %v10116_v34 = vld [vmem:[%s9634_s8 + $0x1f0] sm:$0xff] }
 0x1a0   : > { %v2144_v20 = vsel %vm784_vm5, %v2142_v52, %v2143_v11 }
 0x1a1   : > { %8088 = vmatmul.mubr.msk.f32.vlgmr.msra.gmra.mrb[16].mxu0 %vm751_vm7, %v10072_v41  ;;  %v1026_v41 = vrot.slane %v9664_v60, 4  ;;  %v11858_v60 = vrot.slane %v9655_v55, 4 }
 0x1a2   : > { %8112 = vmatpush3.msk.msra.mxu0 %vm784_vm5, %v9958_v29  ;;  %8204 = vmatmul.mubr.msk.f32.gmra.mrb[0].mxu1 %vm751_vm7, %v9806_v42  ;;  %v2145_v29 = vrot.slane %v10083_v36, 4  ;;  %v1027_v42 = vrot.slane %v9667_v61, 4 }
 0x1a3   : > { %8090 = vmatprep.mubr.msk.f32.mxu0 %vm751_vm7, %v1018_v54  ;;  %8206 = vmatprep.mubr.msk.f32.mxu1 %vm751_vm7, %v9820_v57  ;;  %v10129_v57 = vsel %vm784_vm5, %v1022_v38, %v11858_v60 }
 0x1a4   : > { %8137 = vmatprep.subr.msk.mxu0 %vm784_vm5, %v9624_v46  ;;  %v2146_v52 = vsel %vm784_vm5, %v2143_v11, %v2145_v29  ;;  %v10135_v54 = vsel %vm784_vm5, %v1026_v41, %v1027_v42  ;;  %v10147_v38 = vsel %vm784_vm5, %v1027_v42, %v1029_v3  ;;  %v7447_v42 = vld [vmem:[%s11809_s2 + $0x44] sm:$0xf]  ;;  %v10355_v29 = vld [vmem:[%s9634_s8 + $0x30] sm:$0xff] }
 0x1a5   : > { %8091 = vmatmul.mubr.msk.f32.gmra.mrb[18].mxu0 %vm751_vm7, %v10100_v48  ;;  %v2150_v48 = vrot.slane %v10116_v34, 4 }
 0x1a6   : > { %8207 = vmatmul.mubr.msk.f32.gmra.mrb[2].mxu1 %vm751_vm7, %v9837_v0  ;;  %8093 = vmatprep.mubr.msk.f32.mxu0 %vm751_vm7, %v10107_v35  ;;  %v2149_v0 = vsel %vm784_vm5, %v2147_v14, %v2148_v63 }
 0x1a7   : > { %8209 = vmatprep.mubr.msk.f32.mxu1 %vm751_vm7, %v2144_v20  ;;  %v2151_v20 = vsel %vm784_vm5, %v2148_v63, %v2150_v48  ;;  %v10332_v63 = vld [vmem:[%s9634_s8 + $0x20] sm:$0xff] }
 0x1a9   : > { %8094 = vmatmul.mubr.msk.f32.gmra.mrb[20].mxu0 %vm751_vm7, %v10129_v57 }
 0x1aa   : > { %8210 = vmatmul.mubr.msk.f32.gmra.mrb[4].mxu1 %vm751_vm7, %v2146_v52  ;;  %8096 = vmatprep.mubr.msk.f32.mxu0 %vm751_vm7, %v10135_v54  ;;  %v4784_v52 = vrot.slane %v10355_v29, 6 }
 0x1ab   : > { %8212 = vmatprep.mubr.msk.f32.mxu1 %vm751_vm7, %v2149_v0  ;;  %v2388_v0 = vrot.slane %v10116_v34, 6 }
 0x1ad   : > { %8097 = vmatmul.mubr.msk.f32.gmra.mrb[22].mxu0 %vm751_vm7, %v10147_v38 }
 0x1ae   : > { %8213 = vmatmul.mubr.msk.f32.gmra.mrb[6].mxu1 %vm751_vm7, %v2151_v20  ;;  %8099 = vmatprep.mubr.msk.f32.mxu0 %vm751_vm7, %v9993_v16 }
 0x1af   : > { %8217 = vmatprep.mubr.msk.f32.mxu1 %vm751_vm7, %v9770_v33  ;;  %v2381_v33 = vrot.slane %v10064_v12, 6 }
 0x1b1   : > { %8100 = vmatmul.mubr.msk.f32.gmra.mrb[24].mxu0 %vm751_vm7, %v10008_v6 }
 0x1b2   : > { %8218 = vmatmul.mubr.msk.f32.vlgmr.msra.gmra.mrb[8].mxu1 %vm751_vm7, %v9801_v44  ;;  %8102 = vmatprep.mubr.msk.f32.mxu0 %vm751_vm7, %v10012_v25 }
 0x1b3   : > { %8220 = vmatprep.mubr.msk.f32.mxu1 %vm751_vm7, %v9812_v47  ;;  %8242 = vmatpush3.msk.msra.mxu1 %vm784_vm5, %v10019_v26  ;;  %v2385_v47 = vrot.slane %v10088_v21, 6  ;;  %v10348_v21 = vld [vmem:[%s9634_s8 + $0x70] sm:$0xff] }
 0x1b4   : > { %8475 = vmatprep.subr.msk.mxu1 %vm784_vm5, %v7447_v42  ;;  %v2931_v14 = vrot.slane %v10348_v21, 6 }
 0x1b5   : > { %8103 = vmatmul.mubr.msk.f32.gmra.mrb[26].mxu0 %vm751_vm7, %v10030_v43 }
 0x1b6   : > { %8221 = vmatmul.mubr.msk.f32.gmra.mrb[10].mxu1 %vm751_vm7, %v9829_v58  ;;  %8105 = vmatprep.mubr.msk.f32.mxu0 %vm751_vm7, %v9687_v5  ;;  %v2380_v5 = vrot.slane %v10061_v59, 6  ;;  %v2383_v59 = vrot.slane %v10083_v36, 6  ;;  %v2386_v58 = vrot.slane %v10091_v51, 6 }
 0x1b7   : > { %8223 = vmatprep.mubr.msk.f32.mxu1 %vm751_vm7, %v9840_v1 }
 0x1b8   : > { %v2382_v44 = vsel %vm702_vm6, %v2380_v5, %v2381_v33  ;;  %v2387_v1 = vsel %vm702_vm6, %v2385_v47, %v2386_v58  ;;  %v10381_v5 = vld [vmem:[%s11809_s2 + $0x48] sm:$0xf] }
 0x1b9   : > { %8106 = vmatmul.mubr.msk.f32.gmra.mrb[28].mxu0 %vm751_vm7, %v9695_v7 }
 0x1ba   : > { %8224 = vmatmul.mubr.msk.f32.gmra.mrb[12].mxu1 %vm751_vm7, %v9851_v8  ;;  %8108 = vmatprep.mubr.msk.f32.mxu0 %vm751_vm7, %v9731_v19  ;;  %v7268_v19 = vld [vmem:[%s11809_s2 + $0x24] sm:$0xf] }
 0x1bb   : > { %8226 = vmatprep.mubr.msk.f32.mxu1 %vm751_vm7, %v9857_v62 }
 0x1bd   : > { %8109 = vmatmul.mubr.msk.f32.gmra.mrb[30].mxu0 %vm751_vm7, %v9755_v27 }
 0x1be   : > { %8227 = vmatmul.mubr.msk.f32.gmra.mrb[14].mxu1 %vm751_vm7, %v9873_v22  ;;  %8113 = vmatprep.mubr.msk.f32.mxu0 %vm751_vm7, %v9888_v39 }
 0x1bf   : > { %8229 = vmatprep.mubr.msk.f32.mxu1 %vm751_vm7, %v9880_v28  ;;  %v10318_v28 = vld [vmem:[%s9634_s8 + $0x50] sm:$0xff] }
 0x1c1   : > { %8114 = vmatmul.mubr.msk.f32.vlgmr.msra.gmra.mrb[16].mxu0 %vm751_vm7, %v9910_v50 }
 0x1c2   : > { %8138 = vmatpush3.msk.msra.mxu0 %vm784_vm5, %v9624_v46  ;;  %8230 = vmatmul.mubr.msk.f32.gmra.mrb[0].mxu1 %vm751_vm7, %v9899_v31  ;;  %v2384_v46 = vsel %vm702_vm6, %v2381_v33, %v2383_v59  ;;  %v10321_v31 = vld [vmem:[%s9634_s8 + $0x10] sm:$0xff]  ;;  %v10392_v59 = vld [vmem:[%s9634_s8 + $0xc8] sm:$0xff] }
 0x1c3   : > { %8116 = vmatprep.mubr.msk.f32.mxu0 %vm751_vm7, %v9918_v4  ;;  %8232 = vmatprep.mubr.msk.f32.mxu1 %vm751_vm7, %v9905_v45  ;;  %v10324_v45 = vld [vmem:[%s9634_s8 + $0x60] sm:$0xff]  ;;  %v4779_v11 = vrot.slane %v10321_v31, 6 }
 0x1c4   : > { %8267 = vmatprep.subr.msk.mxu0 %vm784_vm5, %v7268_v19  ;;  %v2928_v48 = vrot.slane %v10324_v45, 6 }
 0x1c5   : > { %8117 = vmatmul.mubr.msk.f32.gmra.mrb[18].mxu0 %vm751_vm7, %v9934_v17 }
 0x1c6   : > { %8233 = vmatmul.mubr.msk.f32.gmra.mrb[2].mxu1 %vm751_vm7, %v9925_v13  ;;  %8119 = vmatprep.mubr.msk.f32.mxu0 %vm751_vm7, %v9640_v49  ;;  %v2389_v49 = vsel %vm702_vm6, %v2386_v58, %v2388_v0  ;;  %v10329_v13 = vld [vmem:[%s9634_s8 + $0x68] sm:$0xff]  ;;  %v2944_v58 = vrot.slane %v10392_v59, 6  ;;  %v10409_v0 = vld [vmem:[%s9634_s8 + $0xe0] sm:$0xff] }
 0x1c7   : > { %8235 = vmatprep.mubr.msk.f32.mxu1 %vm751_vm7, %v2382_v44  ;;  %v11859_v44 = vld [vmem:[#allocation8_spill] sm:$0xff] }
 0x1c9   : > { %8120 = vmatmul.mubr.msk.f32.gmra.mrb[20].mxu0 %vm751_vm7, %v9655_v55 }
 0x1ca   : > { %8236 = vmatmul.mubr.msk.f32.gmra.mrb[4].mxu1 %vm751_vm7, %v2384_v46  ;;  %8122 = vmatprep.mubr.msk.f32.mxu0 %vm751_vm7, %v9667_v61  ;;  %v10245_v61 = vld [vmem:[%s11809_s2 + $0x40] sm:$0xf]  ;;  %v10406_v46 = vld [vmem:[%s9634_s8 + $0xd0] sm:$0xff] }
 0x1cb   : > { %8238 = vmatprep.mubr.msk.f32.mxu1 %vm751_vm7, %v2387_v1  ;;  %v10412_v1 = vld [vmem:[%s9634_s8 + $0xe8] sm:$0xff] }
 0x1cd   : > { %8123 = vmatmul.mubr.msk.f32.gmra.mrb[22].mxu0 %vm751_vm7, %v9700_v9 }
 0x1ce   : > { %8239 = vmatmul.mubr.msk.f32.gmra.mrb[6].mxu1 %vm751_vm7, %v2389_v49  ;;  %8125 = vmatprep.mubr.msk.f32.mxu0 %vm751_vm7, %v9718_v15  ;;  %v11860_v49 = vld [vmem:[#allocation9_spill] sm:$0xff] }
 0x1cf   : > { %8243 = vmatprep.mubr.msk.f32.mxu1 %vm751_vm7, %v9718_v15  ;;  %v10296_v15 = vld [vmem:[%s9634_s8 + $0x48] sm:$0xff] }
 0x1d0   : > { %v2924_v8 = vrot.slane %v10296_v15, 6 }
 0x1d1   : > { %8126 = vmatmul.mubr.msk.f32.gmra.mrb[24].mxu0 %vm751_vm7, %v9737_v23 }
 0x1d2   : > { %8244 = vmatmul.mubr.msk.f32.vlgmr.msra.gmra.mrb[8].mxu1 %vm751_vm7, %v9737_v23  ;;  %8128 = vmatprep.mubr.msk.f32.mxu0 %vm751_vm7, %v9760_v30 }
 0x1d3   : > { %8246 = vmatprep.mubr.msk.f32.mxu1 %vm751_vm7, %v9760_v30  ;;  %8476 = vmatpush3.msk.msra.mxu1 %vm784_vm5, %v7447_v42  ;;  %v10303_v30 = vld [vmem:[%s9634_s8 + $0x8] sm:$0xff] }
 0x1d4   : > { %8501 = vmatprep.subr.msk.mxu1 %vm784_vm5, %v10245_v61  ;;  %v4777_v22 = vrot.slane %v10303_v30, 6 }
 0x1d5   : > { %8129 = vmatmul.mubr.msk.f32.gmra.mrb[26].mxu0 %vm751_vm7, %v9778_v40 }
 0x1d6   : > { %8247 = vmatmul.mubr.msk.f32.gmra.mrb[10].mxu1 %vm751_vm7, %v9778_v40  ;;  %8131 = vmatprep.mubr.msk.f32.mxu0 %vm751_vm7, %v9651_v53  ;;  %v4780_v60 = vsel %vm702_vm6, %v4777_v22, %v4779_v11 }
 0x1d7   : > { %8249 = vmatprep.mubr.msk.f32.mxu1 %vm751_vm7, %v9651_v53  ;;  %v7267_v53 = vld [vmem:[%s11809_s2 + $0x20] sm:$0xf] }
 0x1d9   : > { %8132 = vmatmul.mubr.msk.f32.gmra.mrb[28].mxu0 %vm751_vm7, %v9658_v56 }
 0x1da   : > { %8250 = vmatmul.mubr.msk.f32.gmra.mrb[12].mxu1 %vm751_vm7, %v9658_v56  ;;  %8134 = vmatprep.mubr.msk.f32.mxu0 %vm751_vm7, %v9678_v2 }
 0x1db   : > { %8252 = vmatprep.mubr.msk.f32.mxu1 %vm751_vm7, %v9678_v2  ;;  %v10293_v2 = vld [vmem:[%s9634_s8 + $0x40] sm:$0xff] }
 0x1dd   : > { %8135 = vmatmul.mubr.msk.f32.gmra.mrb[30].mxu0 %vm751_vm7, %v9703_v10 }
 0x1de   : > { %8253 = vmatmul.mubr.msk.f32.gmra.mrb[14].mxu1 %vm751_vm7, %v9703_v10  ;;  %8139 = vmatprep.mubr.msk.f32.mxu0 %vm751_vm7, %v10107_v35  ;;  %v4781_v35 = vrot.slane %v10332_v63, 6 }
 0x1df   : > { %8255 = vmatprep.mubr.msk.f32.mxu1 %vm751_vm7, %v9725_v18  ;;  %v10300_v18 = vld [vmem:[%s9634_s8] sm:$0xff] }
 0x1e0   : > { %v4776_v62 = vrot.slane %v10300_v18, 6 }
 0x1e1   : > { %8140 = vmatmul.mubr.msk.f32.vlgmr.msra.gmra.mrb[16].mxu0 %vm751_vm7, %v10129_v57 }
 0x1e2   : > { %8256 = vmatmul.mubr.msk.f32.gmra.mrb[0].mxu1 %vm751_vm7, %v9740_v24  ;;  %8268 = vmatpush3.msk.msra.mxu0 %vm784_vm5, %v7268_v19  ;;  %v4778_v41 = vsel %vm702_vm6, %v4776_v62, %v4777_v22  ;;  %v10389_v19 = vld [vmem:[%s9634_s8 + $0xc0] sm:$0xff]  ;;  %v2949_v62 = vrot.slane %v10412_v1, 6  ;;  %v10425_v22 = vld [vmem:[%s9634_s8 + $0xf0] sm:$0xff] }
 0x1e3   : > { %8142 = vmatprep.mubr.msk.f32.mxu0 %vm751_vm7, %v10135_v54  ;;  %8258 = vmatprep.mubr.msk.f32.mxu1 %vm751_vm7, %v9766_v32  ;;  %v2923_v32 = vrot.slane %v10293_v2, 6  ;;  %v2943_v47 = vrot.slane %v10389_v19, 6 }
 0x1e4   : > { %8293 = vmatprep.subr.msk.mxu0 %vm784_vm5, %v7267_v53 }
 0x1e5   : > { %8143 = vmatmul.mubr.msk.f32.gmra.mrb[18].mxu0 %vm751_vm7, %v10147_v38  ;;  %v2925_v26 = vsel %vm702_vm6, %v2923_v32, %v2924_v8  ;;  %v2945_v32 = vsel %vm702_vm6, %v2943_v47, %v2944_v58 }
 0x1e6   : > { %8259 = vmatmul.mubr.msk.f32.gmra.mrb[2].mxu1 %vm751_vm7, %v9781_v37  ;;  %8145 = vmatprep.mubr.msk.f32.mxu0 %vm751_vm7, %v9993_v16  ;;  %v10335_v16 = vld [vmem:[%s9634_s8 + $0x28] sm:$0xff] }
 0x1e7   : > { %8261 = vmatprep.mubr.msk.f32.mxu1 %vm751_vm7, %v10064_v12  ;;  %v2926_v12 = vrot.slane %v10318_v28, 6 }
 0x1e9   : > { %8146 = vmatmul.mubr.msk.f32.gmra.mrb[20].mxu0 %vm751_vm7, %v10008_v6 }
 0x1ea   : > { %8262 = vmatmul.mubr.msk.f32.gmra.mrb[4].mxu1 %vm751_vm7, %v10083_v36  ;;  %8148 = vmatprep.mubr.msk.f32.mxu0 %vm751_vm7, %v10012_v25  ;;  %v2929_v36 = vrot.slane %v10329_v13, 6  ;;  %v4782_v25 = vrot.slane %v10335_v16, 6 }
 0x1eb   : > { %8264 = vmatprep.mubr.msk.f32.mxu1 %vm751_vm7, %v10091_v51  ;;  %v2927_v51 = vsel %vm702_vm6, %v2924_v8, %v2926_v12  ;;  %v2948_v8 = vrot.slane %v10409_v0, 6  ;;  %v10428_v12 = vld [vmem:[%s9634_s8 + $0x100] sm:$0xff] }
 0x1ec   : > { %v2930_v54 = vsel %vm702_vm6, %v2928_v48, %v2929_v36  ;;  %v4783_v20 = vsel %vm702_vm6, %v4781_v35, %v4782_v25  ;;  %v2932_v42 = vsel %vm702_vm6, %v2929_v36, %v2931_v14  ;;  %v4785_v33 = vsel %vm702_vm6, %v4782_v25, %v4784_v52  ;;  %v10448_v14 = vld [vmem:[%s9634_s8 + $0x120] sm:$0xff] }
 0x1ed   : > { %8149 = vmatmul.mubr.msk.f32.gmra.mrb[22].mxu0 %vm751_vm7, %v10030_v43  ;;  %v2951_v48 = vrot.slane %v10425_v22, 6  ;;  %v2950_v36 = vsel %vm702_vm6, %v2948_v8, %v2949_v62  ;;  %v2953_v35 = vrot.slane %v10428_v12, 6 }
 0x1ee   : > { %8265 = vmatmul.mubr.msk.f32.gmra.mrb[6].mxu1 %vm751_vm7, %v10116_v34  ;;  %8269 = vmatprep.mubr.msk.f32.mxu0 %vm751_vm7, %v2925_v26  ;;  %v10373_v34 = vld [vmem:[%s11809_s2 + $0x28] sm:$0xf] }
 0x1ef   : > { %8477 = vmatprep.mubr.msk.f32.mxu1 %vm751_vm7, %v4778_v41  ;;  %v11862_v41 = vld [vmem:[#allocation11_spill] sm:$0xff]  ;;  %v2952_v52 = vsel %vm702_vm6, %v2949_v62, %v2951_v48  ;;  %v2884_v62 = vrot.slane %v10318_v28, 2  ;;  %v2887_v48 = vrot.slane %v10329_v13, 2 }
 0x1f1   : > { %8270 = vmatmul.mubr.msk.f32.vlgmr.msra.gmra.mrb[32].mxu0 %vm751_vm7, %v2927_v51 }
 0x1f2   : > { %8294 = vmatpush3.msk.msra.mxu0 %vm784_vm5, %v7267_v53  ;;  %8478 = vmatmul.mubr.msk.f32.vlgmr.msra.gmra.mrb[16].mxu1 %vm751_vm7, %v4780_v60  ;;  %v2946_v53 = vrot.slane %v10406_v46, 6  ;;  %v10451_v60 = vld [vmem:[%s9634_s8 + $0x128] sm:$0xff] }
 0x1f3   : > { %8272 = vmatprep.mubr.msk.f32.mxu0 %vm751_vm7, %v2930_v54  ;;  %8480 = vmatprep.mubr.msk.f32.mxu1 %vm751_vm7, %v4783_v20 }
 0x1f4   : > { %8502 = vmatpush3.msk.msra.mxu1 %vm784_vm5, %v10245_v61  ;;  %8319 = vmatprep.subr.msk.mxu0 %vm784_vm5, %v10373_v34  ;;  %v11861_v61 = vld [vmem:[#allocation10_spill] sm:$0xff]  ;;  %v2947_v11 = vsel %vm702_vm6, %v2944_v58, %v2946_v53  ;;  %v2882_v53 = vrot.slane %v10296_v15, 2 }
 0x1f5   : > { %8273 = vmatmul.mubr.msk.f32.gmra.mrb[34].mxu0 %vm751_vm7, %v2932_v42  ;;  %8527 = vmatprep.subr.msk.mxu1 %vm784_vm5, %v10381_v5 }
 0x1f6   : > { %8481 = vmatmul.mubr.msk.f32.gmra.mrb[18].mxu1 %vm751_vm7, %v4785_v33  ;;  %8275 = vmatprep.mubr.msk.f32.mxu0 %vm751_vm7, %v11859_v44  ;;  %v2959_v33 = vrot.slane %v10451_v60, 6 }
 0x1f7   : > { %8483 = vmatprep.mubr.msk.f32.mxu1 %vm751_vm7, %v2925_v26  ;;  %v10431_v26 = vld [vmem:[%s9634_s8 + $0x108] sm:$0xff] }
 0x1f8   : > { %v2954_v25 = vrot.slane %v10431_v26, 6 }
 0x1f9   : > { %8276 = vmatmul.mubr.msk.f32.gmra.mrb[36].mxu0 %vm751_vm7, %v11860_v49 }
 0x1fa   : > { %8484 = vmatmul.mubr.msk.f32.gmra.mrb[20].mxu1 %vm751_vm7, %v2927_v51  ;;  %8278 = vmatprep.mubr.msk.f32.mxu0 %vm751_vm7, %v11861_v61  ;;  %v10445_v51 = vld [vmem:[%s9634_s8 + $0x110] sm:$0xff]  ;;  %v2955_v20 = vsel %vm702_vm6, %v2953_v35, %v2954_v25  ;;  %v2889_v35 = vrot.slane %v10348_v21, 2 }
 0x1fb   : > { %8486 = vmatprep.mubr.msk.f32.mxu1 %vm751_vm7, %v2930_v54  ;;  %v2956_v54 = vrot.slane %v10445_v51, 6 }
 0x1fd   : > { %8279 = vmatmul.mubr.msk.f32.gmra.mrb[38].mxu0 %vm751_vm7, %v11862_v41  ;;  %v2957_v47 = vsel %vm702_vm6, %v2954_v25, %v2956_v54  ;;  %v2892_v54 = vrot.slane %v9888_v39, 2 }
 0x1fe   : > { %8487 = vmatmul.mubr.msk.f32.gmra.mrb[22].mxu1 %vm751_vm7, %v2932_v42  ;;  %8281 = vmatprep.mubr.msk.f32.mxu0 %vm751_vm7, %v2945_v32  ;;  %v2958_v42 = vrot.slane %v10448_v14, 6 }
 0x1ff   : > { %8489 = vmatprep.mubr.msk.f32.mxu1 %vm751_vm7, %v11859_v44  ;;  %v10465_v44 = vld [vmem:[%s9634_s8 + $0x130] sm:$0xff] }
 0x200   : > { %v2961_v58 = vrot.slane %v10465_v44, 6 }
 0x201   : > { %8282 = vmatmul.mubr.msk.f32.gmra.mrb[40].mxu0 %vm751_vm7, %v2947_v11 }
 0x202   : > { %8490 = vmatmul.mubr.msk.f32.gmra.mrb[24].mxu1 %vm751_vm7, %v11860_v49  ;;  %8284 = vmatprep.mubr.msk.f32.mxu0 %vm751_vm7, %v2950_v36  ;;  %v2960_v49 = vsel %vm702_vm6, %v2958_v42, %v2959_v33  ;;  %v2962_v8 = vsel %vm702_vm6, %v2959_v33, %v2961_v58  ;;  %v2894_v42 = vrot.slane %v9910_v50, 2  ;;  %v10520_v33 = vld [vmem:[%s11809_s2 + $0x4c] sm:$0xf] }
 0x203   : > { %8492 = vmatprep.mubr.msk.f32.mxu1 %vm751_vm7, %v11861_v61  ;;  %v2881_v61 = vrot.slane %v10293_v2, 2 }
 0x205   : > { %8285 = vmatmul.mubr.msk.f32.gmra.mrb[42].mxu0 %vm751_vm7, %v2952_v52 }
 0x206   : > { %8493 = vmatmul.mubr.msk.f32.gmra.mrb[26].mxu1 %vm751_vm7, %v11862_v41  ;;  %8287 = vmatprep.mubr.msk.f32.mxu0 %vm751_vm7, %v2955_v20  ;;  %v2886_v41 = vrot.slane %v10324_v45, 2 }
 0x207   : > { %8495 = vmatprep.mubr.msk.f32.mxu1 %vm751_vm7, %v2945_v32  ;;  %v2883_v32 = vsel %vm2880_vm8, %v2881_v61, %v2882_v53 }
 0x208   : > { %v2888_v20 = vsel %vm2880_vm8, %v2886_v41, %v2887_v48 }
 0x209   : > { %8288 = vmatmul.mubr.msk.f32.gmra.mrb[44].mxu0 %vm751_vm7, %v2957_v47  ;;  %v11864_v47 = vld [vmem:[#allocation7_spill] sm:$0xff] }
 0x20a   : > { %8496 = vmatmul.mubr.msk.f32.gmra.mrb[28].mxu1 %vm751_vm7, %v2947_v11  ;;  %8290 = vmatprep.mubr.msk.f32.mxu0 %vm751_vm7, %v2960_v49  ;;  %v10492_v11 = vsel %vm2880_vm8, %v2882_v53, %v2884_v62  ;;  %v2896_v58 = vrot.slane %v11864_v47, 2  ;;  %v2897_v49 = vrot.slane %v9918_v4, 2  ;;  %v2901_v53 = vrot.slane %v10389_v19, 2 }
 0x20b   : > { %8498 = vmatprep.mubr.msk.f32.mxu1 %vm751_vm7, %v2950_v36  ;;  %v11863_v36 = vld [vmem:[#allocation6_spill] sm:$0xff] }
 0x20c   : > { %v2891_v25 = vrot.slane %v11863_v36, 2  ;;  %v2898_v61 = vsel %vm2880_vm8, %v2896_v58, %v2897_v49  ;;  %v2912_v58 = vrot.slane %v10431_v26, 2  ;;  %v2916_v26 = vrot.slane %v10448_v14, 2 }
 0x20d   : > { %8291 = vmatmul.mubr.msk.f32.gmra.mrb[46].mxu0 %vm751_vm7, %v2962_v8  ;;  %v2902_v8 = vrot.slane %v10392_v59, 2 }
 0x20e   : > { %8499 = vmatmul.mubr.msk.f32.gmra.mrb[30].mxu1 %vm751_vm7, %v2952_v52  ;;  %8295 = vmatprep.mubr.msk.f32.mxu0 %vm751_vm7, %v2883_v32  ;;  %v10505_v52 = vld [vmem:[%s11809_s2 + $0x2c] sm:$0xf] }
 0x20f   : > { %8503 = vmatprep.mubr.msk.f32.mxu1 %vm751_vm7, %v10300_v18  ;;  %v10514_v18 = vsel %vm2880_vm8, %v2887_v48, %v2889_v35  ;;  %v2903_v41 = vsel %vm2880_vm8, %v2901_v53, %v2902_v8  ;;  %v2906_v48 = vrot.slane %v10409_v0, 2  ;;  %v5186_v53 = vrot.slane %v10303_v30, 4 }
 0x211   : > { %8296 = vmatmul.mubr.msk.f32.vlgmr.msra.gmra.mrb[32].mxu0 %vm751_vm7, %v10492_v11 }
 0x212   : > { %8320 = vmatpush3.msk.msra.mxu0 %vm784_vm5, %v10373_v34  ;;  %8504 = vmatmul.mubr.msk.f32.vlgmr.msra.gmra.mrb[16].mxu1 %vm751_vm7, %v10303_v30  ;;  %v2893_v34 = vsel %vm2880_vm8, %v2891_v25, %v2892_v54  ;;  %v2907_v25 = vrot.slane %v10412_v1, 2 }
 0x213   : > { %8298 = vmatprep.mubr.msk.f32.mxu0 %vm751_vm7, %v2888_v20  ;;  %8506 = vmatprep.mubr.msk.f32.mxu1 %vm751_vm7, %v10332_v63  ;;  %v10542_v63 = vsel %vm2880_vm8, %v2892_v54, %v2894_v42 }
 0x214   : > { %8528 = vmatpush3.msk.msra.mxu1 %vm784_vm5, %v10381_v5  ;;  %8345 = vmatprep.subr.msk.mxu0 %vm784_vm5, %v10505_v52  ;;  %v2899_v5 = vrot.slane %v9934_v17, 2  ;;  %v2908_v20 = vsel %vm2880_vm8, %v2906_v48, %v2907_v25 }
 0x215   : > { %8299 = vmatmul.mubr.msk.f32.gmra.mrb[34].mxu0 %vm751_vm7, %v10514_v18  ;;  %8553 = vmatprep.subr.msk.mxu1 %vm784_vm5, %v10520_v33 }
 0x216   : > { %8507 = vmatmul.mubr.msk.f32.gmra.mrb[18].mxu1 %vm751_vm7, %v10335_v16  ;;  %8301 = vmatprep.mubr.msk.f32.mxu0 %vm751_vm7, %v2893_v34  ;;  %v10558_v32 = vsel %vm2880_vm8, %v2897_v49, %v2899_v5  ;;  %v2911_v34 = vrot.slane %v10428_v12, 2 }
 0x217   : > { %8509 = vmatprep.mubr.msk.f32.mxu1 %vm751_vm7, %v10293_v2  ;;  %v2904_v2 = vrot.slane %v10406_v46, 2 }
 0x218   : > { %v2913_v12 = vsel %vm2880_vm8, %v2911_v34, %v2912_v58  ;;  %v4690_v34 = vld [vmem:[%s9634_s8 + $0x38] sm:$0xf] }
 0x219   : > { %8302 = vmatmul.mubr.msk.f32.gmra.mrb[36].mxu0 %vm751_vm7, %v10542_v63  ;;  %v10574_v54 = vsel %vm2880_vm8, %v2902_v8, %v2904_v2  ;;  %v4686_v8 = vld [vmem:[%s9634_s8 + $0x18] sm:$0xf] }
 0x21a   : > { %8510 = vmatmul.mubr.msk.f32.gmra.mrb[20].mxu1 %vm751_vm7, %v10296_v15  ;;  %8304 = vmatprep.mubr.msk.f32.mxu0 %vm751_vm7, %v2898_v61  ;;  %v2917_v61 = vrot.slane %v10451_v60, 2  ;;  %v7204_v60 = vld [vmem:[%s9634_s8 + $0x58] sm:$0xf]  ;;  %v5189_v30 = vrot.slane %v4686_v8, 4 }
 0x21b   : > { %8512 = vmatprep.mubr.msk.f32.mxu1 %vm751_vm7, %v10324_v45  ;;  %v2909_v45 = vrot.slane %v10425_v22, 2 }
 0x21c   : > { %v2918_v14 = vsel %vm2880_vm8, %v2916_v26, %v2917_v61 }
 0x21d   : > { %8305 = vmatmul.mubr.msk.f32.gmra.mrb[38].mxu0 %vm751_vm7, %v10558_v32  ;;  %v10590_v49 = vsel %vm2880_vm8, %v2907_v25, %v2909_v45  ;;  %v5191_v25 = vrot.slane %v10335_v16, 4 }
 0x21e   : > { %8513 = vmatmul.mubr.msk.f32.gmra.mrb[22].mxu1 %vm751_vm7, %v10329_v13  ;;  %8307 = vmatprep.mubr.msk.f32.mxu0 %vm751_vm7, %v2903_v41  ;;  %v3333_v41 = vrot.slane %v7204_v60, 2  ;;  %v4694_v60 = vld [vmem:[%s9634_s8 + $0x58] sm:$0xf] }
 0x21f   : > { %8515 = vmatprep.mubr.msk.f32.mxu1 %vm751_vm7, %v11863_v36  ;;  %v2914_v36 = vrot.slane %v10445_v51, 2 }
 0x221   : > { %8308 = vmatmul.mubr.msk.f32.gmra.mrb[40].mxu0 %vm751_vm7, %v10574_v54 }
 0x222   : > { %8516 = vmatmul.mubr.msk.f32.gmra.mrb[24].mxu1 %vm751_vm7, %v9888_v39  ;;  %8310 = vmatprep.mubr.msk.f32.mxu0 %vm751_vm7, %v2908_v20  ;;  %v10606_v39 = vsel %vm2880_vm8, %v2912_v58, %v2914_v36  ;;  %v5192_v20 = vrot.slane %v10355_v29, 4  ;;  %v5194_v29 = vrot.slane %v4690_v34, 4 }
 0x223   : > { %8518 = vmatprep.mubr.msk.f32.mxu1 %vm751_vm7, %v11864_v47  ;;  %v2919_v47 = vrot.slane %v10465_v44, 2  ;;  %v9071_v44 = vld [vmem:[%s9634_s8 + $0xe8] sm:$0xff] }
 0x224   : > { %v5193_v26 = vsel %vm784_vm5, %v5191_v25, %v5192_v20  ;;  %v7220_v25 = vld [vmem:[%s9634_s8 + $0xd8] sm:$0xf] }
 0x225   : > { %8311 = vmatmul.mubr.msk.f32.gmra.mrb[42].mxu0 %vm751_vm7, %v10590_v49 }
 0x226   : > { %8519 = vmatmul.mubr.msk.f32.gmra.mrb[26].mxu1 %vm751_vm7, %v9918_v4  ;;  %8313 = vmatprep.mubr.msk.f32.mxu0 %vm751_vm7, %v2913_v12  ;;  %v5187_v4 = vrot.slane %v10321_v31, 4  ;;  %v7208_v31 = vld [vmem:[%s9634_s8 + $0x78] sm:$0xf] }
 0x227   : > { %8521 = vmatprep.mubr.msk.f32.mxu1 %vm751_vm7, %v10389_v19  ;;  %v10624_v19 = vsel %vm2880_vm8, %v2917_v61, %v2919_v47  ;;  %v3335_v58 = vrot.slane %v7208_v31, 2  ;;  %v7212_v12 = vld [vmem:[%s9634_s8 + $0x98] sm:$0xf]  ;;  %v5196_v61 = vrot.slane %v10296_v15, 4 }
 0x228   : > { %v5188_v48 = vsel %vm784_vm5, %v5186_v53, %v5187_v4  ;;  %v5190_v16 = vsel %vm784_vm5, %v5187_v4, %v5189_v30  ;;  %v5195_v53 = vsel %vm784_vm5, %v5192_v20, %v5194_v29  ;;  %v7216_v4 = vld [vmem:[%s9634_s8 + $0xb8] sm:$0xf]  ;;  %v5202_v30 = vrot.slane %v10348_v21, 4 }
 0x229   : > { %8314 = vmatmul.mubr.msk.f32.gmra.mrb[44].mxu0 %vm751_vm7, %v10606_v39  ;;  %v3336_v15 = vsel %vm2880_vm8, %v2889_v35, %v3335_v58  ;;  %v3339_v21 = vrot.slane %v7216_v4, 2 }
 0x22a   : > { %8522 = vmatmul.mubr.msk.f32.gmra.mrb[28].mxu1 %vm751_vm7, %v10392_v59  ;;  %8316 = vmatprep.mubr.msk.f32.mxu0 %vm751_vm7, %v2918_v14  ;;  %v5197_v14 = vrot.slane %v10318_v28, 4  ;;  %v10664_v28 = vld [vmem:[%s11809_s2 + $0x50] sm:$0xf] }
 0x22b   : > { %8524 = vmatprep.mubr.msk.f32.mxu1 %vm751_vm7, %v10409_v0  ;;  %v3334_v0 = vsel %vm2880_vm8, %v2884_v62, %v3333_v41  ;;  %v10653_v62 = vld [vmem:[%s11809_s2 + $0x30] sm:$0xf]  ;;  %v5201_v41 = vrot.slane %v10329_v13, 4 }
 0x22c   : > { %v5198_v35 = vsel %vm784_vm5, %v5196_v61, %v5197_v14  ;;  %v4706_v61 = vld [vmem:[%s9634_s8 + $0xb8] sm:$0xf] }
 0x22d   : > { %8317 = vmatmul.mubr.msk.f32.gmra.mrb[46].mxu0 %vm751_vm7, %v10624_v19  ;;  %v5203_v34 = vsel %vm784_vm5, %v5201_v41, %v5202_v30  ;;  %v4710_v41 = vld [vmem:[%s9634_s8 + $0xd8] sm:$0xf] }
 0x22e   : > { %8525 = vmatmul.mubr.msk.f32.gmra.mrb[30].mxu1 %vm751_vm7, %v10412_v1  ;;  %8321 = vmatprep.mubr.msk.f32.mxu0 %vm751_vm7, %v10492_v11  ;;  %v3337_v11 = vrot.slane %v7212_v12, 2  ;;  %v7224_v12 = vld [vmem:[%s9634_s8 + $0xf8] sm:$0xf] }
 0x22f   : > { %8529 = vmatprep.mubr.msk.f32.mxu1 %vm751_vm7, %v5188_v48 }
 0x230   : > { %v3338_v13 = vsel %vm2880_vm8, %v2894_v42, %v3337_v11  ;;  %v3340_v42 = vsel %vm2880_vm8, %v2899_v5, %v3339_v21  ;;  %v7232_v21 = vld [vmem:[%s9634_s8 + $0x138] sm:$0xf] }
 0x231   : > { %8322 = vmatmul.mubr.msk.f32.vlgmr.msra.gmra.mrb[32].mxu0 %vm751_vm7, %v3334_v0  ;;  %v4702_v0 = vld [vmem:[%s9634_s8 + $0x98] sm:$0xf] }
 0x232   : > { %8346 = vmatpush3.msk.msra.mxu0 %vm784_vm5, %v10505_v52  ;;  %8530 = vmatmul.mubr.msk.f32.vlgmr.msra.gmra.mrb[16].mxu1 %vm751_vm7, %v5190_v16  ;;  %v5199_v52 = vrot.slane %v4694_v60, 4  ;;  %v5209_v29 = vrot.slane %v4702_v0, 4  ;;  %v11871_v60 = vld [vmem:[#allocation12_spill] sm:$0xff]  ;;  %v3347_v0 = vrot.slane %v7232_v21, 2  ;;  %v10818_v21 = vld [vmem:[%s11809_s2 + $0x34] sm:$0xf] }
 0x233   : > { %8324 = vmatprep.mubr.msk.f32.mxu0 %vm751_vm7, %v10514_v18  ;;  %8532 = vmatprep.mubr.msk.f32.mxu1 %vm751_vm7, %v5193_v26  ;;  %v4698_v18 = vld [vmem:[%s9634_s8 + $0x78] sm:$0xf] }
 0x234   : > { %v10671_v8 = vpop.f32.mrb[0].mxu0  ;;  %8554 = vmatpush3.msk.msra.mxu1 %vm784_vm5, %v10520_v33  ;;  %8371 = vmatprep.subr.msk.mxu0 %vm784_vm5, %v10653_v62  ;;  %v5200_v33 = vsel %vm784_vm5, %v5197_v14, %v5199_v52  ;;  %v5204_v48 = vrot.slane %v4698_v18, 4  ;;  %v7228_v52 = vld [vmem:[%s9634_s8 + $0x118] sm:$0xf]  ;;  %v11875_v18 = vld [vmem:[#allocation13_spill] sm:$0xff] }
 0x235   : > { %11865 = vst [vmem:[#allocation8_spill] sm:$0xff] %v10671_v8  ;;  %v10681_v31 = vpop.f32.mrb[1].mxu0  ;;  %8325 = vmatmul.mubr.msk.f32.gmra.mrb[34].mxu0 %vm751_vm7, %v3336_v15  ;;  %8579 = vmatprep.subr.msk.mxu1 %vm784_vm5, %v10664_v28  ;;  %v11872_v15 = vrot.slane %v9910_v50, 4 }
 0x236   : > { %11866 = vst [vmem:[#allocation9_spill] sm:$0xff] %v10681_v31  ;;  %8533 = vmatmul.mubr.msk.f32.gmra.mrb[18].mxu1 %vm751_vm7, %v5195_v53  ;;  %8327 = vmatprep.mubr.msk.f32.mxu0 %vm751_vm7, %v10542_v63  ;;  %v3341_v63 = vrot.slane %v7220_v25, 2  ;;  %v5205_v16 = vsel %vm784_vm5, %v5202_v30, %v5204_v48  ;;  %v5214_v53 = vrot.slane %v4706_v61, 4  ;;  %v3345_v30 = vrot.slane %v7228_v52, 2  ;;  %v4714_v25 = vld [vmem:[%s9634_s8 + $0xf8] sm:$0xf] }
 0x237   : > { %8535 = vmatprep.mubr.msk.f32.mxu1 %vm751_vm7, %v5198_v35  ;;  %v5210_v11 = vsel %vm784_vm5, %v11872_v15, %v5209_v29  ;;  %v5216_v35 = vrot.slane %v10392_v59, 4  ;;  %v11876_v59 = vrot.slane %v9934_v17, 4  ;;  %v5221_v48 = vrot.slane %v10412_v1, 4  ;;  %v10781_v61 = vld [vmem:[%s9634_s8 + $0xd0] sm:$0xff] }
 0x238   : > { %v10695_v20 = vpop.f32.mrb[2].mxu0  ;;  %v3342_v5 = vsel %vm2880_vm8, %v2904_v2, %v3341_v63  ;;  %v3346_v17 = vsel %vm2880_vm8, %v2914_v36, %v3345_v30  ;;  %v3348_v36 = vsel %vm2880_vm8, %v2919_v47, %v3347_v0  ;;  %v9074_v30 = vld [vmem:[%s9634_s8 + $0x108] sm:$0xff] }
 0x239   : > { %11867 = vst [vmem:[#allocation10_spill] sm:$0xff] %v10695_v20  ;;  %v10699_v58 = vpop.f32.mrb[3].mxu0  ;;  %8328 = vmatmul.mubr.msk.f32.gmra.mrb[36].mxu0 %vm751_vm7, %v3338_v13  ;;  %v5219_v13 = vrot.slane %v4710_v41, 4  ;;  %v9073_v41 = vld [vmem:[%s9634_s8 + $0x100] sm:$0xff] }
 0x23a   : > { %11868 = vst [vmem:[#allocation11_spill] sm:$0xff] %v10699_v58  ;;  %8536 = vmatmul.mubr.msk.f32.gmra.mrb[20].mxu1 %vm751_vm7, %v5200_v33  ;;  %8330 = vmatprep.mubr.msk.f32.mxu0 %vm751_vm7, %v10558_v32  ;;  %v3343_v32 = vrot.slane %v7224_v12, 2 }
 0x23b   : > { %8538 = vmatprep.mubr.msk.f32.mxu1 %vm751_vm7, %v5203_v34 }
 0x23c   : > { %v10711_v26 = vpop.f32.mrb[4].mxu0  ;;  %v3344_v50 = vsel %vm2880_vm8, %v2909_v45, %v3343_v32  ;;  %v5222_v45 = vrot.slane %v10425_v22, 4  ;;  %v5224_v22 = vrot.slane %v4714_v25, 4  ;;  %v10835_v25 = vld [vmem:[%s11809_s2 + $0x54] sm:$0xf] }
 0x23d   : > { %11869 = vst [vmem:[#allocation6_spill] sm:$0xff] %v10711_v26  ;;  %v10714_v14 = vpop.f32.mrb[5].mxu0  ;;  %8331 = vmatmul.mubr.msk.f32.gmra.mrb[38].mxu0 %vm751_vm7, %v3340_v42  ;;  %v9067_v42 = vld [vmem:[%s9634_s8 + $0xc0] sm:$0xff] }
 0x23e   : > { %11870 = vst [vmem:[#allocation7_spill] sm:$0xff] %v10714_v14  ;;  %8539 = vmatmul.mubr.msk.f32.gmra.mrb[22].mxu1 %vm751_vm7, %v5205_v16  ;;  %8333 = vmatprep.mubr.msk.f32.mxu0 %vm751_vm7, %v10574_v54  ;;  %v5217_v54 = vrot.slane %v10406_v46, 4  ;;  %v5215_v46 = vsel %vm784_vm5, %v11876_v59, %v5214_v53  ;;  %v3531_v63 = vrot.slane %v9067_v42, 2  ;;  %v9068_v16 = vld [vmem:[%s9634_s8 + $0xc8] sm:$0xff]  ;;  %v5225_v32 = vsel %vm784_vm5, %v5222_v45, %v5224_v22 }
 0x23f   : > { %8541 = vmatprep.mubr.msk.f32.mxu1 %vm751_vm7, %v11871_v60  ;;  %v3532_v29 = vrot.slane %v9068_v16, 2  ;;  %v3537_v53 = vrot.slane %v9071_v44, 2 }
 0x240   : > { %v10729_v4 = vpop.f32.mrb[6].mxu0  ;;  %v5220_v1 = vsel %vm784_vm5, %v5217_v54, %v5219_v13 }
 0x241   : > { %11873 = vst [vmem:[#allocation12_spill] sm:$0xff] %v10729_v4  ;;  %v10734_v2 = vpop.f32.mrb[7].mxu0  ;;  %8334 = vmatmul.mubr.msk.f32.gmra.mrb[40].mxu0 %vm751_vm7, %v3342_v5  ;;  %v3534_v5 = vrot.slane %v10781_v61, 2  ;;  %v3533_v60 = vsel %vm2880_vm8, %v3531_v63, %v3532_v29  ;;  %v10972_v61 = vld [vmem:[%s11809_s2 + $0x58] sm:$0xf] }
 0x242   : > { %11874 = vst [vmem:[#allocation14_spill] sm:$0xff] %v10734_v2  ;;  %8542 = vmatmul.mubr.msk.f32.gmra.mrb[24].mxu1 %vm751_vm7, %v5210_v11  ;;  %8336 = vmatprep.mubr.msk.f32.mxu0 %vm751_vm7, %v10590_v49  ;;  %v5218_v49 = vsel %vm784_vm5, %v5216_v35, %v5217_v54  ;;  %v10802_v35 = vld [vmem:[%s9634_s8 + $0xf0] sm:$0xff] }
 0x243   : > { %8544 = vmatprep.mubr.msk.f32.mxu1 %vm751_vm7, %v11875_v18  ;;  %v10799_v52 = vsel %vm2880_vm8, %v3532_v29, %v3534_v5  ;;  %v3539_v54 = vrot.slane %v10802_v35, 2  ;;  %v3542_v18 = vrot.slane %v9074_v30, 2  ;;  %v9079_v29 = vld [vmem:[%s9634_s8 + $0x140] sm:$0xff] }
 0x244   : > { %v10749_v33 = vpop.f32.mrb[8].mxu0 }
 0x245   : > { %11877 = vst [vmem:[#allocation13_spill] sm:$0xff] %v10749_v33  ;;  %v10755_v34 = vpop.f32.mrb[9].mxu0  ;;  %8337 = vmatmul.mubr.msk.f32.gmra.mrb[42].mxu0 %vm751_vm7, %v3344_v50  ;;  %v3541_v50 = vrot.slane %v9073_v41, 2 }
 0x246   : > { %11878 = vst [vmem:[#allocation15_spill] sm:$0xff] %v10755_v34  ;;  %8545 = vmatmul.mubr.msk.f32.gmra.mrb[26].mxu1 %vm751_vm7, %v5215_v46  ;;  %8339 = vmatprep.mubr.msk.f32.mxu0 %vm751_vm7, %v10606_v39  ;;  %v5223_v39 = vsel %vm784_vm5, %v5221_v48, %v5222_v45  ;;  %v10829_v48 = vld [vmem:[%s9634_s8 + $0x110] sm:$0xff] }
 0x247   : > { %8547 = vmatprep.mubr.msk.f32.mxu1 %vm751_vm7, %v5218_v49  ;;  %v10826_v49 = vsel %vm2880_vm8, %v3537_v53, %v3539_v54  ;;  %v3544_v45 = vrot.slane %v10829_v48, 2 }
 0x248   : > { %v10768_v12 = vpop.f32.mrb[10].mxu0 }
 0x249   : > { %11879 = vst [vmem:[#allocation16_spill] sm:$0xff] %v10768_v12  ;;  %v10771_v51 = vpop.f32.mrb[11].mxu0  ;;  %8340 = vmatmul.mubr.msk.f32.gmra.mrb[44].mxu0 %vm751_vm7, %v3346_v17  ;;  %v9076_v17 = vld [vmem:[%s9634_s8 + $0x120] sm:$0xff] }
 0x24a   : > { %11880 = vst [vmem:[#allocation17_spill] sm:$0xff] %v10771_v51  ;;  %8548 = vmatmul.mubr.msk.f32.gmra.mrb[28].mxu1 %vm751_vm7, %v5220_v1  ;;  %8342 = vmatprep.mubr.msk.f32.mxu0 %vm751_vm7, %v10624_v19  ;;  %v9070_v19 = vld [vmem:[%s9634_s8 + $0xe0] sm:$0xff]  ;;  %v3546_v0 = vrot.slane %v9076_v17, 2  ;;  %v9077_v1 = vld [vmem:[%s9634_s8 + $0x128] sm:$0xff] }
 0x24b   : > { %8550 = vmatprep.mubr.msk.f32.mxu1 %vm751_vm7, %v5223_v39  ;;  %v3536_v11 = vrot.slane %v9070_v19, 2  ;;  %v3547_v22 = vrot.slane %v9077_v1, 2  ;;  %v3551_v39 = vrot.slane %v9079_v29, 2 }
 0x24c   : > { %v10787_v15 = vpop.f32.mrb[12].mxu0 }
 0x24d   : > { %11881 = vst [vmem:[#allocation18_spill] sm:$0xff] %v10787_v15  ;;  %v10791_v47 = vpop.f32.mrb[13].mxu0  ;;  %8343 = vmatmul.mubr.msk.f32.gmra.mrb[46].mxu0 %vm751_vm7, %v3348_v36  ;;  %v3538_v46 = vsel %vm2880_vm8, %v3536_v11, %v3537_v53  ;;  %v9080_v36 = vld [vmem:[%s9634_s8 + $0x148] sm:$0xff]  ;;  %v9082_v53 = vld [vmem:[%s9634_s8 + $0x160] sm:$0xff] }
 0x24e   : > { %11882 = vst [vmem:[#allocation19_spill] sm:$0xff] %v10791_v47  ;;  %8551 = vmatmul.mubr.msk.f32.gmra.mrb[30].mxu1 %vm751_vm7, %v5225_v32  ;;  %8347 = vmatprep.mubr.msk.f32.mxu0 %vm751_vm7, %v3533_v60  ;;  %v3552_v32 = vrot.slane %v9080_v36, 2  ;;  %v11312_v15 = vld [vmem:[%s9634_s8 + $0x268] sm:$0xff] }
 0x24f   : > { %8555 = vmatprep.mubr.msk.f32.mxu1 %vm751_vm7, %v9067_v42  ;;  %v10855_v42 = vsel %vm2880_vm8, %v3542_v18, %v3544_v45 }
 0x250   : > { %v10808_v59 = vpop.f32.mrb[14].mxu0 }
 0x251   : > { %11883 = vst [vmem:[#allocation20_spill] sm:$0xff] %v10808_v59  ;;  %v10811_v13 = vpop.f32.mrb[15].mxu0  ;;  %8348 = vmatmul.mubr.msk.f32.vlgmr.msra.gmra.mrb[32].mxu0 %vm751_vm7, %v10799_v52 }
 0x252   : > { %11884 = vst [vmem:[#allocation21_spill] sm:$0xff] %v10811_v13  ;;  %8372 = vmatpush3.msk.msra.mxu0 %vm784_vm5, %v10653_v62  ;;  %8556 = vmatmul.mubr.msk.f32.vlgmr.msra.gmra.mrb[16].mxu1 %vm751_vm7, %v9068_v16  ;;  %v3543_v62 = vsel %vm2880_vm8, %v3541_v50, %v3542_v18  ;;  %v3548_v16 = vsel %vm2880_vm8, %v3546_v0, %v3547_v22  ;;  %v9083_v50 = vld [vmem:[%s9634_s8 + $0x168] sm:$0xff]  ;;  %v9085_v0 = vld [vmem:[%s9634_s8 + $0x180] sm:$0xff] }
 0x253   : > { %8350 = vmatprep.mubr.msk.f32.mxu0 %vm751_vm7, %v3538_v46  ;;  %8558 = vmatprep.mubr.msk.f32.mxu1 %vm751_vm7, %v9070_v19  ;;  %v10875_v19 = vld [vmem:[%s9634_s8 + $0x150] sm:$0xff] }
 0x254   : > { %8580 = vmatpush3.msk.msra.mxu1 %vm784_vm5, %v10664_v28  ;;  %8397 = vmatprep.subr.msk.mxu0 %vm784_vm5, %v10818_v21  ;;  %v10858_v28 = vld [vmem:[%s9634_s8 + $0x130] sm:$0xff]  ;;  %v11838_v11 = vrot.slane %v10875_v19, 2 }
 0x255   : > { %8351 = vmatmul.mubr.msk.f32.gmra.mrb[34].mxu0 %vm751_vm7, %v10826_v49  ;;  %8605 = vmatprep.subr.msk.mxu1 %vm784_vm5, %v10835_v25  ;;  %v11839_v63 = vrot.slane %v10858_v28, 2  ;;  %v10892_v46 = vld [vmem:[%s9634_s8 + $0x170] sm:$0xff]  ;;  %v11887_v48 = vrot.slane %v10858_v28, 2  ;;  %v11889_v28 = vrot.slane %v10875_v19, 2 }
 0x256   : > { %8559 = vmatmul.mubr.msk.f32.gmra.mrb[18].mxu1 %vm751_vm7, %v9071_v44  ;;  %8353 = vmatprep.mubr.msk.f32.mxu0 %vm751_vm7, %v3543_v62  ;;  %v3553_v44 = vsel %vm2880_vm8, %v3551_v39, %v3552_v32  ;;  %v10889_v18 = vsel %vm2880_vm8, %v3552_v32, %v11838_v11  ;;  %v11840_v62 = vrot.slane %v10892_v46, 2  ;;  %v11891_v19 = vrot.slane %v10892_v46, 2  ;;  %v11893_v46 = vld [vmem:[#allocation4_spill] sm:$0xff] }
 0x257   : > { %8561 = vmatprep.mubr.msk.f32.mxu1 %vm751_vm7, %v9073_v41  ;;  %v10872_v60 = vsel %vm2880_vm8, %v3547_v22, %v11839_v63  ;;  %v3556_v41 = vrot.slane %v9082_v53, 2  ;;  %v3561_v22 = vrot.slane %v9085_v0, 2  ;;  %v9089_v63 = vld [vmem:[%s9634_s8 + $0x1a8] sm:$0xff] }
 0x259   : > { %8354 = vmatmul.mubr.msk.f32.gmra.mrb[36].mxu0 %vm751_vm7, %v10855_v42 }
 0x25a   : > { %8562 = vmatmul.mubr.msk.f32.gmra.mrb[20].mxu1 %vm751_vm7, %v9074_v30  ;;  %8356 = vmatprep.mubr.msk.f32.mxu0 %vm751_vm7, %v3548_v16  ;;  %v3557_v30 = vrot.slane %v9083_v50, 2 }
 0x25b   : > { %8564 = vmatprep.mubr.msk.f32.mxu1 %vm751_vm7, %v9076_v17 }
 0x25c   : > { %v3558_v17 = vsel %vm2880_vm8, %v3556_v41, %v3557_v30  ;;  %v10906_v39 = vsel %vm2880_vm8, %v3557_v30, %v11840_v62  ;;  %v9088_v41 = vld [vmem:[%s9634_s8 + $0x1a0] sm:$0xff]  ;;  %v6957_v62 = vld [vmem:[%s9634_s8 + $0xd8] sm:$0xf] }
 0x25d   : > { %8357 = vmatmul.mubr.msk.f32.gmra.mrb[38].mxu0 %vm751_vm7, %v10872_v60  ;;  %v3566_v11 = vrot.slane %v9088_v41, 2 }
 0x25e   : > { %8565 = vmatmul.mubr.msk.f32.gmra.mrb[22].mxu1 %vm751_vm7, %v9077_v1  ;;  %8359 = vmatprep.mubr.msk.f32.mxu0 %vm751_vm7, %v3553_v44  ;;  %v9086_v1 = vld [vmem:[%s9634_s8 + $0x188] sm:$0xff] }
 0x25f   : > { %8567 = vmatprep.mubr.msk.f32.mxu1 %vm751_vm7, %v9079_v29  ;;  %v3562_v16 = vrot.slane %v9086_v1, 2  ;;  %v10909_v29 = vld [vmem:[%s9634_s8 + $0x190] sm:$0xff] }
 0x260   : > { %v3564_v32 = vrot.slane %v10909_v29, 2  ;;  %v11065_v29 = vld [vmem:[%s9634_s8 + $0x160] sm:$0xff] }
 0x261   : > { %8360 = vmatmul.mubr.msk.f32.gmra.mrb[40].mxu0 %vm751_vm7, %v10889_v18  ;;  %v3563_v44 = vsel %vm2880_vm8, %v3561_v22, %v3562_v16 }
 0x262   : > { %8568 = vmatmul.mubr.msk.f32.gmra.mrb[24].mxu1 %vm751_vm7, %v9080_v36  ;;  %8362 = vmatprep.mubr.msk.f32.mxu0 %vm751_vm7, %v3558_v17  ;;  %v3567_v36 = vrot.slane %v9089_v63, 2  ;;  %v10923_v30 = vsel %vm2880_vm8, %v3562_v16, %v3564_v32  ;;  %v3777_v16 = vrot.slane %v6957_v62, 2 }
 0x263   : > { %8570 = vmatprep.mubr.msk.f32.mxu1 %vm751_vm7, %v9082_v53  ;;  %v10926_v53 = vld [vmem:[%s9634_s8 + $0x1b0] sm:$0xff] }
 0x264   : > { %v3569_v17 = vrot.slane %v10926_v53, 2  ;;  %v3568_v22 = vsel %vm2880_vm8, %v3566_v11, %v3567_v36  ;;  %v3778_v11 = vsel %vm2880_vm8, %v3534_v5, %v3777_v16  ;;  %v6977_v16 = vld [vmem:[%s9634_s8 + $0x178] sm:$0xf]  ;;  %v4004_v53 = vrot.slane %v11065_v29, 2 }
 0x265   : > { %8363 = vmatmul.mubr.msk.f32.gmra.mrb[42].mxu0 %vm751_vm7, %v10906_v39 }
 0x266   : > { %8571 = vmatmul.mubr.msk.f32.gmra.mrb[26].mxu1 %vm751_vm7, %v9083_v50  ;;  %8365 = vmatprep.mubr.msk.f32.mxu0 %vm751_vm7, %v3563_v44  ;;  %v10939_v50 = vsel %vm2880_vm8, %v3567_v36, %v3569_v17  ;;  %v6961_v44 = vld [vmem:[%s9634_s8 + $0xf8] sm:$0xf] }
 0x267   : > { %8573 = vmatprep.mubr.msk.f32.mxu1 %vm751_vm7, %v9085_v0  ;;  %v5606_v0 = vrot.slane %v6957_v62, 4  ;;  %v11885_v62 = vrot.slane %v9655_v55, 4  ;;  %v5608_v36 = vrot.slane %v6961_v44, 4 }
 0x269   : > { %8366 = vmatmul.mubr.msk.f32.gmra.mrb[44].mxu0 %vm751_vm7, %v10923_v30  ;;  %v5609_v5 = vsel %vm784_vm5, %v1029_v3, %v5608_v36  ;;  %v11041_v36 = vld [vmem:[%s9634_s8 + $0x140] sm:$0xff] }
 0x26a   : > { %8574 = vmatmul.mubr.msk.f32.gmra.mrb[28].mxu1 %vm751_vm7, %v9086_v1  ;;  %8368 = vmatprep.mubr.msk.f32.mxu0 %vm751_vm7, %v3568_v22  ;;  %v3779_v1 = vrot.slane %v6961_v44, 2  ;;  %v6965_v22 = vld [vmem:[%s9634_s8 + $0x118] sm:$0xf]  ;;  %v5616_v44 = vrot.slane %v6977_v16, 4 }
 0x26b   : > { %8576 = vmatprep.mubr.msk.f32.mxu1 %vm751_vm7, %v9088_v41  ;;  %v5607_v41 = vsel %vm784_vm5, %v11885_v62, %v5606_v0  ;;  %v5610_v35 = vrot.slane %v6965_v22, 4 }
 0x26c   : > { %v3780_v55 = vsel %vm2880_vm8, %v3539_v54, %v3779_v1 }
 0x26d   : > { %8369 = vmatmul.mubr.msk.f32.gmra.mrb[46].mxu0 %vm751_vm7, %v10939_v50 }
 0x26e   : > { %8577 = vmatmul.mubr.msk.f32.gmra.mrb[30].mxu1 %vm751_vm7, %v9089_v63  ;;  %8373 = vmatprep.mubr.msk.f32.mxu0 %vm751_vm7, %v10799_v52  ;;  %v10961_v52 = vld [vmem:[%s11809_s2 + $0x38] sm:$0xf] }
 0x26f   : > { %8581 = vmatprep.mubr.msk.f32.mxu1 %vm751_vm7, %v10129_v57  ;;  %v3781_v57 = vrot.slane %v6965_v22, 2  ;;  %v11894_v22 = vrot.slane %v9740_v24, 4 }
 0x271   : > { %8374 = vmatmul.mubr.msk.f32.vlgmr.msra.gmra.mrb[32].mxu0 %vm751_vm7, %v3778_v11  ;;  %v3782_v9 = vsel %vm2880_vm8, %v3544_v45, %v3781_v57  ;;  %v6981_v11 = vld [vmem:[%s9634_s8 + $0x198] sm:$0xf] }
 0x272   : > { %8398 = vmatpush3.msk.msra.mxu0 %vm784_vm5, %v10818_v21  ;;  %8582 = vmatmul.mubr.msk.f32.vlgmr.msra.gmra.mrb[16].mxu1 %vm751_vm7, %v5607_v41  ;;  %v6969_v21 = vld [vmem:[%s9634_s8 + $0x138] sm:$0xf]  ;;  %v3789_v1 = vrot.slane %v6981_v11, 2  ;;  %v5618_v62 = vrot.slane %v6981_v11, 4  ;;  %v11146_v11 = vld [vmem:[%s9634_s8 + $0x1b0] sm:$0xff] }
 0x273   : > { %8376 = vmatprep.mubr.msk.f32.mxu0 %vm751_vm7, %v10826_v49  ;;  %8584 = vmatprep.mubr.msk.f32.mxu1 %vm751_vm7, %v10147_v38  ;;  %v3783_v3 = vrot.slane %v6969_v21, 2  ;;  %v11886_v38 = vrot.slane %v9737_v23, 4  ;;  %v5612_v49 = vrot.slane %v6969_v21, 4  ;;  %v11888_v23 = vrot.slane %v9778_v40, 4  ;;  %v6985_v41 = vld [vmem:[%s9634_s8 + $0x1b8] sm:$0xf] }
 0x274   : > { %8606 = vmatpush3.msk.msra.mxu1 %vm784_vm5, %v10835_v25  ;;  %8423 = vmatprep.subr.msk.mxu0 %vm784_vm5, %v10961_v52  ;;  %v6973_v25 = vld [vmem:[%s9634_s8 + $0x158] sm:$0xf]  ;;  %v11890_v40 = vrot.slane %v9658_v56, 4  ;;  %v11892_v56 = vrot.slane %v9703_v10, 4  ;;  %v3790_v10 = vsel %vm2880_vm8, %v3564_v32, %v3789_v1  ;;  %v5620_v57 = vrot.slane %v6985_v41, 4  ;;  %v11068_v32 = vld [vmem:[%s9634_s8 + $0x168] sm:$0xff] }
 0x275   : > { %8377 = vmatmul.mubr.msk.f32.gmra.mrb[34].mxu0 %vm751_vm7, %v3780_v55  ;;  %8631 = vmatprep.subr.msk.mxu1 %vm784_vm5, %v10972_v61  ;;  %v5611_v54 = vsel %vm784_vm5, %v11886_v38, %v5610_v35  ;;  %v3784_v45 = vsel %vm2880_vm8, %v11887_v48, %v3783_v3  ;;  %v5614_v63 = vrot.slane %v6973_v25, 4  ;;  %v5619_v55 = vsel %vm784_vm5, %v11894_v22, %v5618_v62 }
 0x276   : > { %8585 = vmatmul.mubr.msk.f32.gmra.mrb[18].mxu1 %vm751_vm7, %v5609_v5  ;;  %8379 = vmatprep.mubr.msk.f32.mxu0 %vm751_vm7, %v10855_v42  ;;  %v3785_v42 = vrot.slane %v6973_v25, 2  ;;  %v3999_v5 = vrot.slane %v11041_v36, 2  ;;  %v11896_v3 = vrot.slane %v9781_v37, 4  ;;  %v11100_v25 = vld [vmem:[%s9634_s8 + $0x188] sm:$0xff]  ;;  %v11843_v1 = vrot.slane %v11146_v11, 2 }
 0x277   : > { %8587 = vmatprep.mubr.msk.f32.mxu1 %vm751_vm7, %v10008_v6  ;;  %v5613_v6 = vsel %vm784_vm5, %v11888_v23, %v5612_v49  ;;  %v5615_v0 = vsel %vm784_vm5, %v11890_v40, %v5614_v63  ;;  %v11084_v49 = vld [vmem:[%s9634_s8 + $0x170] sm:$0xff]  ;;  %v11112_v63 = vld [vmem:[%s9634_s8 + $0x1a0] sm:$0xff]  ;;  %v11137_v40 = vld [vmem:[%s11809_s2 + $0x5c] sm:$0xf]  ;;  %v4243_v33 = vrot.slane %v11068_v32, 6  ;;  %v6034_v4 = vrot.slane %v11146_v11, 6 }
 0x278   : > { %v5621_v38 = vsel %vm784_vm5, %v11896_v3, %v5620_v57  ;;  %v11845_v48 = vrot.slane %v11084_v49, 2  ;;  %v11108_v23 = vld [vmem:[%s9634_s8 + $0x190] sm:$0xff]  ;;  %v11218_v3 = vld [vmem:[%s9634_s8 + $0x208] sm:$0xff]  ;;  %v6031_v47 = vrot.slane %v11112_v63, 6 }
 0x279   : > { %8380 = vmatmul.mubr.msk.f32.gmra.mrb[36].mxu0 %vm751_vm7, %v3782_v9  ;;  %v11895_v9 = vld [vmem:[#allocation5_spill] sm:$0xff]  ;;  %v6029_v12 = vrot.slane %v11108_v23, 6 }
 0x27a   : > { %8588 = vmatmul.mubr.msk.f32.gmra.mrb[20].mxu1 %vm751_vm7, %v5611_v54  ;;  %8382 = vmatprep.mubr.msk.f32.mxu0 %vm751_vm7, %v10872_v60  ;;  %v3786_v60 = vsel %vm2880_vm8, %v11889_v28, %v3785_v42  ;;  %v4010_v42 = vrot.slane %v11100_v25, 2 }
 0x27b   : > { %8590 = vmatprep.mubr.msk.f32.mxu1 %vm751_vm7, %v10030_v43  ;;  %v3787_v43 = vrot.slane %v6977_v16, 2  ;;  %v11119_v16 = vld [vmem:[%s11809_s2 + $0x3c] sm:$0xf] }
 0x27d   : > { %8383 = vmatmul.mubr.msk.f32.gmra.mrb[38].mxu0 %vm751_vm7, %v3784_v45 }
 0x27e   : > { %8591 = vmatmul.mubr.msk.f32.gmra.mrb[22].mxu1 %vm751_vm7, %v5613_v6  ;;  %8385 = vmatprep.mubr.msk.f32.mxu0 %vm751_vm7, %v10889_v18  ;;  %v3788_v18 = vsel %vm2880_vm8, %v11891_v19, %v3787_v43  ;;  %v11844_v43 = vrot.slane %v11108_v23, 2  ;;  %v11151_v19 = vld [vmem:[%s9634_s8 + $0x1c0] sm:$0xff] }
 0x27f   : > { %8593 = vmatprep.mubr.msk.f32.mxu1 %vm751_vm7, %v9695_v7  ;;  %v5617_v7 = vsel %vm784_vm5, %v11892_v56, %v5616_v44  ;;  %v6036_v14 = vrot.slane %v11151_v19, 6 }
 0x281   : > { %8386 = vmatmul.mubr.msk.f32.gmra.mrb[40].mxu0 %vm751_vm7, %v3786_v60  ;;  %v11131_v60 = vld [vmem:[%s9634_s8 + $0x1a8] sm:$0xff] }
 0x282   : > { %8594 = vmatmul.mubr.msk.f32.gmra.mrb[24].mxu1 %vm751_vm7, %v5615_v0  ;;  %8388 = vmatprep.mubr.msk.f32.mxu0 %vm751_vm7, %v10906_v39  ;;  %v11044_v39 = vld [vmem:[%s9634_s8 + $0x148] sm:$0xff]  ;;  %v4014_v0 = vrot.slane %v11112_v63, 2  ;;  %v4015_v44 = vrot.slane %v11131_v60, 2 }
 0x283   : > { %8596 = vmatprep.mubr.msk.f32.mxu1 %vm751_vm7, %v9755_v27  ;;  %v3791_v27 = vrot.slane %v6985_v41, 2  ;;  %v4000_v35 = vrot.slane %v11044_v39, 2  ;;  %v11177_v41 = vld [vmem:[%s9634_s8 + $0x1d0] sm:$0xff] }
 0x284   : > { %v4016_v56 = vsel %vm2880_vm8, %v4014_v0, %v4015_v44  ;;  %v11842_v22 = vrot.slane %v11177_v41, 2 }
 0x285   : > { %8389 = vmatmul.mubr.msk.f32.gmra.mrb[42].mxu0 %vm751_vm7, %v3788_v18  ;;  %v3792_v24 = vsel %vm2880_vm8, %v3569_v17, %v3791_v27  ;;  %v4001_v54 = vsel %vm2880_vm8, %v3999_v5, %v4000_v35  ;;  %v4005_v17 = vrot.slane %v11068_v32, 2  ;;  %v11168_v18 = vld [vmem:[%s9634_s8 + $0x1c8] sm:$0xff]  ;;  %v11190_v27 = vsel %vm2880_vm8, %v4015_v44, %v11843_v1 }
 0x286   : > { %8597 = vmatmul.mubr.msk.f32.gmra.mrb[26].mxu1 %vm751_vm7, %v5617_v7  ;;  %8391 = vmatprep.mubr.msk.f32.mxu0 %vm751_vm7, %v10923_v30  ;;  %v11061_v30 = vld [vmem:[%s9634_s8 + $0x150] sm:$0xff]  ;;  %v4019_v7 = vrot.slane %v11151_v19, 2  ;;  %v4020_v62 = vrot.slane %v11168_v18, 2  ;;  %v11279_v1 = vld [vmem:[%s9634_s8 + $0x248] sm:$0xff]  ;;  %v6037_v26 = vrot.slane %v11168_v18, 6 }
 0x287   : > { %8599 = vmatprep.mubr.msk.f32.mxu1 %vm751_vm7, %v11893_v46  ;;  %v11846_v21 = vrot.slane %v11061_v30, 2  ;;  %v4006_v6 = vsel %vm2880_vm8, %v4004_v53, %v4005_v17  ;;  %v11128_v28 = vsel %vm2880_vm8, %v4005_v17, %v11845_v48  ;;  %v11193_v46 = vld [vmem:[%s9634_s8 + $0x1e8] sm:$0xff]  ;;  %v4030_v17 = vrot.slane %v11218_v3, 2 }
 0x288   : > { %v4025_v5 = vrot.slane %v11193_v46, 2  ;;  %v4237_v48 = vrot.slane %v11041_v36, 6 }
 0x289   : > { %8392 = vmatmul.mubr.msk.f32.gmra.mrb[44].mxu0 %vm751_vm7, %v3790_v10  ;;  %v11097_v37 = vsel %vm2880_vm8, %v4000_v35, %v11846_v21  ;;  %v11180_v10 = vld [vmem:[%s9634_s8 + $0x1e0] sm:$0xff]  ;;  %v11202_v35 = vld [vmem:[%s9634_s8 + $0x1f0] sm:$0xff]  ;;  %v4238_v21 = vrot.slane %v11044_v39, 6 }
 0x28a   : > { %8600 = vmatmul.mubr.msk.f32.gmra.mrb[28].mxu1 %vm751_vm7, %v5619_v55  ;;  %8394 = vmatprep.mubr.msk.f32.mxu0 %vm751_vm7, %v10939_v50  ;;  %v11087_v50 = vld [vmem:[%s9634_s8 + $0x180] sm:$0xff]  ;;  %v4021_v55 = vsel %vm2880_vm8, %v4019_v7, %v4020_v62  ;;  %v4024_v57 = vrot.slane %v11180_v10, 2 }
 0x28b   : > { %8602 = vmatprep.mubr.msk.f32.mxu1 %vm751_vm7, %v11895_v9  ;;  %v4009_v45 = vrot.slane %v11087_v50, 2  ;;  %v11215_v9 = vsel %vm2880_vm8, %v4020_v62, %v11842_v22  ;;  %v11252_v62 = vld [vmem:[%s9634_s8 + $0x230] sm:$0xff]  ;;  %v4239_v51 = vsel %vm702_vm6, %v4237_v48, %v4238_v21 }
 0x28c   : > { %v11897_v36 = vrot.slane %v11252_v62, 2 }
 0x28d   : > { %8395 = vmatmul.mubr.msk.f32.gmra.mrb[46].mxu0 %vm751_vm7, %v3792_v24  ;;  %v11205_v24 = vld [vmem:[%s9634_s8 + $0x200] sm:$0xff] }
 0x28e   : > { %8603 = vmatmul.mubr.msk.f32.gmra.mrb[30].mxu1 %vm751_vm7, %v5621_v38  ;;  %8399 = vmatprep.mubr.msk.f32.mxu0 %vm751_vm7, %v4001_v54  ;;  %v11841_v38 = vrot.slane %v11202_v35, 2  ;;  %v4026_v54 = vsel %vm2880_vm8, %v4024_v57, %v4025_v5  ;;  %v4029_v53 = vrot.slane %v11205_v24, 2  ;;  %v11257_v57 = vld [vmem:[%s9634_s8 + $0x240] sm:$0xff] }
 0x28f   : > { %8607 = vmatprep.mubr.msk.f32.mxu1 %vm751_vm7, %v11087_v50 }
 0x290   : > { %v4031_v44 = vsel %vm2880_vm8, %v4029_v53, %v4030_v17 }
 0x291   : > { %8400 = vmatmul.mubr.msk.f32.vlgmr.msra.gmra.mrb[32].mxu0 %vm751_vm7, %v11097_v37 }
 0x292   : > { %8424 = vmatpush3.msk.msra.mxu0 %vm784_vm5, %v10961_v52  ;;  %8608 = vmatmul.mubr.msk.f32.vlgmr.msra.gmra.mrb[16].mxu1 %vm751_vm7, %v11100_v25  ;;  %v4011_v52 = vsel %vm2880_vm8, %v4009_v45, %v4010_v42  ;;  %v11227_v45 = vld [vmem:[%s9634_s8 + $0x210] sm:$0xff] }
 0x293   : > { %8402 = vmatprep.mubr.msk.f32.mxu0 %vm751_vm7, %v4006_v6  ;;  %8610 = vmatprep.mubr.msk.f32.mxu1 %vm751_vm7, %v11112_v63  ;;  %v11240_v6 = vsel %vm2880_vm8, %v4025_v5, %v11841_v38  ;;  %v11847_v0 = vrot.slane %v11227_v45, 2 }
 0x294   : > { %8632 = vmatpush3.msk.msra.mxu1 %vm784_vm5, %v10972_v61  ;;  %8449 = vmatprep.subr.msk.mxu0 %vm784_vm5, %v11119_v16  ;;  %v11165_v61 = vsel %vm2880_vm8, %v4010_v42, %v11844_v43  ;;  %v11230_v42 = vld [vmem:[%s9634_s8 + $0x220] sm:$0xff] }
 0x295   : > { %8403 = vmatmul.mubr.msk.f32.gmra.mrb[34].mxu0 %vm751_vm7, %v11128_v28  ;;  %8657 = vmatprep.subr.msk.mxu1 %vm784_vm5, %v11137_v40  ;;  %v11273_v53 = vsel %vm2880_vm8, %v4030_v17, %v11847_v0  ;;  %v11288_v17 = vld [vmem:[%s9634_s8 + $0x260] sm:$0xff]  ;;  %v6027_v0 = vrot.slane %v11100_v25, 6 }
 0x296   : > { %8611 = vmatmul.mubr.msk.f32.gmra.mrb[18].mxu1 %vm751_vm7, %v11131_v60  ;;  %8405 = vmatprep.mubr.msk.f32.mxu0 %vm751_vm7, %v4011_v52  ;;  %v11243_v52 = vld [vmem:[%s9634_s8 + $0x228] sm:$0xff] }
 0x297   : > { %8613 = vmatprep.mubr.msk.f32.mxu1 %vm751_vm7, %v11151_v19  ;;  %v4035_v7 = vrot.slane %v11243_v52, 2  ;;  %v6030_v32 = vsel %vm702_vm6, %v6027_v0, %v6029_v12  ;;  %v6039_v19 = vrot.slane %v11177_v41, 6 }
 0x299   : > { %8406 = vmatmul.mubr.msk.f32.gmra.mrb[36].mxu0 %vm751_vm7, %v11165_v61  ;;  %v11305_v39 = vsel %vm2880_vm8, %v4035_v7, %v11897_v36  ;;  %v4242_v36 = vrot.slane %v11065_v29, 6  ;;  %v4245_v29 = vrot.slane %v11084_v49, 6 }
 0x29a   : > { %8614 = vmatmul.mubr.msk.f32.gmra.mrb[20].mxu1 %vm751_vm7, %v11168_v18  ;;  %8408 = vmatprep.mubr.msk.f32.mxu0 %vm751_vm7, %v4016_v56  ;;  %v4034_v56 = vrot.slane %v11230_v42, 2 }
 0x29b   : > { %8616 = vmatprep.mubr.msk.f32.mxu1 %vm751_vm7, %v11180_v10  ;;  %v4244_v20 = vsel %vm702_vm6, %v4242_v36, %v4243_v33  ;;  %v4246_v12 = vsel %vm702_vm6, %v4243_v33, %v4245_v29  ;;  %v6042_v36 = vrot.slane %v11193_v46, 6 }
 0x29c   : > { %v4036_v43 = vsel %vm2880_vm8, %v4034_v56, %v4035_v7 }
 0x29d   : > { %8409 = vmatmul.mubr.msk.f32.gmra.mrb[38].mxu0 %vm751_vm7, %v11190_v27 }
 0x29e   : > { %8617 = vmatmul.mubr.msk.f32.gmra.mrb[22].mxu1 %vm751_vm7, %v11193_v46  ;;  %8411 = vmatprep.mubr.msk.f32.mxu0 %vm751_vm7, %v4021_v55 }
 0x29f   : > { %8619 = vmatprep.mubr.msk.f32.mxu1 %vm751_vm7, %v11205_v24 }
 0x2a1   : > { %8412 = vmatmul.mubr.msk.f32.gmra.mrb[40].mxu0 %vm751_vm7, %v11215_v9 }
 0x2a2   : > { %8620 = vmatmul.mubr.msk.f32.gmra.mrb[24].mxu1 %vm751_vm7, %v11218_v3  ;;  %8414 = vmatprep.mubr.msk.f32.mxu0 %vm751_vm7, %v4026_v54 }
 0x2a3   : > { %8622 = vmatprep.mubr.msk.f32.mxu1 %vm751_vm7, %v11230_v42 }
 0x2a4   : > { %v11254_v55 = vpop.f32.mrb[24].mxu0 }
 0x2a5   : > { %v11259_v5 = vpop.f32.mrb[8].mxu1  ;;  %v11261_v54 = vpop.f32.mrb[25].mxu0  ;;  %8415 = vmatmul.mubr.msk.f32.gmra.mrb[42].mxu0 %vm751_vm7, %v11240_v6 }
 0x2a6   : > { %v11265_v38 = vpop.f32.mrb[9].mxu1  ;;  %8623 = vmatmul.mubr.msk.f32.gmra.mrb[26].mxu1 %vm751_vm7, %v11243_v52  ;;  %8417 = vmatprep.mubr.msk.f32.mxu0 %vm751_vm7, %v4031_v44  ;;  %v6026_v44 = vrot.slane %v11087_v50, 6  ;;  %v4240_v50 = vrot.slane %v11061_v30, 6 }
 0x2a7   : > { %8625 = vmatprep.mubr.msk.f32.mxu1 %vm751_vm7, %v11257_v57 }
 0x2a8   : > { %v11285_v13 = vpop.f32.mrb[26].mxu0  ;;  %v6028_v7 = vsel %vm702_vm6, %v6026_v44, %v6027_v0  ;;  %v4241_v44 = vsel %vm702_vm6, %v4238_v21, %v4240_v50  ;;  %v6041_v0 = vrot.slane %v11180_v10, 6 }
 0x2a9   : > { %v11291_v22 = vpop.f32.mrb[10].mxu1  ;;  %v11293_v59 = vpop.f32.mrb[27].mxu0  ;;  %8418 = vmatmul.mubr.msk.f32.gmra.mrb[44].mxu0 %vm751_vm7, %v11273_v53 }
 0x2aa   : > { %v11297_v56 = vpop.f32.mrb[11].mxu1  ;;  %8626 = vmatmul.mubr.msk.f32.gmra.mrb[28].mxu1 %vm751_vm7, %v11279_v1  ;;  %8420 = vmatprep.mubr.msk.f32.mxu0 %vm751_vm7, %v4036_v43  ;;  %v6032_v43 = vrot.slane %v11131_v60, 6 }
 0x2ab   : > { %8628 = vmatprep.mubr.msk.f32.mxu1 %vm751_vm7, %v11288_v17 }
 0x2ac   : > { %v11317_v34 = vpop.f32.mrb[28].mxu0 }
 0x2ad   : > { %v11322_v63 = vpop.f32.mrb[12].mxu1  ;;  %v11324_v2 = vpop.f32.mrb[29].mxu0  ;;  %8421 = vmatmul.mubr.msk.f32.gmra.mrb[46].mxu0 %vm751_vm7, %v11305_v39 }
 0x2ae   : > { %v11328_v48 = vpop.f32.mrb[13].mxu1  ;;  %8629 = vmatmul.mubr.msk.f32.gmra.mrb[30].mxu1 %vm751_vm7, %v11312_v15  ;;  %8425 = vmatprep.mubr.msk.f32.mxu0 %vm751_vm7, %v4239_v51  ;;  %v6033_v51 = vsel %vm702_vm6, %v6031_v47, %v6032_v43  ;;  %v6035_v47 = vsel %vm702_vm6, %v6032_v43, %v6034_v4 }
 0x2af   : > { %8633 = vmatprep.mubr.msk.f32.mxu1 %vm751_vm7, %v6028_v7 }
 0x2b0   : > { %v11340_v58 = vpop.f32.mrb[30].mxu0 }
 0x2b1   : > { %v11344_v31 = vpop.f32.mrb[14].mxu1  ;;  %v11346_v21 = vpop.f32.mrb[31].mxu0  ;;  %8426 = vmatmul.mubr.msk.f32.vlgmr.msra.gmra.mrb[32].mxu0 %vm751_vm7, %v4241_v44 }
 0x2b2   : > { %v11349_v50 = vpop.f32.mrb[15].mxu1  ;;  %8450 = vmatpush3.msk.msra.mxu0 %vm784_vm5, %v11119_v16  ;;  %8634 = vmatmul.mubr.msk.f32.vlgmr.msra.gmra.mrb[16].mxu1 %vm751_vm7, %v6030_v32  ;;  %v6038_v16 = vsel %vm702_vm6, %v6036_v14, %v6037_v26  ;;  %v6040_v14 = vsel %vm702_vm6, %v6037_v26, %v6039_v19 }
 0x2b3   : > { %8428 = vmatprep.mubr.msk.f32.mxu0 %vm751_vm7, %v4244_v20  ;;  %8636 = vmatprep.mubr.msk.f32.mxu1 %vm751_vm7, %v6033_v51 }
 0x2b4   : > { %v8141_v44 = vpop.f32.mrb[16].mxu0  ;;  %8658 = vmatpush3.msk.msra.mxu1 %vm784_vm5, %v11137_v40  ;;  %v6044_v40 = vrot.slane %v11202_v35, 6 }
 0x2b5   : > { %v8685_v33 = vadd.f32 %v11259_v5, %v8141_v44  ;;  %v8257_v29 = vpop.f32.mrb[0].mxu1  ;;  %v1795_v20 = vpop.f32.mrb[17].mxu0  ;;  %8429 = vmatmul.mubr.msk.f32.gmra.mrb[34].mxu0 %vm751_vm7, %v4246_v12 }
 0x2b6   : > { %v8693_v4 = vadd.f32 %v8257_v29, %v11254_v55  ;;  %v8686_v43 = vadd.f32 %v11265_v38, %v1795_v20  ;;  %v2731_v8 = vpop.f32.mrb[1].mxu1  ;;  %8637 = vmatmul.mubr.msk.f32.gmra.mrb[18].mxu1 %vm751_vm7, %v6035_v47  ;;  %8431 = vmatprep.mubr.msk.f32.mxu0 %vm751_vm7, %v6028_v7  ;;  %v6046_v55 = vrot.slane %v11205_v24, 6  ;;  %v6047_v38 = vrot.slane %v11218_v3, 6 }
 0x2b7   : > { %v8694_v10 = vadd.f32 %v2731_v8, %v11261_v54  ;;  %6528 = vrot.lane.b32.xlu0 %v8685_v33, %s9133_s19  ;;  %8639 = vmatprep.mubr.msk.f32.mxu1 %vm751_vm7, %v6038_v16  ;;  %v6043_v7 = vsel %vm702_vm6, %v6041_v0, %v6042_v36  ;;  %v6049_v0 = vrot.slane %v11227_v45, 6 }
 0x2b8   : > { %6544 = vrot.lane.b32.xlu1 %v8693_v4, %s9133_s19  ;;  %v8144_v5 = vpop.f32.mrb[18].mxu0  ;;  %v6048_v33 = vsel %vm702_vm6, %v6046_v55, %v6047_v38 }
 0x2b9   : > { %v8687_v8 = vadd.f32 %v11291_v22, %v8144_v5  ;;  %v8260_v54 = vpop.f32.mrb[2].mxu1  ;;  %v1805_v12 = vpop.f32.mrb[19].mxu0  ;;  %8432 = vmatmul.mubr.msk.f32.gmra.mrb[36].mxu0 %vm751_vm7, %v6030_v32  ;;  %v6045_v22 = vsel %vm702_vm6, %v6042_v36, %v6044_v40  ;;  %v6051_v32 = vrot.slane %v11230_v42, 6 }
 0x2ba   : > { %v8695_v44 = vadd.f32 %v8260_v54, %v11285_v13  ;;  %v8688_v26 = vadd.f32 %v11297_v56, %v1805_v12  ;;  %v2741_v19 = vpop.f32.mrb[3].mxu1  ;;  %8640 = vmatmul.mubr.msk.f32.gmra.mrb[20].mxu1 %vm751_vm7, %v6040_v14  ;;  %8434 = vmatprep.mubr.msk.f32.mxu0 %vm751_vm7, %v6033_v51  ;;  %v6052_v13 = vrot.slane %v11243_v52, 6  ;;  %v11430_v54 = vld [vmem:[%s9634_s8 + $0x270] sm:$0xff]  ;;  %v7238_v12 = vld [vmem:[%s9634_s8 + $0x158] sm:$0xf] }
 0x2bb   : > { %v8696_v24 = vadd.f32 %v2741_v19, %v11293_v59  ;;  %6526 = vrot.lane.b32.xlu0 %v8686_v43, %s9133_s19  ;;  %8642 = vmatprep.mubr.msk.f32.mxu1 %vm751_vm7, %v6043_v7  ;;  %v6056_v43 = vrot.slane %v11257_v57, 6  ;;  %v6273_v19 = vrot.slane %v11108_v23, 4 }
 0x2bc   : > { %6532 = vrot.lane.b32.xlu1 %v8687_v8, %s9133_s19  ;;  %v8147_v56 = vpop.f32.mrb[20].mxu0  ;;  %v6053_v40 = vsel %vm702_vm6, %v6051_v32, %v6052_v13 }
 0x2bd   : > { %v8689_v51 = vadd.f32 %v11322_v63, %v8147_v56  ;;  %v8263_v59 = vpop.f32.mrb[4].mxu1  ;;  %v1815_v29 = vpop.f32.mrb[21].mxu0  ;;  %8435 = vmatmul.mubr.msk.f32.gmra.mrb[38].mxu0 %vm751_vm7, %v6035_v47  ;;  %v6050_v63 = vsel %vm702_vm6, %v6047_v38, %v6049_v0  ;;  %v6054_v47 = vrot.slane %v11252_v62, 6 }
 0x2be   : > { %v8697_v36 = vadd.f32 %v8263_v59, %v11317_v34  ;;  %v8690_v20 = vadd.f32 %v11328_v48, %v1815_v29  ;;  %v2751_v4 = vpop.f32.mrb[5].mxu1  ;;  %8643 = vmatmul.mubr.msk.f32.gmra.mrb[22].mxu1 %vm751_vm7, %v6045_v22  ;;  %8437 = vmatprep.mubr.msk.f32.mxu0 %vm751_vm7, %v6038_v16  ;;  %v6057_v34 = vrot.slane %v11279_v1, 6  ;;  %v11410_v16 = vld [vmem:[%s9634_s8 + $0x250] sm:$0xff]  ;;  %v11898_v59 = vrot.slane %v11061_v30, 2 }
 0x2bf   : > { %v8698_v42 = vadd.f32 %v2751_v4, %v11324_v2  ;;  %6542 = vrot.lane.b32.xlu0 %v8694_v10, %s9133_s19  ;;  %8645 = vmatprep.mubr.msk.f32.mxu1 %vm751_vm7, %v6048_v33  ;;  %v7246_v4 = vld [vmem:[%s9634_s8 + $0x198] sm:$0xf]  ;;  %v6283_v30 = vrot.slane %v11177_v41, 4 }
 0x2c0   : > { %6548 = vrot.lane.b32.xlu1 %v8695_v44, %s9133_s19  ;;  %v8150_v48 = vpop.f32.mrb[22].mxu0 }
 0x2c1   : > { %v8691_v2 = vadd.f32 %v11344_v31, %v8150_v48  ;;  %v8266_v10 = vpop.f32.mrb[6].mxu1  ;;  %v1825_v55 = vpop.f32.mrb[23].mxu0  ;;  %8438 = vmatmul.mubr.msk.f32.gmra.mrb[40].mxu0 %vm751_vm7, %v6040_v14  ;;  %v6055_v31 = vsel %vm702_vm6, %v6052_v13, %v6054_v47  ;;  %v6059_v14 = vrot.slane %v11410_v16, 6  ;;  %v6277_v13 = vrot.slane %v11131_v60, 4 }
 0x2c2   : > { %v11415_v38 = vadd.f32 %v8266_v10, %v11340_v58  ;;  %v8692_v57 = vadd.f32 %v11349_v50, %v1825_v55  ;;  %v2761_v5 = vpop.f32.mrb[7].mxu1  ;;  %8646 = vmatmul.mubr.msk.f32.gmra.mrb[24].mxu1 %vm751_vm7, %v6050_v63  ;;  %8440 = vmatprep.mubr.msk.f32.mxu0 %vm751_vm7, %v6043_v7  ;;  %v6061_v58 = vrot.slane %v11288_v17, 6  ;;  %v6062_v50 = vrot.slane %v11312_v15, 6  ;;  %v7429_v10 = vld [vmem:[%s9634_s8 + $0x1f8] sm:$0xf] }
 0x2c3   : > { %v8700_v8 = vadd.f32 %v2761_v5, %v11346_v21  ;;  %6546 = vrot.lane.b32.xlu0 %v8696_v24, %s9133_s19  ;;  %8648 = vmatprep.mubr.msk.f32.mxu1 %vm751_vm7, %v6053_v40  ;;  %v6058_v7 = vsel %vm702_vm6, %v6056_v43, %v6057_v34  ;;  %v6060_v17 = vsel %vm702_vm6, %v6057_v34, %v6059_v14  ;;  %v6064_v21 = vrot.slane %v11430_v54, 6  ;;  %v7417_v24 = vld [vmem:[%s9634_s8 + $0x198] sm:$0xf] }
 0x2c4   : > { %6530 = vrot.lane.b32.xlu1 %v8688_v26, %s9133_s19  ;;  %v6063_v44 = vsel %vm702_vm6, %v6061_v58, %v6062_v50  ;;  %v6272_v26 = vrot.slane %v11100_v25, 4  ;;  %v6275_v32 = vrot.slane %v7417_v24, 4  ;;  %v7242_v25 = vld [vmem:[%s9634_s8 + $0x178] sm:$0xf]  ;;  %v11899_v47 = vrot.slane %v11084_v49, 2 }
 0x2c5   : > { %8441 = vmatmul.mubr.msk.f32.gmra.mrb[42].mxu0 %vm751_vm7, %v6045_v22  ;;  %v4483_v22 = vrot.slane %v7238_v12, 2  ;;  %v6065_v0 = vsel %vm702_vm6, %v6062_v50, %v6064_v21  ;;  %v4485_v60 = vrot.slane %v7242_v25, 2  ;;  %v11900_v55 = vrot.slane %v11108_v23, 2  ;;  %v7258_v21 = vld [vmem:[%s9634_s8 + $0x1f8] sm:$0xf] }
 0x2c6   : > { %8649 = vmatmul.mubr.msk.f32.gmra.mrb[26].mxu1 %vm751_vm7, %v6055_v31  ;;  %8443 = vmatprep.mubr.msk.f32.mxu0 %vm751_vm7, %v6048_v33  ;;  %v6274_v56 = vsel %vm784_vm5, %v6272_v26, %v6273_v19  ;;  %v6278_v33 = vrot.slane %v11146_v11, 4  ;;  %v6290_v5 = vrot.slane %v7429_v10, 4  ;;  %v6293_v58 = vrot.slane %v11227_v45, 4 }
 0x2c7   : > { %6534 = vrot.lane.b32.xlu0 %v8690_v20, %s9133_s19  ;;  %8651 = vmatprep.mubr.msk.f32.mxu1 %vm751_vm7, %v6058_v7  ;;  %v4484_v29 = vsel %vm2880_vm8, %v11898_v59, %v4483_v22  ;;  %v4486_v43 = vsel %vm2880_vm8, %v11899_v47, %v4485_v60  ;;  %v11901_v23 = vrot.slane %v11146_v11, 2  ;;  %v6297_v12 = vrot.slane %v11243_v52, 4  ;;  %v7266_v59 = vld [vmem:[%s9634_s8 + $0x238] sm:$0xf] }
 0x2c8   : > { %6536 = vrot.lane.b32.xlu1 %v8689_v51, %s9133_s19  ;;  %v7421_v51 = vld [vmem:[%s9634_s8 + $0x1b8] sm:$0xf]  ;;  %v6298_v26 = vrot.slane %v11252_v62, 4  ;;  %v11902_v11 = vrot.slane %v11177_v41, 2  ;;  %v4493_v24 = vrot.slane %v7258_v21, 2  ;;  %v11903_v41 = vrot.slane %v11202_v35, 2 }
 0x2c9   : > { %8444 = vmatmul.mubr.msk.f32.gmra.mrb[44].mxu0 %vm751_vm7, %v6050_v63  ;;  %v6280_v20 = vrot.slane %v7421_v51, 4  ;;  %v7425_v63 = vld [vmem:[%s9634_s8 + $0x1d8] sm:$0xf]  ;;  %v6308_v60 = vrot.slane %v11430_v54, 4 }
 0x2ca   : > { %8652 = vmatmul.mubr.msk.f32.gmra.mrb[28].mxu1 %vm751_vm7, %v6060_v17  ;;  %8446 = vmatprep.mubr.msk.f32.mxu0 %vm751_vm7, %v6053_v40  ;;  %v6285_v48 = vrot.slane %v7425_v63, 4  ;;  %v7250_v40 = vld [vmem:[%s9634_s8 + $0x1b8] sm:$0xf]  ;;  %v6299_v25 = vsel %vm784_vm5, %v6297_v12, %v6298_v26 }
 0x2cb   : > { %6550 = vrot.lane.b32.xlu0 %v8698_v42, %s9133_s19  ;;  %8654 = vmatprep.mubr.msk.f32.mxu1 %vm751_vm7, %v6063_v44  ;;  %v6282_v42 = vrot.slane %v11168_v18, 4  ;;  %v4487_v18 = vrot.slane %v7246_v4, 2  ;;  %v6281_v34 = vsel %vm784_vm5, %v6278_v33, %v6280_v20  ;;  %v4497_v20 = vrot.slane %v7266_v59, 2  ;;  %v11618_v59 = vld [vmem:[%s11810_s3] ss:$0 sm:$0xff] }
 0x2cc   : > { %6552 = vrot.lane.b32.xlu1 %v8697_v36, %s9133_s19  ;;  %v6276_v36 = vsel %vm784_vm5, %v6273_v19, %v6275_v32  ;;  %v6302_v32 = vrot.slane %v11279_v1, 4 }
 0x2cd   : > { %8447 = vmatmul.mubr.msk.f32.gmra.mrb[46].mxu0 %vm751_vm7, %v6055_v31  ;;  %v6284_v49 = vsel %vm784_vm5, %v6282_v42, %v6283_v30  ;;  %v6292_v31 = vrot.slane %v11218_v3, 4 }
 0x2ce   : > { %8655 = vmatmul.mubr.msk.f32.gmra.mrb[30].mxu1 %vm751_vm7, %v6065_v0  ;;  %8451 = vmatprep.mubr.msk.f32.mxu0 %vm751_vm7, %v11097_v37  ;;  %v6279_v37 = vsel %vm784_vm5, %v6277_v13, %v6278_v33  ;;  %v7262_v0 = vld [vmem:[%s9634_s8 + $0x218] sm:$0xf]  ;;  %v6303_v13 = vrot.slane %v11410_v16, 4  ;;  %v6307_v16 = vrot.slane %v11312_v15, 4 }
 0x2cf   : > { %6538 = vrot.lane.b32.xlu0 %v8692_v57, %s9133_s19  ;;  %8659 = vmatprep.mubr.msk.f32.mxu1 %vm751_vm7, %v6274_v56  ;;  %v4489_v57 = vrot.slane %v7250_v40, 2  ;;  %v6294_v44 = vsel %vm784_vm5, %v6292_v31, %v6293_v58  ;;  %v4494_v56 = vsel %vm2880_vm8, %v11903_v41, %v4493_v24  ;;  %v4495_v33 = vrot.slane %v7262_v0, 2 }
 0x2d0   : > { %6540 = vrot.lane.b32.xlu1 %v8691_v2, %s9133_s19  ;;  %v6287_v2 = vrot.slane %v11193_v46, 4  ;;  %v4488_v46 = vsel %vm2880_vm8, %v11900_v55, %v4487_v18  ;;  %v6309_v54 = vsel %vm784_vm5, %v6307_v16, %v6308_v60 }
 0x2d1   : > { %8452 = vmatmul.mubr.msk.f32.vlgmr.msra.gmra.mrb[32].mxu0 %vm751_vm7, %v4484_v29  ;;  %v4490_v50 = vsel %vm2880_vm8, %v11901_v23, %v4489_v57  ;;  %v6304_v29 = vsel %vm784_vm5, %v6302_v32, %v6303_v13 }
 0x2d2   : > { %8660 = vmatmul.mubr.msk.f32.vlgmr.msra.gmra.mrb[16].mxu1 %vm751_vm7, %v6276_v36  ;;  %8454 = vmatprep.mubr.msk.f32.mxu0 %vm751_vm7, %v11128_v28  ;;  %v6288_v28 = vrot.slane %v11202_v35, 4  ;;  %v7445_v36 = vld [vmem:[%s9634_s8 + $0x278] sm:$0xf]  ;;  %v11904_v35 = vrot.slane %v11227_v45, 2 }
 0x2d3   : > { %6554 = vrot.lane.b32.xlu0 %v8700_v8, %s9133_s19  ;;  %8662 = vmatprep.mubr.msk.f32.mxu1 %vm751_vm7, %v6279_v37  ;;  %v7254_v8 = vld [vmem:[%s9634_s8 + $0x1d8] sm:$0xf]  ;;  %v6310_v4 = vrot.slane %v7445_v36, 4 }
 0x2d4   : > { %6556 = vrot.lane.b32.xlu1 %v11415_v38, %s9133_s19  ;;  %v6286_v38 = vsel %vm784_vm5, %v6283_v30, %v6285_v48  ;;  %v6289_v14 = vsel %vm784_vm5, %v6287_v2, %v6288_v28  ;;  %v4491_v7 = vrot.slane %v7254_v8, 2  ;;  %v6291_v3 = vsel %vm784_vm5, %v6288_v28, %v6290_v5 }
 0x2d5   : > { %8455 = vmatmul.mubr.msk.f32.gmra.mrb[34].mxu0 %vm751_vm7, %v4486_v43  ;;  %v6311_v42 = vsel %vm784_vm5, %v6308_v60, %v6310_v4  ;;  %v11906_v60 = vld [vmem:[#allocation8_spill] sm:$0xff] }
 0x2d6   : > { %8663 = vmatmul.mubr.msk.f32.gmra.mrb[18].mxu1 %vm751_vm7, %v6281_v34  ;;  %8457 = vmatprep.mubr.msk.f32.mxu0 %vm751_vm7, %v11165_v61  ;;  %v7433_v61 = vld [vmem:[%s9634_s8 + $0x218] sm:$0xf]  ;;  %v4492_v19 = vsel %vm2880_vm8, %v11902_v11, %v4491_v7  ;;  %v860_v36 = vadd.f32 %v11906_v60, %v11618_v59 }
 0x2d7   : > { %8665 = vmatprep.mubr.msk.f32.mxu1 %vm751_vm7, %v6284_v49  ;;  %v6295_v17 = vrot.slane %v7433_v61, 4  ;;  %v11913_v60 = vld [vmem:[#allocation14_spill] sm:$0xff] }
 0x2d9   : > { %8458 = vmatmul.mubr.msk.f32.gmra.mrb[36].mxu0 %vm751_vm7, %v4488_v46  ;;  %v6296_v52 = vsel %vm784_vm5, %v6293_v58, %v6295_v17 }
 0x2da   : > { %8666 = vmatmul.mubr.msk.f32.gmra.mrb[20].mxu1 %vm751_vm7, %v6286_v38  ;;  %8460 = vmatprep.mubr.msk.f32.mxu0 %vm751_vm7, %v11190_v27  ;;  %v7437_v27 = vld [vmem:[%s9634_s8 + $0x238] sm:$0xf] }
 0x2db   : > { %8668 = vmatprep.mubr.msk.f32.mxu1 %vm751_vm7, %v6289_v14  ;;  %v6300_v22 = vrot.slane %v7437_v27, 4 }
 0x2dd   : > { %8461 = vmatmul.mubr.msk.f32.gmra.mrb[38].mxu0 %vm751_vm7, %v4490_v50  ;;  %v6301_v1 = vsel %vm784_vm5, %v6298_v26, %v6300_v22 }
 0x2de   : > { %8669 = vmatmul.mubr.msk.f32.gmra.mrb[22].mxu1 %vm751_vm7, %v6291_v3  ;;  %8463 = vmatprep.mubr.msk.f32.mxu0 %vm751_vm7, %v11215_v9  ;;  %v7441_v9 = vld [vmem:[%s9634_s8 + $0x258] sm:$0xf]  ;;  %s9134_s8 = smov 16  }
 0x2df   : > { %8671 = vmatprep.mubr.msk.f32.mxu1 %vm751_vm7, %v6294_v44  ;;  %v6305_v51 = vrot.slane %v7441_v9, 4  ;;  %v7590_v44 = vld [vmem:[#allocation3] ss:$0 sm:$0xff] }
 0x2e1   : > { %8464 = vmatmul.mubr.msk.f32.gmra.mrb[40].mxu0 %vm751_vm7, %v4492_v19  ;;  %v6306_v15 = vsel %vm784_vm5, %v6303_v13, %v6305_v51 }
 0x2e2   : > { %8672 = vmatmul.mubr.msk.f32.gmra.mrb[24].mxu1 %vm751_vm7, %v6296_v52  ;;  %8466 = vmatprep.mubr.msk.f32.mxu0 %vm751_vm7, %v11240_v6  ;;  %v4496_v6 = vsel %vm2880_vm8, %v11904_v35, %v4495_v33 }
 0x2e3   : > { %8674 = vmatprep.mubr.msk.f32.mxu1 %vm751_vm7, %v6299_v25 }
 0x2e5   : > { %8467 = vmatmul.mubr.msk.f32.gmra.mrb[42].mxu0 %vm751_vm7, %v4494_v56 }
 0x2e6   : > { %8675 = vmatmul.mubr.msk.f32.gmra.mrb[26].mxu1 %vm751_vm7, %v6301_v1  ;;  %8469 = vmatprep.mubr.msk.f32.mxu0 %vm751_vm7, %v11273_v53  ;;  %v11905_v53 = vrot.slane %v11252_v62, 2 }
 0x2e7   : > { %8677 = vmatprep.mubr.msk.f32.mxu1 %vm751_vm7, %v6304_v29 }
 0x2e8   : > { %v4498_v45 = vsel %vm2880_vm8, %v11905_v53, %v4497_v20 }
 0x2e9   : > { %8470 = vmatmul.mubr.msk.f32.gmra.mrb[44].mxu0 %vm751_vm7, %v4496_v6 }
 0x2ea   : > { %8678 = vmatmul.mubr.msk.f32.gmra.mrb[28].mxu1 %vm751_vm7, %v6306_v15  ;;  %8472 = vmatprep.mubr.msk.f32.mxu0 %vm751_vm7, %v11305_v39  ;;  %v11907_v15 = vld [vmem:[#allocation9_spill] sm:$0xff] }
 0x2eb   : > { %8680 = vmatprep.mubr.msk.f32.mxu1 %vm751_vm7, %v6309_v54  ;;  %v855_v4 = vadd.f32 %v11618_v59, %v11907_v15 }
 0x2ed   : > { %8473 = vmatmul.mubr.msk.f32.gmra.mrb[46].mxu0 %vm751_vm7, %v4498_v45 }
 0x2ee   : > { %8681 = vmatmul.mubr.msk.f32.gmra.mrb[30].mxu1 %vm751_vm7, %v6311_v42 }
 0x329   : > { %v6529_v27 = vpop.permute.xlu0 %6528 }
 0x32a   : > { %v11599_v26 = vpop.permute.xlu1 %6544  ;;  %v6704_v29 = vsel %vm6702_vm9, 0.0, %v6529_v27 }
 0x32d   : > { %v6527_v19 = vpop.permute.xlu0 %6526 }
 0x32e   : > { %v6533_v11 = vpop.permute.xlu1 %6532  ;;  %v6703_v35 = vsel %vm6702_vm9, 0.0, %v6527_v19 }
 0x331   : > { %v11603_v52 = vpop.permute.xlu0 %6542 }
 0x332   : > { %v11601_v24 = vpop.permute.xlu1 %6548 }
 0x335   : > { %v11605_v0 = vpop.permute.xlu0 %6546 }
 0x336   : > { %v6531_v22 = vpop.permute.xlu1 %6530 }
 0x339   : > { %v6535_v25 = vpop.permute.xlu0 %6534 }
 0x33a   : > { %v6537_v32 = vpop.permute.xlu1 %6536 }
 0x33d   : > { %v11609_v9 = vpop.permute.xlu0 %6550 }
 0x33e   : > { %v11607_v13 = vpop.permute.xlu1 %6552 }
 0x341   : > { %v6539_v56 = vpop.permute.xlu0 %6538 }
 0x342   : > { %v6541_v41 = vpop.permute.xlu1 %6540 }
 0x345   : > { %v11613_v1 = vpop.permute.xlu0 %6554 }
 0x346   : > { %v11611_v33 = vpop.permute.xlu1 %6556 }
 0x3a4   : > { %v8453_v37 = vpop.f32.mrb[32].mxu0 }
 0x3a5   : > { %v8661_v30 = vpop.f32.mrb[16].mxu1  ;;  %6592 = vrot.lane.b32.xlu1 %v8453_v37, %s9134_s8  ;;  %v4586_v63 = vpop.f32.mrb[33].mxu0 }
 0x3a6   : > { %v6415_v47 = vpop.f32.mrb[17].mxu1  ;;  %6590 = vrot.lane.b32.xlu0 %v4586_v63, %s9134_s8 }
 0x3a8   : > { %v8456_v62 = vpop.f32.mrb[34].mxu0 }
 0x3a9   : > { %v8664_v39 = vpop.f32.mrb[18].mxu1  ;;  %6656 = vrot.lane.b32.xlu1 %v8661_v30, %s9135_s20  ;;  %v4596_v43 = vpop.f32.mrb[35].mxu0 }
 0x3aa   : > { %v6425_v18 = vpop.f32.mrb[19].mxu1  ;;  %6654 = vrot.lane.b32.xlu0 %v6415_v47, %s9135_s20 }
 0x3ac   : > { %v8459_v34 = vpop.f32.mrb[36].mxu0 }
 0x3ad   : > { %v8667_v48 = vpop.f32.mrb[20].mxu1  ;;  %6596 = vrot.lane.b32.xlu1 %v8456_v62, %s9134_s8  ;;  %v4606_v40 = vpop.f32.mrb[37].mxu0  ;;  %v6706_v62 = vsel %vm6702_vm9, 0.0, %v6533_v11 }
 0x3ae   : > { %v6435_v2 = vpop.f32.mrb[21].mxu1  ;;  %6594 = vrot.lane.b32.xlu0 %v4596_v43, %s9134_s8 }
 0x3b0   : > { %v8462_v49 = vpop.f32.mrb[38].mxu0 }
 0x3b1   : > { %v8670_v28 = vpop.f32.mrb[22].mxu1  ;;  %6660 = vrot.lane.b32.xlu1 %v8664_v39, %s9135_s20  ;;  %v4616_v10 = vpop.f32.mrb[39].mxu0  ;;  %v11908_v39 = vld [vmem:[#allocation10_spill] sm:$0xff] }
 0x3b2   : > { %v6445_v55 = vpop.f32.mrb[23].mxu1  ;;  %6658 = vrot.lane.b32.xlu0 %v6425_v18, %s9135_s20  ;;  %v870_v43 = vadd.f32 %v11908_v39, %v11618_v59  ;;  %v6705_v18 = vsel %vm6702_vm9, 0.0, %v6531_v22  ;;  %v6710_v22 = vsel %vm6702_vm9, 0.0, %v6541_v41  ;;  %v11915_v39 = vld [vmem:[#allocation15_spill] sm:$0xff] }
 0x3b4   : > { %v8465_v46 = vpop.f32.mrb[40].mxu0 }
 0x3b5   : > { %v8673_v57 = vpop.f32.mrb[24].mxu1  ;;  %6600 = vrot.lane.b32.xlu1 %v8459_v34, %s9134_s8  ;;  %v4626_v38 = vpop.f32.mrb[41].mxu0 }
 0x3b6   : > { %v6455_v5 = vpop.f32.mrb[25].mxu1  ;;  %6598 = vrot.lane.b32.xlu0 %v4606_v40, %s9134_s8  ;;  %v11909_v40 = vld [vmem:[#allocation11_spill] sm:$0xff] }
 0x3b8   : > { %v8468_v8 = vpop.f32.mrb[42].mxu0 }
 0x3b9   : > { %v8676_v31 = vpop.f32.mrb[26].mxu1  ;;  %6664 = vrot.lane.b32.xlu1 %v8667_v48, %s9135_s20  ;;  %v4636_v14 = vpop.f32.mrb[43].mxu0 }
 0x3ba   : > { %v6465_v58 = vpop.f32.mrb[27].mxu1  ;;  %6662 = vrot.lane.b32.xlu0 %v6435_v2, %s9135_s20  ;;  %v865_v2 = vadd.f32 %v11618_v59, %v11909_v40 }
 0x3bc   : > { %v8471_v61 = vpop.f32.mrb[44].mxu0 }
 0x3bd   : > { %v8679_v23 = vpop.f32.mrb[28].mxu1  ;;  %6604 = vrot.lane.b32.xlu1 %v8462_v49, %s9134_s8  ;;  %v4646_v50 = vpop.f32.mrb[45].mxu0 }
 0x3be   : > { %v6475_v7 = vpop.f32.mrb[29].mxu1  ;;  %6602 = vrot.lane.b32.xlu0 %v4616_v10, %s9134_s8 }
 0x3c0   : > { %v8474_v3 = vpop.f32.mrb[46].mxu0 }
 0x3c1   : > { %v8682_v17 = vpop.f32.mrb[30].mxu1  ;;  %6668 = vrot.lane.b32.xlu1 %v8670_v28, %s9135_s20  ;;  %v4656_v21 = vpop.f32.mrb[47].mxu0 }
 0x3c2   : > { %v6485_v12 = vpop.f32.mrb[31].mxu1  ;;  %6666 = vrot.lane.b32.xlu0 %v6445_v55, %s9135_s20 }
 0x3c5   : > { %6608 = vrot.lane.b32.xlu1 %v8465_v46, %s9134_s8 }
 0x3c6   : > { %6606 = vrot.lane.b32.xlu0 %v4626_v38, %s9134_s8 }
 0x3c9   : > { %6672 = vrot.lane.b32.xlu1 %v8673_v57, %s9135_s20 }
 0x3ca   : > { %6670 = vrot.lane.b32.xlu0 %v6455_v5, %s9135_s20 }
 0x3cd   : > { %6612 = vrot.lane.b32.xlu1 %v8468_v8, %s9134_s8  ;;  %v6708_v8 = vsel %vm6702_vm9, 0.0, %v6537_v32  ;;  %v11912_v32 = vld [vmem:[#allocation12_spill] sm:$0xff] }
 0x3ce   : > { %6610 = vrot.lane.b32.xlu0 %v4636_v14, %s9134_s8 }
 0x3d1   : > { %6676 = vrot.lane.b32.xlu1 %v8676_v31, %s9135_s20  ;;  %v11910_v31 = vld [vmem:[#allocation6_spill] sm:$0xff] }
 0x3d2   : > { %6674 = vrot.lane.b32.xlu0 %v6465_v58, %s9135_s20  ;;  %v880_v14 = vadd.f32 %v11910_v31, %v11618_v59  ;;  %v6707_v58 = vsel %vm6702_vm9, 0.0, %v6535_v25  ;;  %v890_v25 = vadd.f32 %v11912_v32, %v11618_v59  ;;  %v11917_v31 = vld [vmem:[#allocation17_spill] sm:$0xff]  ;;  %v11919_v32 = vld [vmem:[#allocation19_spill] sm:$0xff] }
 0x3d5   : > { %6616 = vrot.lane.b32.xlu1 %v8471_v61, %s9134_s8 }
 0x3d6   : > { %6614 = vrot.lane.b32.xlu0 %v4646_v50, %s9134_s8  ;;  %v11911_v50 = vld [vmem:[#allocation7_spill] sm:$0xff] }
 0x3d9   : > { %6680 = vrot.lane.b32.xlu1 %v8679_v23, %s9135_s20 }
 0x3da   : > { %6678 = vrot.lane.b32.xlu0 %v6475_v7, %s9135_s20  ;;  %v875_v7 = vadd.f32 %v11618_v59, %v11911_v50 }
 0x3dd   : > { %6620 = vrot.lane.b32.xlu1 %v8474_v3, %s9134_s8 }
 0x3de   : > { %6618 = vrot.lane.b32.xlu0 %v4656_v21, %s9134_s8 }
 0x3e1   : > { %6684 = vrot.lane.b32.xlu1 %v8682_v17, %s9135_s20 }
 0x3e2   : > { %6682 = vrot.lane.b32.xlu0 %v6485_v12, %s9135_s20 }
 0x3e6   : > { %6791 = vrot.lane.b32.xlu0 %v7590_v44, %s9136_s22 }
 0x417   : > { %v6593_v51 = vpop.permute.xlu1 %6592 }
 0x418   : > { %v6591_v16 = vpop.permute.xlu0 %6590  ;;  %v6721_v6 = vsel %vm6719_vm10, %v6704_v29, %v6593_v51  ;;  %v6709_v51 = vsel %vm6702_vm9, 0.0, %v6539_v56  ;;  %v6712_v56 = vsel %vm6702_vm9, 0.0, %v11599_v26 }
 0x419   : > { %v6720_v54 = vsel %vm6719_vm10, %v6703_v35, %v6591_v16 }
 0x41b   : > { %v6657_v20 = vpop.permute.xlu1 %6656 }
 0x41c   : > { %v6738_v53 = vsel %vm6736_vm11, %v6721_v6, %v6657_v20  ;;  %v6655_v45 = vpop.permute.xlu0 %6654 }
 0x41d   : > { %v11629_v42 = vadd.f32 %v6738_v53, %v860_v36  ;;  %v6737_v37 = vsel %vm6736_vm11, %v6720_v54, %v6655_v45  ;;  %v885_v36 = vadd.f32 %v11618_v59, %v11913_v60  ;;  %v11914_v45 = vld [vmem:[#allocation13_spill] sm:$0xff] }
 0x41e   : > { %v11632_v30 = vadd.f32 %v6737_v37, %v855_v4  ;;  %v900_v37 = vadd.f32 %v11914_v45, %v11618_v59 }
 0x41f   : > { %v6597_v63 = vpop.permute.xlu1 %6596  ;;  %v6770_v45 = vmax.f32 %v11629_v42, 0.0 }
 0x420   : > { %v6595_v47 = vpop.permute.xlu0 %6594  ;;  %v6723_v34 = vsel %vm6719_vm10, %v6706_v62, %v6597_v63  ;;  %v6711_v63 = vsel %vm6702_vm9, 0.0, %v11603_v52  ;;  %v6714_v52 = vsel %vm6702_vm9, 0.0, %v11601_v24 }
 0x421   : > { %v6722_v49 = vsel %vm6719_vm10, %v6705_v18, %v6595_v47 }
 0x423   : > { %v6661_v48 = vpop.permute.xlu1 %6660 }
 0x424   : > { %v6740_v28 = vsel %vm6736_vm11, %v6723_v34, %v6661_v48  ;;  %v6659_v10 = vpop.permute.xlu0 %6658 }
 0x425   : > { %v11643_v55 = vadd.f32 %v6740_v28, %v870_v43  ;;  %v6739_v46 = vsel %vm6736_vm11, %v6722_v49, %v6659_v10  ;;  %v895_v43 = vadd.f32 %v11618_v59, %v11915_v39  ;;  %v11916_v10 = vld [vmem:[#allocation16_spill] sm:$0xff] }
 0x426   : > { %v11646_v57 = vadd.f32 %v6739_v46, %v865_v2  ;;  %v910_v46 = vadd.f32 %v11916_v10, %v11618_v59 }
 0x427   : > { %v6601_v38 = vpop.permute.xlu1 %6600 }
 0x428   : > { %v6599_v5 = vpop.permute.xlu0 %6598  ;;  %v6725_v61 = vsel %vm6719_vm10, %v6708_v8, %v6601_v38  ;;  %v6713_v38 = vsel %vm6702_vm9, 0.0, %v11605_v0  ;;  %v6716_v0 = vsel %vm6702_vm9, 0.0, %v11607_v13 }
 0x429   : > { %v6724_v3 = vsel %vm6719_vm10, %v6707_v58, %v6599_v5 }
 0x42b   : > { %v6665_v23 = vpop.permute.xlu1 %6664 }
 0x42c   : > { %v6742_v17 = vsel %vm6736_vm11, %v6725_v61, %v6665_v23  ;;  %v6663_v21 = vpop.permute.xlu0 %6662 }
 0x42d   : > { %v11657_v12 = vadd.f32 %v6742_v17, %v880_v14  ;;  %v6741_v44 = vsel %vm6736_vm11, %v6724_v3, %v6663_v21  ;;  %v905_v14 = vadd.f32 %v11618_v59, %v11917_v31  ;;  %v11918_v21 = vld [vmem:[#allocation18_spill] sm:$0xff] }
 0x42e   : > { %v11660_v27 = vadd.f32 %v6741_v44, %v875_v7  ;;  %v920_v44 = vadd.f32 %v11918_v21, %v11618_v59 }
 0x42f   : > { %v6605_v11 = vpop.permute.xlu1 %6604 }
 0x430   : > { %v6603_v19 = vpop.permute.xlu0 %6602  ;;  %v6727_v16 = vsel %vm6719_vm10, %v6710_v22, %v6605_v11  ;;  %v6715_v11 = vsel %vm6702_vm9, 0.0, %v11609_v9 }
 0x431   : > { %v6726_v35 = vsel %vm6719_vm10, %v6709_v51, %v6603_v19 }
 0x433   : > { %v6669_v29 = vpop.permute.xlu1 %6668 }
 0x434   : > { %v6744_v6 = vsel %vm6736_vm11, %v6727_v16, %v6669_v29  ;;  %v6667_v20 = vpop.permute.xlu0 %6666 }
 0x435   : > { %v11671_v15 = vadd.f32 %v6744_v6, %v890_v25  ;;  %v6743_v41 = vsel %vm6736_vm11, %v6726_v35, %v6667_v20  ;;  %v915_v25 = vadd.f32 %v11618_v59, %v11919_v32  ;;  %v11920_v20 = vld [vmem:[#allocation20_spill] sm:$0xff] }
 0x436   : > { %v11674_v4 = vadd.f32 %v6743_v41, %v885_v36  ;;  %v930_v9 = vadd.f32 %v11920_v20, %v11618_v59  ;;  %v11921_v41 = vld [vmem:[#allocation21_spill] sm:$0xff] }
 0x437   : > { %v6609_v54 = vpop.permute.xlu1 %6608 }
 0x438   : > { %v6607_v53 = vpop.permute.xlu0 %6606  ;;  %v6729_v47 = vsel %vm6719_vm10, %v6712_v56, %v6609_v54  ;;  %v925_v54 = vadd.f32 %v11618_v59, %v11921_v41  ;;  %v6717_v56 = vsel %vm6702_vm9, 0.0, %v11613_v1  ;;  %v6774_v1 = vmax.f32 %v11657_v12, 0.0 }
 0x439   : > { %v6728_v18 = vsel %vm6719_vm10, %v6711_v63, %v6607_v53  ;;  %v6718_v53 = vsel %vm6702_vm9, 0.0, %v11611_v33  ;;  %v6771_v33 = vmax.f32 %v11646_v57, 0.0 }
 0x43b   : > { %v6673_v62 = vpop.permute.xlu1 %6672 }
 0x43c   : > { %v6746_v34 = vsel %vm6736_vm11, %v6729_v47, %v6673_v62  ;;  %v6671_v48 = vpop.permute.xlu0 %6670  ;;  %v6769_v47 = vmax.f32 %v11632_v30, 0.0  ;;  %v6772_v62 = vmax.f32 %v11643_v55, 0.0  ;;  %v6775_v30 = vmax.f32 %v11674_v4, 0.0 }
 0x43d   : > { %v11687_v40 = vadd.f32 %v6746_v34, %v900_v37  ;;  %v6745_v26 = vsel %vm6736_vm11, %v6728_v18, %v6671_v48  ;;  %v6773_v34 = vmax.f32 %v11660_v27, 0.0  ;;  %v6776_v48 = vmax.f32 %v11671_v15, 0.0 }
 0x43e   : > { %v11690_v2 = vadd.f32 %v6745_v26, %v895_v43 }
 0x43f   : > { %v6613_v49 = vpop.permute.xlu1 %6612  ;;  %v6778_v55 = vmax.f32 %v11687_v40, 0.0 }
 0x440   : > { %v6611_v28 = vpop.permute.xlu0 %6610  ;;  %v6731_v5 = vsel %vm6719_vm10, %v6714_v52, %v6613_v49  ;;  %v6777_v49 = vmax.f32 %v11690_v2, 0.0 }
 0x441   : > { %v6730_v58 = vsel %vm6719_vm10, %v6713_v38, %v6611_v28 }
 0x443   : > { %v6677_v8 = vpop.permute.xlu1 %6676 }
 0x444   : > { %v6748_v61 = vsel %vm6736_vm11, %v6731_v5, %v6677_v8  ;;  %v6675_v23 = vpop.permute.xlu0 %6674 }
 0x445   : > { %v11703_v50 = vadd.f32 %v6748_v61, %v910_v46  ;;  %v6747_v24 = vsel %vm6736_vm11, %v6730_v58, %v6675_v23 }
 0x446   : > { %v11706_v7 = vadd.f32 %v6747_v24, %v905_v14 }
 0x447   : > { %v6617_v3 = vpop.permute.xlu1 %6616  ;;  %v6780_v28 = vmax.f32 %v11703_v50, 0.0 }
 0x448   : > { %v6615_v17 = vpop.permute.xlu0 %6614  ;;  %v6733_v19 = vsel %vm6719_vm10, %v6716_v0, %v6617_v3  ;;  %v6779_v57 = vmax.f32 %v11706_v7, 0.0 }
 0x449   : > { %v6732_v51 = vsel %vm6719_vm10, %v6715_v11, %v6615_v17 }
 0x44b   : > { %v6681_v22 = vpop.permute.xlu1 %6680 }
 0x44c   : > { %v6750_v16 = vsel %vm6736_vm11, %v6733_v19, %v6681_v22  ;;  %v6679_v29 = vpop.permute.xlu0 %6678 }
 0x44d   : > { %v6766_v60 = vadd.f32 %v6750_v16, %v920_v44  ;;  %v6749_v13 = vsel %vm6736_vm11, %v6732_v51, %v6679_v29 }
 0x44e   : > { %v6765_v36 = vadd.f32 %v6749_v13, %v915_v25 }
 0x44f   : > { %v6621_v35 = vpop.permute.xlu1 %6620  ;;  %v6782_v12 = vmax.f32 %v6766_v60, 0.0 }
 0x450   : > { %v6619_v6 = vpop.permute.xlu0 %6618  ;;  %v6735_v37 = vsel %vm6719_vm10, %v6718_v53, %v6621_v35  ;;  %v6781_v52 = vmax.f32 %v6765_v36, 0.0 }
 0x451   : > { %v6734_v39 = vsel %vm6719_vm10, %v6717_v56, %v6619_v6 }
 0x453   : > { %v6685_v63 = vpop.permute.xlu1 %6684 }
 0x454   : > { %v6752_v59 = vsel %vm6736_vm11, %v6735_v37, %v6685_v63  ;;  %v6683_v43 = vpop.permute.xlu0 %6682 }
 0x455   : > { %v6768_v18 = vadd.f32 %v6752_v59, %v930_v9  ;;  %v6751_v42 = vsel %vm6736_vm11, %v6734_v39, %v6683_v43 }
 0x456   : > { %v6767_v26 = vadd.f32 %v6751_v42, %v925_v54 }
 0x457   : > { %v6784_v27 = vmax.f32 %v6768_v18, 0.0 }
 0x458   : > { %v6783_v10 = vmax.f32 %v6767_v26, 0.0  ;;  %v6792_v15 = vpop.permute.xlu0 %6791 }
 0x459   : > { %v6795_v4 = vsel %vm6794_vm12, %v6769_v47, %v6792_v15  ;;  %v6796_v40 = vsel %vm6794_vm12, %v6770_v45, %v6792_v15  ;;  %v6797_v2 = vsel %vm6794_vm12, %v6771_v33, %v6792_v15  ;;  %v6798_v46 = vsel %vm6794_vm12, %v6772_v62, %v6792_v15 }
 0x45a   : > { %v6799_v38 = vsel %vm6794_vm12, %v6773_v34, %v6792_v15  ;;  %v6800_v5 = vsel %vm6794_vm12, %v6774_v1, %v6792_v15  ;;  %v6801_v8 = vsel %vm6794_vm12, %v6775_v30, %v6792_v15  ;;  %v6802_v31 = vsel %vm6794_vm12, %v6776_v48, %v6792_v15  ;;  %6812 = vst.msk [vmem:[%s9213_s14] sm:$0xff] %vm6811_vm13, %v6795_v4 }
 0x45b   : > { %6813 = vst.msk [vmem:[%s9213_s14 + $0x8] sm:$0xff] %vm6811_vm13, %v6796_v40  ;;  %6814 = vst.msk [vmem:[%s9213_s14 + $0x10] sm:$0xff] %vm6811_vm13, %v6797_v2  ;;  %v6803_v14 = vsel %vm6794_vm12, %v6777_v49, %v6792_v15  ;;  %v6804_v58 = vsel %vm6794_vm12, %v6778_v55, %v6792_v15  ;;  %v6805_v61 = vsel %vm6794_vm12, %v6779_v57, %v6792_v15 }
 0x45c   : > { %6815 = vst.msk [vmem:[%s9213_s14 + $0x18] sm:$0xff] %vm6811_vm13, %v6798_v46  ;;  %v6806_v23 = vsel %vm6794_vm12, %v6780_v28, %v6792_v15  ;;  %6816 = vst.msk [vmem:[%s9213_s14 + $0x20] sm:$0xff] %vm6811_vm13, %v6799_v38  ;;  %v6807_v50 = vsel %vm6794_vm12, %v6781_v52, %v6792_v15  ;;  %v6808_v24 = vsel %vm6794_vm12, %v6782_v12, %v6792_v15 }
 0x45d   : > { %6817 = vst.msk [vmem:[%s9213_s14 + $0x28] sm:$0xff] %vm6811_vm13, %v6800_v5  ;;  %6818 = vst.msk [vmem:[%s9213_s14 + $0x30] sm:$0xff] %vm6811_vm13, %v6801_v8  ;;  %v6809_v7 = vsel %vm6794_vm12, %v6783_v10, %v6792_v15  ;;  %v6810_v3 = vsel %vm6794_vm12, %v6784_v27, %v6792_v15 }
 0x45e   : > { %6819 = vst.msk [vmem:[%s9213_s14 + $0x38] sm:$0xff] %vm6811_vm13, %v6802_v31  ;;  %6820 = vst.msk [vmem:[%s9213_s14 + $0x40] sm:$0xff] %vm6811_vm13, %v6803_v14 }
 0x45f   : > { %6821 = vst.msk [vmem:[%s9213_s14 + $0x48] sm:$0xff] %vm6811_vm13, %v6804_v58  ;;  %6822 = vst.msk [vmem:[%s9213_s14 + $0x50] sm:$0xff] %vm6811_vm13, %v6805_v61 }
 0x460   : > { %6823 = vst.msk [vmem:[%s9213_s14 + $0x58] sm:$0xff] %vm6811_vm13, %v6806_v23  ;;  %6824 = vst.msk [vmem:[%s9213_s14 + $0x60] sm:$0xff] %vm6811_vm13, %v6807_v50 }
 0x461   : > { %6825 = vst.msk [vmem:[%s9213_s14 + $0x68] sm:$0xff] %vm6811_vm13, %v6808_v24  ;;  %6826 = vst.msk [vmem:[%s9213_s14 + $0x70] sm:$0xff] %vm6811_vm13, %v6809_v7 }
 0x462   : > { %6827 = vst.msk [vmem:[%s9213_s14 + $0x78] sm:$0xff] %vm6811_vm13, %v6810_v3 }
 0x463 PF: > { %s16_s25 = sadd.s32 1, %s9129_s25   ;;  %s11922_s21 = smov %s9121_s23 }
 0x464   : > { %p13_p8 = scmp.ge.s32.totalorder %s16_s25, 6   ;;  %s11923_s22 = smov %s9125_s24 }
 0x465   : > { %s11924_s23 = smov %s11927_s26  ;;  %s11925_s24 = smov %s11931_s27 }
 0x466   :  { %15 = sbr.rel (!%p13_p8) target bundleno = 3 (0x3), region = 109 }

</bundles_post_ra>
